<compile_context>
chip_gen: v6e
topology: v6e:2x2x1
jax: 0.10.0
libtpu: 0.0.40
codegen_flags: <defaults>
</compile_context>

<pallas_src>
import math
import functools

import jax
import jax.numpy as jnp
from jax.experimental import pallas as pl
from jax.experimental.pallas import tpu as pltpu


# ----------------------------------------------------------------------------
# In-kernel helpers (operate on values, not refs)
# ----------------------------------------------------------------------------

def _layer_norm(x, g, b):
    # Biased variance, eps=1e-5, matching torch.nn.LayerNorm.
    mean = jnp.mean(x, axis=-1, keepdims=True)
    var = jnp.mean((x - mean) ** 2, axis=-1, keepdims=True)
    return (x - mean) * jax.lax.rsqrt(var + 1e-5) * g + b


def _mha(q, k, v, wo, num_heads, d_k, scale, causal):
    """Multi-head attention core + output projection (no bias).

    q: (Nq, E), k/v: (Nk, E), wo: (E, E). Heads are static lane slices; the
    combine_heads transpose is replaced by per-head accumulation into the
    output projection.  Returns (Nq, E) in f32.
    """
    Nq, E = q.shape
    Nk = k.shape[0]
    out = jnp.zeros((Nq, E), dtype=jnp.float32)
    for h in range(num_heads):
        lo = h * d_k
        qh = q[:, lo:lo + d_k] * scale
        kh = k[:, lo:lo + d_k]
        vh = v[:, lo:lo + d_k]
        # q @ k^T without an explicit transpose (contract last dims of both).
        s = jax.lax.dot_general(qh, kh, (((1,), (1,)), ((), ())),
                                preferred_element_type=jnp.float32)
        if causal:
            row = jax.lax.broadcasted_iota(jnp.int32, (Nq, Nk), 0)
            col = jax.lax.broadcasted_iota(jnp.int32, (Nq, Nk), 1)
            s = jnp.where(row >= col, s, -1000000000.0)
        s = s - jnp.max(s, axis=-1, keepdims=True)
        e = jnp.exp(s)
        # exact reciprocal (approx=False) to preserve reference numerics
        p = e * pl.reciprocal(jnp.sum(e, axis=-1, keepdims=True), approx=False)
        oh = jnp.dot(p, vh, preferred_element_type=jnp.float32)          # (Nq, d_k)
        out = out + jnp.dot(oh, wo[lo:lo + d_k, :],
                            preferred_element_type=jnp.float32)          # (Nq, E)
    return out


# ----------------------------------------------------------------------------
# Pallas kernels
# ----------------------------------------------------------------------------

def _embed_kernel(x_ref, w_ref, b_ref, pe_ref, o_ref, *, scale):
    # linear embedding * sqrt(E) + positional encoding, fused.
    o_ref[0] = (jnp.dot(x_ref[0], w_ref[...],
                        preferred_element_type=jnp.float32)
                + b_ref[...]) * scale + pe_ref[...]


def _encoder_layer_kernel(x_ref, wqkv_ref, bqkv_ref, wo_ref, bo_ref,
                          w1_ref, b1_ref, w2_ref, b2_ref,
                          ln_g_ref, ln_b_ref, o_ref, *, num_heads):
    x = x_ref[0]                                   # (Ns, E)
    E = x.shape[1]
    d_k = E // num_heads
    scale = 1.0 / math.sqrt(d_k)
    g = ln_g_ref[...]                              # (3, E)
    bt = ln_b_ref[...]

    # --- self attention (pre-norm); src_mask is all-ones in the reference -> no mask
    xn = _layer_norm(x, g[0:1, :], bt[0:1, :])
    qkv = jnp.dot(xn, wqkv_ref[...], preferred_element_type=jnp.float32) + bqkv_ref[...]
    attn = _mha(qkv[:, :E], qkv[:, E:2 * E], qkv[:, 2 * E:], wo_ref[...],
                num_heads, d_k, scale, causal=False) + bo_ref[...]

    # --- residual + norm_output
    x1 = _layer_norm(x + attn, g[1:2, :], bt[1:2, :])

    # --- position-wise FFN + residual + norm_feedforward
    h = jnp.maximum(jnp.dot(x1, w1_ref[...], preferred_element_type=jnp.float32)
                    + b1_ref[...], 0.0)
    ff = jnp.dot(h, w2_ref[...], preferred_element_type=jnp.float32) + b2_ref[...]
    o_ref[0] = _layer_norm(x1 + ff, g[2:3, :], bt[2:3, :])


def _decoder_layer_kernel(x_ref, enc_ref,
                          wqkv_s_ref, bqkv_s_ref, wo_s_ref, bo_s_ref,
                          wq_c_ref, bq_c_ref, wkv_c_ref, bkv_c_ref, wo_c_ref, bo_c_ref,
                          w1_ref, b1_ref, w2_ref, b2_ref,
                          ln_g_ref, ln_b_ref, o_ref, *, num_heads):
    x = x_ref[0]                                   # (Nt, E)
    enc = enc_ref[0]                               # (Ns, E)
    E = x.shape[1]
    d_k = E // num_heads
    scale = 1.0 / math.sqrt(d_k)
    g = ln_g_ref[...]                              # (4, E)
    bt = ln_b_ref[...]

    # --- masked self attention (pre-norm); causal mask generated in-kernel
    xn = _layer_norm(x, g[0:1, :], bt[0:1, :])
    qkv = jnp.dot(xn, wqkv_s_ref[...], preferred_element_type=jnp.float32) + bqkv_s_ref[...]
    attn = _mha(qkv[:, :E], qkv[:, E:2 * E], qkv[:, 2 * E:], wo_s_ref[...],
                num_heads, d_k, scale, causal=True) + bo_s_ref[...]
    x = x + attn

    # --- cross attention: the SAME norm_cross_input is applied to x and enc_out
    #     (src_mask is all-ones -> no mask)
    xc = _layer_norm(x, g[1:2, :], bt[1:2, :])
    ec = _layer_norm(enc, g[1:2, :], bt[1:2, :])
    q = jnp.dot(xc, wq_c_ref[...], preferred_element_type=jnp.float32) + bq_c_ref[...]
    kv = jnp.dot(ec, wkv_c_ref[...], preferred_element_type=jnp.float32) + bkv_c_ref[...]
    attn = _mha(q, kv[:, :E], kv[:, E:], wo_c_ref[...],
                num_heads, d_k, scale, causal=False) + bo_c_ref[...]
    x = x + attn

    # --- norm_cross_output, FFN, residual, norm_feedforward_output
    x = _layer_norm(x, g[2:3, :], bt[2:3, :])
    h = jnp.maximum(jnp.dot(x, w1_ref[...], preferred_element_type=jnp.float32)
                    + b1_ref[...], 0.0)
    ff = jnp.dot(h, w2_ref[...], preferred_element_type=jnp.float32) + b2_ref[...]
    o_ref[0] = _layer_norm(x + ff, g[3:4, :], bt[3:4, :])


def _linear_kernel(x_ref, w_ref, b_ref, o_ref):
    o_ref[...] = (jnp.dot(x_ref[...], w_ref[...],
                          preferred_element_type=jnp.float32) + b_ref[...])


# ----------------------------------------------------------------------------
# Pallas wrappers (one call per layer / per stream)
# ----------------------------------------------------------------------------

def embed(x, emb_p, pe_n, scale):
    """x: (B, N, Din) -> (B, N, E); fused linear * sqrt(E) + PE add."""
    B, N, Din = x.shape
    E = emb_p["w"].shape[1]
    kernel = functools.partial(_embed_kernel, scale=scale)
    return pl.pallas_call(
        kernel,
        out_shape=jax.ShapeDtypeStruct((B, N, E), jnp.float32),
        grid=(B,),
        in_specs=[pl.BlockSpec((1, N, Din), lambda b: (b, 0, 0)),
                  pl.BlockSpec((Din, E), lambda b: (0, 0)),
                  pl.BlockSpec((1, E), lambda b: (0, 0)),
                  pl.BlockSpec((N, E), lambda b: (0, 0))],
        out_specs=pl.BlockSpec((1, N, E), lambda b: (b, 0, 0)),
        compiler_params=pltpu.CompilerParams(dimension_semantics=("parallel",)),
    )(x, emb_p["w"], emb_p["b"], pe_n)


def encoder_layer(p, x, num_heads):
    B, Ns, E = x.shape
    F = p["w1"].shape[1]
    kernel = functools.partial(_encoder_layer_kernel, num_heads=num_heads)
    return pl.pallas_call(
        kernel,
        out_shape=jax.ShapeDtypeStruct((B, Ns, E), jnp.float32),
        grid=(B,),
        in_specs=[pl.BlockSpec((1, Ns, E), lambda b: (b, 0, 0)),
                  pl.BlockSpec((E, 3 * E), lambda b: (0, 0)),
                  pl.BlockSpec((1, 3 * E), lambda b: (0, 0)),
                  pl.BlockSpec((E, E), lambda b: (0, 0)),
                  pl.BlockSpec((1, E), lambda b: (0, 0)),
                  pl.BlockSpec((E, F), lambda b: (0, 0)),
                  pl.BlockSpec((1, F), lambda b: (0, 0)),
                  pl.BlockSpec((F, E), lambda b: (0, 0)),
                  pl.BlockSpec((1, E), lambda b: (0, 0)),
                  pl.BlockSpec((3, E), lambda b: (0, 0)),
                  pl.BlockSpec((3, E), lambda b: (0, 0))],
        out_specs=pl.BlockSpec((1, Ns, E), lambda b: (b, 0, 0)),
        compiler_params=pltpu.CompilerParams(dimension_semantics=("parallel",)),
    )(x, p["wqkv"], p["bqkv"], p["wo"], p["bo"],
      p["w1"], p["b1"], p["w2"], p["b2"], p["ln_g"], p["ln_b"])


def decoder_layer(p, x, enc_out, num_heads):
    B, Nt, E = x.shape
    Ns = enc_out.shape[1]
    F = p["w1"].shape[1]
    kernel = functools.partial(_decoder_layer_kernel, num_heads=num_heads)
    return pl.pallas_call(
        kernel,
        out_shape=jax.ShapeDtypeStruct((B, Nt, E), jnp.float32),
        grid=(B,),
        in_specs=[pl.BlockSpec((1, Nt, E), lambda b: (b, 0, 0)),      # x
                  pl.BlockSpec((1, Ns, E), lambda b: (b, 0, 0)),      # enc_out
                  pl.BlockSpec((E, 3 * E), lambda b: (0, 0)),         # self-attn fused qkv
                  pl.BlockSpec((1, 3 * E), lambda b: (0, 0)),
                  pl.BlockSpec((E, E), lambda b: (0, 0)),
                  pl.BlockSpec((1, E), lambda b: (0, 0)),
                  pl.BlockSpec((E, E), lambda b: (0, 0)),             # cross-attn q
                  pl.BlockSpec((1, E), lambda b: (0, 0)),
                  pl.BlockSpec((E, 2 * E), lambda b: (0, 0)),         # cross-attn fused kv
                  pl.BlockSpec((1, 2 * E), lambda b: (0, 0)),
                  pl.BlockSpec((E, E), lambda b: (0, 0)),
                  pl.BlockSpec((1, E), lambda b: (0, 0)),
                  pl.BlockSpec((E, F), lambda b: (0, 0)),             # ffn
                  pl.BlockSpec((1, F), lambda b: (0, 0)),
                  pl.BlockSpec((F, E), lambda b: (0, 0)),
                  pl.BlockSpec((1, E), lambda b: (0, 0)),
                  pl.BlockSpec((4, E), lambda b: (0, 0)),             # layernorm params
                  pl.BlockSpec((4, E), lambda b: (0, 0))],
        out_specs=pl.BlockSpec((1, Nt, E), lambda b: (b, 0, 0)),
        compiler_params=pltpu.CompilerParams(dimension_semantics=("parallel",)),
    )(x, enc_out,
      p["wqkv_s"], p["bqkv_s"], p["wo_s"], p["bo_s"],
      p["wq_c"], p["bq_c"], p["wkv_c"], p["bkv_c"], p["wo_c"], p["bo_c"],
      p["w1"], p["b1"], p["w2"], p["b2"], p["ln_g"], p["ln_b"])


def final_linear(x2d, w, b):
    """x2d: (M, K), w: (K, N), b: (1, N) -> (M, N); single block, single step."""
    M, K = x2d.shape
    N = w.shape[1]
    return pl.pallas_call(
        _linear_kernel,
        out_shape=jax.ShapeDtypeStruct((M, N), jnp.float32),
        grid=(1,),
        in_specs=[pl.BlockSpec((M, K), lambda i: (0, 0)),
                  pl.BlockSpec((K, N), lambda i: (0, 0)),
                  pl.BlockSpec((1, N), lambda i: (0, 0))],
        out_specs=pl.BlockSpec((M, N), lambda i: (0, 0)),
        compiler_params=pltpu.CompilerParams(dimension_semantics=("arbitrary",)),
    )(x2d, w, b)


# ----------------------------------------------------------------------------
# Transformer forward (plain-JAX glue: 7 pallas_calls total)
# ----------------------------------------------------------------------------

def transformer_forward(params, src, tgt, num_heads):
    B, Ns, _ = src.shape
    Nt = tgt.shape[1]
    E = params["pe"].shape[1]
    sqrt_e = math.sqrt(E)

    # generate_mask: src_mask is all-ones (no-op, omitted); tgt_mask is the
    # causal mask, generated inside the decoder-layer kernel via iota.
    src_emb = embed(src, params["enc_emb"], params["pe"][:Ns], sqrt_e)
    tgt_emb = embed(tgt, params["dec_emb"], params["pe"][:Nt], sqrt_e)

    enc_out = src_emb
    for lp in params["encoder_layers"]:
        enc_out = encoder_layer(lp, enc_out, num_heads)

    dec_out = tgt_emb
    for lp in params["decoder_layers"]:
        dec_out = decoder_layer(lp, dec_out, enc_out, num_heads)

    out = final_linear(dec_out.reshape(B * Nt, E), params["fc"]["w"], params["fc"]["b"])
    return out.reshape(B, Nt, -1)


# ----------------------------------------------------------------------------
# Deterministic parameter initialization (torch.nn.Linear-style uniform)
# ----------------------------------------------------------------------------

def _init_linear_wb(key, fan_in, fan_out):
    k1, k2 = jax.random.split(key)
    bound = 1.0 / math.sqrt(fan_in)
    w = jax.random.uniform(k1, (fan_in, fan_out), jnp.float32, -bound, bound)
    b = jax.random.uniform(k2, (fan_out,), jnp.float32, -bound, bound)
    return w, b


def _init_mha_fused(key, E):
    ks = jax.random.split(key, 4)
    wq, bq = _init_linear_wb(ks[0], E, E)
    wk, bk = _init_linear_wb(ks[1], E, E)
    wv, bv = _init_linear_wb(ks[2], E, E)
    wo, bo = _init_linear_wb(ks[3], E, E)
    return {"wqkv": jnp.concatenate([wq, wk, wv], axis=1),
            "bqkv": jnp.concatenate([bq, bk, bv]).reshape(1, 3 * E),
            "wo": wo, "bo": bo.reshape(1, E)}


def _init_mha_cross(key, E):
    ks = jax.random.split(key, 4)
    wq, bq = _init_linear_wb(ks[0], E, E)
    wk, bk = _init_linear_wb(ks[1], E, E)
    wv, bv = _init_linear_wb(ks[2], E, E)
    wo, bo = _init_linear_wb(ks[3], E, E)
    return {"wq": wq, "bq": bq.reshape(1, E),
            "wkv": jnp.concatenate([wk, wv], axis=1),
            "bkv": jnp.concatenate([bk, bv]).reshape(1, 2 * E),
            "wo": wo, "bo": bo.reshape(1, E)}


def init_encoder_layer(key, E, F):
    k1, k2 = jax.random.split(key)
    mha = _init_mha_fused(k1, E)
    k21, k22 = jax.random.split(k2)
    w1, b1 = _init_linear_wb(k21, E, F)
    w2, b2 = _init_linear_wb(k22, F, E)
    return {**mha,
            "w1": w1, "b1": b1.reshape(1, F), "w2": w2, "b2": b2.reshape(1, E),
            # rows: norm_input, norm_output, norm_feedforward
            "ln_g": jnp.ones((3, E), jnp.float32),
            "ln_b": jnp.zeros((3, E), jnp.float32)}


def init_decoder_layer(key, E, F):
    # NOTE: the reference also creates norm_mask_output, which is never used in
    # forward; it has no effect on the output so it is not materialized here.
    k1, k2, k3 = jax.random.split(key, 3)
    s = _init_mha_fused(k1, E)
    c = _init_mha_cross(k2, E)
    k31, k32 = jax.random.split(k3)
    w1, b1 = _init_linear_wb(k31, E, F)
    w2, b2 = _init_linear_wb(k32, F, E)
    return {"wqkv_s": s["wqkv"], "bqkv_s": s["bqkv"], "wo_s": s["wo"], "bo_s": s["bo"],
            "wq_c": c["wq"], "bq_c": c["bq"], "wkv_c": c["wkv"], "bkv_c": c["bkv"],
            "wo_c": c["wo"], "bo_c": c["bo"],
            "w1": w1, "b1": b1.reshape(1, F), "w2": w2, "b2": b2.reshape(1, E),
            # rows: norm_input, norm_cross_input, norm_cross_output, norm_feedforward_output
            "ln_g": jnp.ones((4, E), jnp.float32),
            "ln_b": jnp.zeros((4, E), jnp.float32)}


def positional_encoding_table(E, max_len=64):
    pos = jnp.arange(max_len, dtype=jnp.float32)[:, None]
    div = jnp.exp(jnp.arange(0, E, 2, dtype=jnp.float32) * (-(math.log(10000.0) / E)))
    pe = jnp.zeros((max_len, E), jnp.float32)
    pe = pe.at[:, 0::2].set(jnp.sin(pos * div))
    pe = pe.at[:, 1::2].set(jnp.cos(pos * div))
    return pe


def init_transformer(key, enc_in, dec_in, E, F, num_layers):
    keys = jax.random.split(key, 3 + 2 * num_layers)
    ew, eb = _init_linear_wb(keys[0], enc_in, E)
    dw, db = _init_linear_wb(keys[1], dec_in, E)
    fw, fb = _init_linear_wb(keys[2], E, dec_in)
    return {
        "enc_emb": {"w": ew, "b": eb.reshape(1, E)},
        "dec_emb": {"w": dw, "b": db.reshape(1, E)},
        "fc": {"w": fw, "b": fb.reshape(1, dec_in)},
        "encoder_layers": [init_encoder_layer(keys[3 + i], E, F) for i in range(num_layers)],
        "decoder_layers": [init_decoder_layer(keys[3 + num_layers + i], E, F)
                           for i in range(num_layers)],
        "pe": positional_encoding_table(E),
    }


# ----------------------------------------------------------------------------
# Main
# ----------------------------------------------------------------------------

if __name__ == "__main__":
    # Small config consistent with the module: src is (B, 8, enc_in), tgt is (B, 12, dec_in).
    encoder_input_size = 8
    decoder_input_size = 8
    embedding_size = 32
    num_heads = 4
    num_layers = 2
    feedforward_size = 64
    B = 2

    root = jax.random.PRNGKey(0)
    k_params, k_src, k_tgt = jax.random.split(root, 3)
    params = init_transformer(k_params, encoder_input_size, decoder_input_size,
                              embedding_size, feedforward_size, num_layers)

    src = jax.random.normal(k_src, (B, 8, encoder_input_size), jnp.float32)
    tgt = jax.random.normal(k_tgt, (B, 12, decoder_input_size), jnp.float32)

    fwd = jax.jit(functools.partial(transformer_forward, num_heads=num_heads))
    out = fwd(params, src, tgt)
    jax.block_until_ready(out)
    assert out.shape == (B, 12, decoder_input_size)
    print("KERNEL_OK")
</pallas_src>

<mosaic_0001>
module attributes {stable_mosaic.version = 11 : i64} {
  func.func @_embed_kernel(%arg0: i32, %arg1: memref<1x8x8xf32, #tpu.memory_space<vmem>>, %arg2: memref<8x32xf32, #tpu.memory_space<vmem>>, %arg3: memref<1x32xf32, #tpu.memory_space<vmem>>, %arg4: memref<8x32xf32, #tpu.memory_space<vmem>>, %arg5: memref<1x8x32xf32, #tpu.memory_space<vmem>>) attributes {dimension_semantics = [#tpu.dimension_semantics<parallel>], iteration_bounds = array<i64: 2>, scalar_prefetch = 0 : i64, scratch_operands = 0 : i64, tpu.core_type = #tpu.core_type<tc>, window_params = [{transform_indices = @transform_0, window_bounds = array<i64: 1, 8, 8>}, {pipeline_mode = #tpu.pipeline_mode<synchronous>, transform_indices = @transform_1, window_bounds = array<i64: 8, 32>}, {pipeline_mode = #tpu.pipeline_mode<synchronous>, transform_indices = @transform_2, window_bounds = array<i64: 1, 32>}, {pipeline_mode = #tpu.pipeline_mode<synchronous>, transform_indices = @transform_3, window_bounds = array<i64: 8, 32>}, {transform_indices = @transform_4, window_bounds = array<i64: 1, 8, 32>}]} {
    %c0 = arith.constant 0 : index
    %c0_0 = arith.constant 0 : index
    %c0_1 = arith.constant 0 : index
    %0 = vector.load %arg1[%c0, %c0_0, %c0_1] : memref<1x8x8xf32, #tpu.memory_space<vmem>>, vector<1x8x8xf32>
    %1 = vector.shape_cast %0 : vector<1x8x8xf32> to vector<8x8xf32>
    %c0_2 = arith.constant 0 : index
    %c0_3 = arith.constant 0 : index
    %2 = vector.load %arg2[%c0_2, %c0_3] : memref<8x32xf32, #tpu.memory_space<vmem>>, vector<8x32xf32>
    %cst = arith.constant dense<0.000000e+00> : vector<8x32xf32>
    %3 = tpu.matmul %1, %2, %cst {dimension_numbers = #tpu.dot_dimension_numbers<[1], [0], [0], [1], [0, 0, 1, 1], [], []>} : vector<8x8xf32>, vector<8x32xf32>, vector<8x32xf32> -> vector<8x32xf32>
    %c0_4 = arith.constant 0 : index
    %c0_5 = arith.constant 0 : index
    %4 = vector.load %arg3[%c0_4, %c0_5] : memref<1x32xf32, #tpu.memory_space<vmem>>, vector<1x32xf32>
    %5 = vector.broadcast %4 : vector<1x32xf32> to vector<8x32xf32>
    %6 = arith.addf %3, %5 : vector<8x32xf32>
    %cst_6 = arith.constant 5.65685415 : f32
    %7 = vector.broadcast %cst_6 : f32 to vector<8x32xf32>
    %8 = arith.mulf %6, %7 : vector<8x32xf32>
    %c0_7 = arith.constant 0 : index
    %c0_8 = arith.constant 0 : index
    %9 = vector.load %arg4[%c0_7, %c0_8] : memref<8x32xf32, #tpu.memory_space<vmem>>, vector<8x32xf32>
    %10 = arith.addf %8, %9 : vector<8x32xf32>
    %c0_9 = arith.constant 0 : index
    %c0_10 = arith.constant 0 : index
    %c0_11 = arith.constant 0 : index
    %11 = vector.load %arg5[%c0_9, %c0_10, %c0_11] : memref<1x8x32xf32, #tpu.memory_space<vmem>>, vector<1x8x32xf32>
    %12 = vector.shape_cast %11 : vector<1x8x32xf32> to vector<8x32xf32>
    %13 = vector.shape_cast %10 : vector<8x32xf32> to vector<1x8x32xf32>
    tpu.vector_store %arg5[%c0_9, %c0_10, %c0_11], %13 {strides = array<i32>} : memref<1x8x32xf32, #tpu.memory_space<vmem>>, vector<1x8x32xf32>,
    return
  }
  func.func @transform_0(%arg0: i32) -> (i32, i32, i32) {
    %c0_i32 = arith.constant 0 : i32
    %c0_i32_0 = arith.constant 0 : i32
    %c0_i32_1 = arith.constant 0 : i32
    return %arg0, %c0_i32, %c0_i32_0 : i32, i32, i32
  }
  func.func @transform_1(%arg0: i32) -> (i32, i32) {
    %c0_i32 = arith.constant 0 : i32
    %c0_i32_0 = arith.constant 0 : i32
    %c0_i32_1 = arith.constant 0 : i32
    return %c0_i32, %c0_i32_0 : i32, i32
  }
  func.func @transform_2(%arg0: i32) -> (i32, i32) {
    %c0_i32 = arith.constant 0 : i32
    %c0_i32_0 = arith.constant 0 : i32
    %c0_i32_1 = arith.constant 0 : i32
    return %c0_i32, %c0_i32_0 : i32, i32
  }
  func.func @transform_3(%arg0: i32) -> (i32, i32) {
    %c0_i32 = arith.constant 0 : i32
    %c0_i32_0 = arith.constant 0 : i32
    %c0_i32_1 = arith.constant 0 : i32
    return %c0_i32, %c0_i32_0 : i32, i32
  }
  func.func @transform_4(%arg0: i32) -> (i32, i32, i32) {
    %c0_i32 = arith.constant 0 : i32
    %c0_i32_0 = arith.constant 0 : i32
    %c0_i32_1 = arith.constant 0 : i32
    return %arg0, %c0_i32, %c0_i32_0 : i32, i32, i32
  }
}

module attributes {stable_mosaic.version = 11 : i64} {
  func.func @_encoder_layer_kernel(%arg0: i32, %arg1: memref<1x8x32xf32, #tpu.memory_space<vmem>>, %arg2: memref<32x96xf32, #tpu.memory_space<vmem>>, %arg3: memref<1x96xf32, #tpu.memory_space<vmem>>, %arg4: memref<32x32xf32, #tpu.memory_space<vmem>>, %arg5: memref<1x32xf32, #tpu.memory_space<vmem>>, %arg6: memref<32x64xf32, #tpu.memory_space<vmem>>, %arg7: memref<1x64xf32, #tpu.memory_space<vmem>>, %arg8: memref<64x32xf32, #tpu.memory_space<vmem>>, %arg9: memref<1x32xf32, #tpu.memory_space<vmem>>, %arg10: memref<3x32xf32, #tpu.memory_space<vmem>>, %arg11: memref<3x32xf32, #tpu.memory_space<vmem>>, %arg12: memref<1x8x32xf32, #tpu.memory_space<vmem>>) attributes {dimension_semantics = [#tpu.dimension_semantics<parallel>], iteration_bounds = array<i64: 2>, scalar_prefetch = 0 : i64, scratch_operands = 0 : i64, tpu.core_type = #tpu.core_type<tc>, window_params = [{transform_indices = @transform_0, window_bounds = array<i64: 1, 8, 32>}, {pipeline_mode = #tpu.pipeline_mode<synchronous>, transform_indices = @transform_1, window_bounds = array<i64: 32, 96>}, {pipeline_mode = #tpu.pipeline_mode<synchronous>, transform_indices = @transform_2, window_bounds = array<i64: 1, 96>}, {pipeline_mode = #tpu.pipeline_mode<synchronous>, transform_indices = @transform_3, window_bounds = array<i64: 32, 32>}, {pipeline_mode = #tpu.pipeline_mode<synchronous>, transform_indices = @transform_4, window_bounds = array<i64: 1, 32>}, {pipeline_mode = #tpu.pipeline_mode<synchronous>, transform_indices = @transform_5, window_bounds = array<i64: 32, 64>}, {pipeline_mode = #tpu.pipeline_mode<synchronous>, transform_indices = @transform_6, window_bounds = array<i64: 1, 64>}, {pipeline_mode = #tpu.pipeline_mode<synchronous>, transform_indices = @transform_7, window_bounds = array<i64: 64, 32>}, {pipeline_mode = #tpu.pipeline_mode<synchronous>, transform_indices = @transform_8, window_bounds = array<i64: 1, 32>}, {pipeline_mode = #tpu.pipeline_mode<synchronous>, transform_indices = @transform_9, window_bounds = array<i64: 3, 32>}, {pipeline_mode = #tpu.pipeline_mode<synchronous>, transform_indices = @transform_10, window_bounds = array<i64: 3, 32>}, {transform_indices = @transform_11, window_bounds = array<i64: 1, 8, 32>}]} {
    %c0 = arith.constant 0 : index
    %c0_0 = arith.constant 0 : index
    %c0_1 = arith.constant 0 : index
    %0 = vector.load %arg1[%c0, %c0_0, %c0_1] : memref<1x8x32xf32, #tpu.memory_space<vmem>>, vector<1x8x32xf32>
    %1 = vector.shape_cast %0 : vector<1x8x32xf32> to vector<8x32xf32>
    %c0_2 = arith.constant 0 : index
    %c0_3 = arith.constant 0 : index
    %2 = vector.load %arg10[%c0_2, %c0_3] : memref<3x32xf32, #tpu.memory_space<vmem>>, vector<3x32xf32>
    %c0_4 = arith.constant 0 : index
    %c0_5 = arith.constant 0 : index
    %3 = vector.load %arg11[%c0_4, %c0_5] : memref<3x32xf32, #tpu.memory_space<vmem>>, vector<3x32xf32>
    %4 = vector.extract_strided_slice %2 {offsets = [0, 0], sizes = [1, 32], strides = [1, 1]} : vector<3x32xf32> to vector<1x32xf32>
    %5 = vector.extract_strided_slice %3 {offsets = [0, 0], sizes = [1, 32], strides = [1, 1]} : vector<3x32xf32> to vector<1x32xf32>
    %cst = arith.constant dense<0.000000e+00> : vector<8xf32>
    %6 = vector.multi_reduction <add>, %1, %cst [1] : vector<8x32xf32> to vector<8xf32>
    %7 = vector.shape_cast %6 : vector<8xf32> to vector<8x1xf32>
    %cst_6 = arith.constant 3.200000e+01 : f32
    %8 = vector.broadcast %cst_6 : f32 to vector<8x1xf32>
    %9 = arith.divf %7, %8 : vector<8x1xf32>
    %10 = vector.broadcast %9 : vector<8x1xf32> to vector<8x32xf32>
    %11 = arith.subf %1, %10 : vector<8x32xf32>
    %12 = arith.mulf %11, %11 : vector<8x32xf32>
    %cst_7 = arith.constant dense<0.000000e+00> : vector<8xf32>
    %13 = vector.multi_reduction <add>, %12, %cst_7 [1] : vector<8x32xf32> to vector<8xf32>
    %14 = vector.shape_cast %13 : vector<8xf32> to vector<8x1xf32>
    %cst_8 = arith.constant 3.200000e+01 : f32
    %15 = vector.broadcast %cst_8 : f32 to vector<8x1xf32>
    %16 = arith.divf %14, %15 : vector<8x1xf32>
    %17 = vector.broadcast %9 : vector<8x1xf32> to vector<8x32xf32>
    %18 = arith.subf %1, %17 : vector<8x32xf32>
    %cst_9 = arith.constant 9.99999974E-6 : f32
    %19 = vector.broadcast %cst_9 : f32 to vector<8x1xf32>
    %20 = arith.addf %16, %19 : vector<8x1xf32>
    %21 = math.rsqrt %20 : vector<8x1xf32>
    %22 = vector.broadcast %21 : vector<8x1xf32> to vector<8x32xf32>
    %23 = arith.mulf %18, %22 : vector<8x32xf32>
    %24 = vector.broadcast %4 : vector<1x32xf32> to vector<8x32xf32>
    %25 = arith.mulf %23, %24 : vector<8x32xf32>
    %26 = vector.broadcast %5 : vector<1x32xf32> to vector<8x32xf32>
    %27 = arith.addf %25, %26 : vector<8x32xf32>
    %c0_10 = arith.constant 0 : index
    %c0_11 = arith.constant 0 : index
    %28 = vector.load %arg2[%c0_10, %c0_11] : memref<32x96xf32, #tpu.memory_space<vmem>>, vector<32x96xf32>
    %cst_12 = arith.constant dense<0.000000e+00> : vector<8x96xf32>
    %29 = tpu.matmul %27, %28, %cst_12 {dimension_numbers = #tpu.dot_dimension_numbers<[1], [0], [0], [1], [0, 0, 1, 1], [], []>} : vector<8x32xf32>, vector<32x96xf32>, vector<8x96xf32> -> vector<8x96xf32>
    %c0_13 = arith.constant 0 : index
    %c0_14 = arith.constant 0 : index
    %30 = vector.load %arg3[%c0_13, %c0_14] : memref<1x96xf32, #tpu.memory_space<vmem>>, vector<1x96xf32>
    %31 = vector.broadcast %30 : vector<1x96xf32> to vector<8x96xf32>
    %32 = arith.addf %29, %31 : vector<8x96xf32>
    %33 = vector.extract_strided_slice %32 {offsets = [0, 0], sizes = [8, 32], strides = [1, 1]} : vector<8x96xf32> to vector<8x32xf32>
    %34 = vector.extract_strided_slice %32 {offsets = [0, 32], sizes = [8, 32], strides = [1, 1]} : vector<8x96xf32> to vector<8x32xf32>
    %35 = vector.extract_strided_slice %32 {offsets = [0, 64], sizes = [8, 32], strides = [1, 1]} : vector<8x96xf32> to vector<8x32xf32>
    %c0_15 = arith.constant 0 : index
    %c0_16 = arith.constant 0 : index
    %36 = vector.load %arg4[%c0_15, %c0_16] : memref<32x32xf32, #tpu.memory_space<vmem>>, vector<32x32xf32>
    %cst_17 = arith.constant 0.000000e+00 : f32
    %37 = vector.broadcast %cst_17 : f32 to vector<8x32xf32>
    %38 = vector.extract_strided_slice %33 {offsets = [0, 0], sizes = [8, 8], strides = [1, 1]} : vector<8x32xf32> to vector<8x8xf32>
    %cst_18 = arith.constant 0.353553385 : f32
    %39 = vector.broadcast %cst_18 : f32 to vector<8x8xf32>
    %40 = arith.mulf %38, %39 : vector<8x8xf32>
    %41 = vector.extract_strided_slice %34 {offsets = [0, 0], sizes = [8, 8], strides = [1, 1]} : vector<8x32xf32> to vector<8x8xf32>
    %42 = vector.extract_strided_slice %35 {offsets = [0, 0], sizes = [8, 8], strides = [1, 1]} : vector<8x32xf32> to vector<8x8xf32>
    %cst_19 = arith.constant dense<0.000000e+00> : vector<8x8xf32>
    %43 = tpu.matmul %40, %41, %cst_19 {dimension_numbers = #tpu.dot_dimension_numbers<[1], [1], [0], [0], [0, 0, 1, 0], [], []>} : vector<8x8xf32>, vector<8x8xf32>, vector<8x8xf32> -> vector<8x8xf32>
    %cst_20 = arith.constant dense<0xFF800000> : vector<8xf32>
    %44 = vector.multi_reduction <maximumf>, %43, %cst_20 [1] : vector<8x8xf32> to vector<8xf32>
    %45 = vector.shape_cast %44 : vector<8xf32> to vector<8x1xf32>
    %46 = vector.broadcast %45 : vector<8x1xf32> to vector<8x8xf32>
    %47 = arith.subf %43, %46 : vector<8x8xf32>
    %48 = math.exp %47 : vector<8x8xf32>
    %cst_21 = arith.constant dense<0.000000e+00> : vector<8xf32>
    %49 = vector.multi_reduction <add>, %48, %cst_21 [1] : vector<8x8xf32> to vector<8xf32>
    %50 = vector.shape_cast %49 : vector<8xf32> to vector<8x1xf32>
    %51 = tpu.reciprocal %50 : vector<8x1xf32> -> vector<8x1xf32>
    %52 = vector.broadcast %51 : vector<8x1xf32> to vector<8x8xf32>
    %53 = arith.mulf %48, %52 : vector<8x8xf32>
    %cst_22 = arith.constant dense<0.000000e+00> : vector<8x8xf32>
    %54 = tpu.matmul %53, %42, %cst_22 {dimension_numbers = #tpu.dot_dimension_numbers<[1], [0], [0], [1], [0, 0, 1, 1], [], []>} : vector<8x8xf32>, vector<8x8xf32>, vector<8x8xf32> -> vector<8x8xf32>
    %55 = vector.extract_strided_slice %36 {offsets = [0, 0], sizes = [8, 32], strides = [1, 1]} : vector<32x32xf32> to vector<8x32xf32>
    %cst_23 = arith.constant dense<0.000000e+00> : vector<8x32xf32>
    %56 = tpu.matmul %54, %55, %cst_23 {dimension_numbers = #tpu.dot_dimension_numbers<[1], [0], [0], [1], [0, 0, 1, 1], [], []>} : vector<8x8xf32>, vector<8x32xf32>, vector<8x32xf32> -> vector<8x32xf32>
    %57 = arith.addf %37, %56 : vector<8x32xf32>
    %58 = vector.extract_strided_slice %33 {offsets = [0, 8], sizes = [8, 8], strides = [1, 1]} : vector<8x32xf32> to vector<8x8xf32>
    %cst_24 = arith.constant 0.353553385 : f32
    %59 = vector.broadcast %cst_24 : f32 to vector<8x8xf32>
    %60 = arith.mulf %58, %59 : vector<8x8xf32>
    %61 = vector.extract_strided_slice %34 {offsets = [0, 8], sizes = [8, 8], strides = [1, 1]} : vector<8x32xf32> to vector<8x8xf32>
    %62 = vector.extract_strided_slice %35 {offsets = [0, 8], sizes = [8, 8], strides = [1, 1]} : vector<8x32xf32> to vector<8x8xf32>
    %cst_25 = arith.constant dense<0.000000e+00> : vector<8x8xf32>
    %63 = tpu.matmul %60, %61, %cst_25 {dimension_numbers = #tpu.dot_dimension_numbers<[1], [1], [0], [0], [0, 0, 1, 0], [], []>} : vector<8x8xf32>, vector<8x8xf32>, vector<8x8xf32> -> vector<8x8xf32>
    %cst_26 = arith.constant dense<0xFF800000> : vector<8xf32>
    %64 = vector.multi_reduction <maximumf>, %63, %cst_26 [1] : vector<8x8xf32> to vector<8xf32>
    %65 = vector.shape_cast %64 : vector<8xf32> to vector<8x1xf32>
    %66 = vector.broadcast %65 : vector<8x1xf32> to vector<8x8xf32>
    %67 = arith.subf %63, %66 : vector<8x8xf32>
    %68 = math.exp %67 : vector<8x8xf32>
    %cst_27 = arith.constant dense<0.000000e+00> : vector<8xf32>
    %69 = vector.multi_reduction <add>, %68, %cst_27 [1] : vector<8x8xf32> to vector<8xf32>
    %70 = vector.shape_cast %69 : vector<8xf32> to vector<8x1xf32>
    %71 = tpu.reciprocal %70 : vector<8x1xf32> -> vector<8x1xf32>
    %72 = vector.broadcast %71 : vector<8x1xf32> to vector<8x8xf32>
    %73 = arith.mulf %68, %72 : vector<8x8xf32>
    %cst_28 = arith.constant dense<0.000000e+00> : vector<8x8xf32>
    %74 = tpu.matmul %73, %62, %cst_28 {dimension_numbers = #tpu.dot_dimension_numbers<[1], [0], [0], [1], [0, 0, 1, 1], [], []>} : vector<8x8xf32>, vector<8x8xf32>, vector<8x8xf32> -> vector<8x8xf32>
    %75 = vector.extract_strided_slice %36 {offsets = [8, 0], sizes = [8, 32], strides = [1, 1]} : vector<32x32xf32> to vector<8x32xf32>
    %cst_29 = arith.constant dense<0.000000e+00> : vector<8x32xf32>
    %76 = tpu.matmul %74, %75, %cst_29 {dimension_numbers = #tpu.dot_dimension_numbers<[1], [0], [0], [1], [0, 0, 1, 1], [], []>} : vector<8x8xf32>, vector<8x32xf32>, vector<8x32xf32> -> vector<8x32xf32>
    %77 = arith.addf %57, %76 : vector<8x32xf32>
    %78 = vector.extract_strided_slice %33 {offsets = [0, 16], sizes = [8, 8], strides = [1, 1]} : vector<8x32xf32> to vector<8x8xf32>
    %cst_30 = arith.constant 0.353553385 : f32
    %79 = vector.broadcast %cst_30 : f32 to vector<8x8xf32>
    %80 = arith.mulf %78, %79 : vector<8x8xf32>
    %81 = vector.extract_strided_slice %34 {offsets = [0, 16], sizes = [8, 8], strides = [1, 1]} : vector<8x32xf32> to vector<8x8xf32>
    %82 = vector.extract_strided_slice %35 {offsets = [0, 16], sizes = [8, 8], strides = [1, 1]} : vector<8x32xf32> to vector<8x8xf32>
    %cst_31 = arith.constant dense<0.000000e+00> : vector<8x8xf32>
    %83 = tpu.matmul %80, %81, %cst_31 {dimension_numbers = #tpu.dot_dimension_numbers<[1], [1], [0], [0], [0, 0, 1, 0], [], []>} : vector<8x8xf32>, vector<8x8xf32>, vector<8x8xf32> -> vector<8x8xf32>
    %cst_32 = arith.constant dense<0xFF800000> : vector<8xf32>
    %84 = vector.multi_reduction <maximumf>, %83, %cst_32 [1] : vector<8x8xf32> to vector<8xf32>
    %85 = vector.shape_cast %84 : vector<8xf32> to vector<8x1xf32>
    %86 = vector.broadcast %85 : vector<8x1xf32> to vector<8x8xf32>
    %87 = arith.subf %83, %86 : vector<8x8xf32>
    %88 = math.exp %87 : vector<8x8xf32>
    %cst_33 = arith.constant dense<0.000000e+00> : vector<8xf32>
    %89 = vector.multi_reduction <add>, %88, %cst_33 [1] : vector<8x8xf32> to vector<8xf32>
    %90 = vector.shape_cast %89 : vector<8xf32> to vector<8x1xf32>
    %91 = tpu.reciprocal %90 : vector<8x1xf32> -> vector<8x1xf32>
    %92 = vector.broadcast %91 : vector<8x1xf32> to vector<8x8xf32>
    %93 = arith.mulf %88, %92 : vector<8x8xf32>
    %cst_34 = arith.constant dense<0.000000e+00> : vector<8x8xf32>
    %94 = tpu.matmul %93, %82, %cst_34 {dimension_numbers = #tpu.dot_dimension_numbers<[1], [0], [0], [1], [0, 0, 1, 1], [], []>} : vector<8x8xf32>, vector<8x8xf32>, vector<8x8xf32> -> vector<8x8xf32>
    %95 = vector.extract_strided_slice %36 {offsets = [16, 0], sizes = [8, 32], strides = [1, 1]} : vector<32x32xf32> to vector<8x32xf32>
    %cst_35 = arith.constant dense<0.000000e+00> : vector<8x32xf32>
    %96 = tpu.matmul %94, %95, %cst_35 {dimension_numbers = #tpu.dot_dimension_numbers<[1], [0], [0], [1], [0, 0, 1, 1], [], []>} : vector<8x8xf32>, vector<8x32xf32>, vector<8x32xf32> -> vector<8x32xf32>
    %97 = arith.addf %77, %96 : vector<8x32xf32>
    %98 = vector.extract_strided_slice %33 {offsets = [0, 24], sizes = [8, 8], strides = [1, 1]} : vector<8x32xf32> to vector<8x8xf32>
    %cst_36 = arith.constant 0.353553385 : f32
    %99 = vector.broadcast %cst_36 : f32 to vector<8x8xf32>
    %100 = arith.mulf %98, %99 : vector<8x8xf32>
    %101 = vector.extract_strided_slice %34 {offsets = [0, 24], sizes = [8, 8], strides = [1, 1]} : vector<8x32xf32> to vector<8x8xf32>
    %102 = vector.extract_strided_slice %35 {offsets = [0, 24], sizes = [8, 8], strides = [1, 1]} : vector<8x32xf32> to vector<8x8xf32>
    %cst_37 = arith.constant dense<0.000000e+00> : vector<8x8xf32>
    %103 = tpu.matmul %100, %101, %cst_37 {dimension_numbers = #tpu.dot_dimension_numbers<[1], [1], [0], [0], [0, 0, 1, 0], [], []>} : vector<8x8xf32>, vector<8x8xf32>, vector<8x8xf32> -> vector<8x8xf32>
    %cst_38 = arith.constant dense<0xFF800000> : vector<8xf32>
    %104 = vector.multi_reduction <maximumf>, %103, %cst_38 [1] : vector<8x8xf32> to vector<8xf32>
    %105 = vector.shape_cast %104 : vector<8xf32> to vector<8x1xf32>
    %106 = vector.broadcast %105 : vector<8x1xf32> to vector<8x8xf32>
    %107 = arith.subf %103, %106 : vector<8x8xf32>
    %108 = math.exp %107 : vector<8x8xf32>
    %cst_39 = arith.constant dense<0.000000e+00> : vector<8xf32>
    %109 = vector.multi_reduction <add>, %108, %cst_39 [1] : vector<8x8xf32> to vector<8xf32>
    %110 = vector.shape_cast %109 : vector<8xf32> to vector<8x1xf32>
    %111 = tpu.reciprocal %110 : vector<8x1xf32> -> vector<8x1xf32>
    %112 = vector.broadcast %111 : vector<8x1xf32> to vector<8x8xf32>
    %113 = arith.mulf %108, %112 : vector<8x8xf32>
    %cst_40 = arith.constant dense<0.000000e+00> : vector<8x8xf32>
    %114 = tpu.matmul %113, %102, %cst_40 {dimension_numbers = #tpu.dot_dimension_numbers<[1], [0], [0], [1], [0, 0, 1, 1], [], []>} : vector<8x8xf32>, vector<8x8xf32>, vector<8x8xf32> -> vector<8x8xf32>
    %115 = vector.extract_strided_slice %36 {offsets = [24, 0], sizes = [8, 32], strides = [1, 1]} : vector<32x32xf32> to vector<8x32xf32>
    %cst_41 = arith.constant dense<0.000000e+00> : vector<8x32xf32>
    %116 = tpu.matmul %114, %115, %cst_41 {dimension_numbers = #tpu.dot_dimension_numbers<[1], [0], [0], [1], [0, 0, 1, 1], [], []>} : vector<8x8xf32>, vector<8x32xf32>, vector<8x32xf32> -> vector<8x32xf32>
    %117 = arith.addf %97, %116 : vector<8x32xf32>
    %c0_42 = arith.constant 0 : index
    %c0_43 = arith.constant 0 : index
    %118 = vector.load %arg5[%c0_42, %c0_43] : memref<1x32xf32, #tpu.memory_space<vmem>>, vector<1x32xf32>
    %119 = vector.broadcast %118 : vector<1x32xf32> to vector<8x32xf32>
    %120 = arith.addf %117, %119 : vector<8x32xf32>
    %121 = arith.addf %1, %120 : vector<8x32xf32>
    %122 = vector.extract_strided_slice %2 {offsets = [1, 0], sizes = [1, 32], strides = [1, 1]} : vector<3x32xf32> to vector<1x32xf32>
    %123 = vector.extract_strided_slice %3 {offsets = [1, 0], sizes = [1, 32], strides = [1, 1]} : vector<3x32xf32> to vector<1x32xf32>
    %cst_44 = arith.constant dense<0.000000e+00> : vector<8xf32>
    %124 = vector.multi_reduction <add>, %121, %cst_44 [1] : vector<8x32xf32> to vector<8xf32>
    %125 = vector.shape_cast %124 : vector<8xf32> to vector<8x1xf32>
    %cst_45 = arith.constant 3.200000e+01 : f32
    %126 = vector.broadcast %cst_45 : f32 to vector<8x1xf32>
    %127 = arith.divf %125, %126 : vector<8x1xf32>
    %128 = vector.broadcast %127 : vector<8x1xf32> to vector<8x32xf32>
    %129 = arith.subf %121, %128 : vector<8x32xf32>
    %130 = arith.mulf %129, %129 : vector<8x32xf32>
    %cst_46 = arith.constant dense<0.000000e+00> : vector<8xf32>
    %131 = vector.multi_reduction <add>, %130, %cst_46 [1] : vector<8x32xf32> to vector<8xf32>
    %132 = vector.shape_cast %131 : vector<8xf32> to vector<8x1xf32>
    %cst_47 = arith.constant 3.200000e+01 : f32
    %133 = vector.broadcast %cst_47 : f32 to vector<8x1xf32>
    %134 = arith.divf %132, %133 : vector<8x1xf32>
    %135 = vector.broadcast %127 : vector<8x1xf32> to vector<8x32xf32>
    %136 = arith.subf %121, %135 : vector<8x32xf32>
    %cst_48 = arith.constant 9.99999974E-6 : f32
    %137 = vector.broadcast %cst_48 : f32 to vector<8x1xf32>
    %138 = arith.addf %134, %137 : vector<8x1xf32>
    %139 = math.rsqrt %138 : vector<8x1xf32>
    %140 = vector.broadcast %139 : vector<8x1xf32> to vector<8x32xf32>
    %141 = arith.mulf %136, %140 : vector<8x32xf32>
    %142 = vector.broadcast %122 : vector<1x32xf32> to vector<8x32xf32>
    %143 = arith.mulf %141, %142 : vector<8x32xf32>
    %144 = vector.broadcast %123 : vector<1x32xf32> to vector<8x32xf32>
    %145 = arith.addf %143, %144 : vector<8x32xf32>
    %c0_49 = arith.constant 0 : index
    %c0_50 = arith.constant 0 : index
    %146 = vector.load %arg6[%c0_49, %c0_50] : memref<32x64xf32, #tpu.memory_space<vmem>>, vector<32x64xf32>
    %cst_51 = arith.constant dense<0.000000e+00> : vector<8x64xf32>
    %147 = tpu.matmul %145, %146, %cst_51 {dimension_numbers = #tpu.dot_dimension_numbers<[1], [0], [0], [1], [0, 0, 1, 1], [], []>} : vector<8x32xf32>, vector<32x64xf32>, vector<8x64xf32> -> vector<8x64xf32>
    %c0_52 = arith.constant 0 : index
    %c0_53 = arith.constant 0 : index
    %148 = vector.load %arg7[%c0_52, %c0_53] : memref<1x64xf32, #tpu.memory_space<vmem>>, vector<1x64xf32>
    %149 = vector.broadcast %148 : vector<1x64xf32> to vector<8x64xf32>
    %150 = arith.addf %147, %149 : vector<8x64xf32>
    %cst_54 = arith.constant 0.000000e+00 : f32
    %151 = vector.broadcast %cst_54 : f32 to vector<8x64xf32>
    %152 = arith.maximumf %150, %151 : vector<8x64xf32>
    %c0_55 = arith.constant 0 : index
    %c0_56 = arith.constant 0 : index
    %153 = vector.load %arg8[%c0_55, %c0_56] : memref<64x32xf32, #tpu.memory_space<vmem>>, vector<64x32xf32>
    %cst_57 = arith.constant dense<0.000000e+00> : vector<8x32xf32>
    %154 = tpu.matmul %152, %153, %cst_57 {dimension_numbers = #tpu.dot_dimension_numbers<[1], [0], [0], [1], [0, 0, 1, 1], [], []>} : vector<8x64xf32>, vector<64x32xf32>, vector<8x32xf32> -> vector<8x32xf32>
    %c0_58 = arith.constant 0 : index
    %c0_59 = arith.constant 0 : index
    %155 = vector.load %arg9[%c0_58, %c0_59] : memref<1x32xf32, #tpu.memory_space<vmem>>, vector<1x32xf32>
    %156 = vector.broadcast %155 : vector<1x32xf32> to vector<8x32xf32>
    %157 = arith.addf %154, %156 : vector<8x32xf32>
    %158 = arith.addf %145, %157 : vector<8x32xf32>
    %159 = vector.extract_strided_slice %2 {offsets = [2, 0], sizes = [1, 32], strides = [1, 1]} : vector<3x32xf32> to vector<1x32xf32>
    %160 = vector.extract_strided_slice %3 {offsets = [2, 0], sizes = [1, 32], strides = [1, 1]} : vector<3x32xf32> to vector<1x32xf32>
    %cst_60 = arith.constant dense<0.000000e+00> : vector<8xf32>
    %161 = vector.multi_reduction <add>, %158, %cst_60 [1] : vector<8x32xf32> to vector<8xf32>
    %162 = vector.shape_cast %161 : vector<8xf32> to vector<8x1xf32>
    %cst_61 = arith.constant 3.200000e+01 : f32
    %163 = vector.broadcast %cst_61 : f32 to vector<8x1xf32>
    %164 = arith.divf %162, %163 : vector<8x1xf32>
    %165 = vector.broadcast %164 : vector<8x1xf32> to vector<8x32xf32>
    %166 = arith.subf %158, %165 : vector<8x32xf32>
    %167 = arith.mulf %166, %166 : vector<8x32xf32>
    %cst_62 = arith.constant dense<0.000000e+00> : vector<8xf32>
    %168 = vector.multi_reduction <add>, %167, %cst_62 [1] : vector<8x32xf32> to vector<8xf32>
    %169 = vector.shape_cast %168 : vector<8xf32> to vector<8x1xf32>
    %cst_63 = arith.constant 3.200000e+01 : f32
    %170 = vector.broadcast %cst_63 : f32 to vector<8x1xf32>
    %171 = arith.divf %169, %170 : vector<8x1xf32>
    %172 = vector.broadcast %164 : vector<8x1xf32> to vector<8x32xf32>
    %173 = arith.subf %158, %172 : vector<8x32xf32>
    %cst_64 = arith.constant 9.99999974E-6 : f32
    %174 = vector.broadcast %cst_64 : f32 to vector<8x1xf32>
    %175 = arith.addf %171, %174 : vector<8x1xf32>
    %176 = math.rsqrt %175 : vector<8x1xf32>
    %177 = vector.broadcast %176 : vector<8x1xf32> to vector<8x32xf32>
    %178 = arith.mulf %173, %177 : vector<8x32xf32>
    %179 = vector.broadcast %159 : vector<1x32xf32> to vector<8x32xf32>
    %180 = arith.mulf %178, %179 : vector<8x32xf32>
    %181 = vector.broadcast %160 : vector<1x32xf32> to vector<8x32xf32>
    %182 = arith.addf %180, %181 : vector<8x32xf32>
    %c0_65 = arith.constant 0 : index
    %c0_66 = arith.constant 0 : index
    %c0_67 = arith.constant 0 : index
    %183 = vector.load %arg12[%c0_65, %c0_66, %c0_67] : memref<1x8x32xf32, #tpu.memory_space<vmem>>, vector<1x8x32xf32>
    %184 = vector.shape_cast %183 : vector<1x8x32xf32> to vector<8x32xf32>
    %185 = vector.shape_cast %182 : vector<8x32xf32> to vector<1x8x32xf32>
    tpu.vector_store %arg12[%c0_65, %c0_66, %c0_67], %185 {strides = array<i32>} : memref<1x8x32xf32, #tpu.memory_space<vmem>>, vector<1x8x32xf32>,
    return
  }
  func.func @transform_0(%arg0: i32) -> (i32, i32, i32) {
    %c0_i32 = arith.constant 0 : i32
    %c0_i32_0 = arith.constant 0 : i32
    %c0_i32_1 = arith.constant 0 : i32
    return %arg0, %c0_i32, %c0_i32_0 : i32, i32, i32
  }
  func.func @transform_1(%arg0: i32) -> (i32, i32) {
    %c0_i32 = arith.constant 0 : i32
    %c0_i32_0 = arith.constant 0 : i32
    %c0_i32_1 = arith.constant 0 : i32
    return %c0_i32, %c0_i32_0 : i32, i32
  }
  func.func @transform_2(%arg0: i32) -> (i32, i32) {
    %c0_i32 = arith.constant 0 : i32
    %c0_i32_0 = arith.constant 0 : i32
    %c0_i32_1 = arith.constant 0 : i32
    return %c0_i32, %c0_i32_0 : i32, i32
  }
  func.func @transform_3(%arg0: i32) -> (i32, i32) {
    %c0_i32 = arith.constant 0 : i32
    %c0_i32_0 = arith.constant 0 : i32
    %c0_i32_1 = arith.constant 0 : i32
    return %c0_i32, %c0_i32_0 : i32, i32
  }
  func.func @transform_4(%arg0: i32) -> (i32, i32) {
    %c0_i32 = arith.constant 0 : i32
    %c0_i32_0 = arith.constant 0 : i32
    %c0_i32_1 = arith.constant 0 : i32
    return %c0_i32, %c0_i32_0 : i32, i32
  }
  func.func @transform_5(%arg0: i32) -> (i32, i32) {
    %c0_i32 = arith.constant 0 : i32
    %c0_i32_0 = arith.constant 0 : i32
    %c0_i32_1 = arith.constant 0 : i32
    return %c0_i32, %c0_i32_0 : i32, i32
  }
  func.func @transform_6(%arg0: i32) -> (i32, i32) {
    %c0_i32 = arith.constant 0 : i32
    %c0_i32_0 = arith.constant 0 : i32
    %c0_i32_1 = arith.constant 0 : i32
    return %c0_i32, %c0_i32_0 : i32, i32
  }
  func.func @transform_7(%arg0: i32) -> (i32, i32) {
    %c0_i32 = arith.constant 0 : i32
    %c0_i32_0 = arith.constant 0 : i32
    %c0_i32_1 = arith.constant 0 : i32
    return %c0_i32, %c0_i32_0 : i32, i32
  }
  func.func @transform_8(%arg0: i32) -> (i32, i32) {
    %c0_i32 = arith.constant 0 : i32
    %c0_i32_0 = arith.constant 0 : i32
    %c0_i32_1 = arith.constant 0 : i32
    return %c0_i32, %c0_i32_0 : i32, i32
  }
  func.func @transform_9(%arg0: i32) -> (i32, i32) {
    %c0_i32 = arith.constant 0 : i32
    %c0_i32_0 = arith.constant 0 : i32
    %c0_i32_1 = arith.constant 0 : i32
    return %c0_i32, %c0_i32_0 : i32, i32
  }
  func.func @transform_10(%arg0: i32) -> (i32, i32) {
    %c0_i32 = arith.constant 0 : i32
    %c0_i32_0 = arith.constant 0 : i32
    %c0_i32_1 = arith.constant 0 : i32
    return %c0_i32, %c0_i32_0 : i32, i32
  }
  func.func @transform_11(%arg0: i32) -> (i32, i32, i32) {
    %c0_i32 = arith.constant 0 : i32
    %c0_i32_0 = arith.constant 0 : i32
    %c0_i32_1 = arith.constant 0 : i32
    return %arg0, %c0_i32, %c0_i32_0 : i32, i32, i32
  }
}

module attributes {stable_mosaic.version = 11 : i64} {
  func.func @_embed_kernel(%arg0: i32, %arg1: memref<1x12x8xf32, #tpu.memory_space<vmem>>, %arg2: memref<8x32xf32, #tpu.memory_space<vmem>>, %arg3: memref<1x32xf32, #tpu.memory_space<vmem>>, %arg4: memref<12x32xf32, #tpu.memory_space<vmem>>, %arg5: memref<1x12x32xf32, #tpu.memory_space<vmem>>) attributes {dimension_semantics = [#tpu.dimension_semantics<parallel>], iteration_bounds = array<i64: 2>, scalar_prefetch = 0 : i64, scratch_operands = 0 : i64, tpu.core_type = #tpu.core_type<tc>, window_params = [{transform_indices = @transform_0, window_bounds = array<i64: 1, 12, 8>}, {pipeline_mode = #tpu.pipeline_mode<synchronous>, transform_indices = @transform_1, window_bounds = array<i64: 8, 32>}, {pipeline_mode = #tpu.pipeline_mode<synchronous>, transform_indices = @transform_2, window_bounds = array<i64: 1, 32>}, {pipeline_mode = #tpu.pipeline_mode<synchronous>, transform_indices = @transform_3, window_bounds = array<i64: 12, 32>}, {transform_indices = @transform_4, window_bounds = array<i64: 1, 12, 32>}]} {
    %c0 = arith.constant 0 : index
    %c0_0 = arith.constant 0 : index
    %c0_1 = arith.constant 0 : index
    %0 = vector.load %arg1[%c0, %c0_0, %c0_1] : memref<1x12x8xf32, #tpu.memory_space<vmem>>, vector<1x12x8xf32>
    %1 = vector.shape_cast %0 : vector<1x12x8xf32> to vector<12x8xf32>
    %c0_2 = arith.constant 0 : index
    %c0_3 = arith.constant 0 : index
    %2 = vector.load %arg2[%c0_2, %c0_3] : memref<8x32xf32, #tpu.memory_space<vmem>>, vector<8x32xf32>
    %cst = arith.constant dense<0.000000e+00> : vector<12x32xf32>
    %3 = tpu.matmul %1, %2, %cst {dimension_numbers = #tpu.dot_dimension_numbers<[1], [0], [0], [1], [0, 0, 1, 1], [], []>} : vector<12x8xf32>, vector<8x32xf32>, vector<12x32xf32> -> vector<12x32xf32>
    %c0_4 = arith.constant 0 : index
    %c0_5 = arith.constant 0 : index
    %4 = vector.load %arg3[%c0_4, %c0_5] : memref<1x32xf32, #tpu.memory_space<vmem>>, vector<1x32xf32>
    %5 = vector.broadcast %4 : vector<1x32xf32> to vector<12x32xf32>
    %6 = arith.addf %3, %5 : vector<12x32xf32>
    %cst_6 = arith.constant 5.65685415 : f32
    %7 = vector.broadcast %cst_6 : f32 to vector<12x32xf32>
    %8 = arith.mulf %6, %7 : vector<12x32xf32>
    %c0_7 = arith.constant 0 : index
    %c0_8 = arith.constant 0 : index
    %9 = vector.load %arg4[%c0_7, %c0_8] : memref<12x32xf32, #tpu.memory_space<vmem>>, vector<12x32xf32>
    %10 = arith.addf %8, %9 : vector<12x32xf32>
    %c0_9 = arith.constant 0 : index
    %c0_10 = arith.constant 0 : index
    %c0_11 = arith.constant 0 : index
    %11 = vector.load %arg5[%c0_9, %c0_10, %c0_11] : memref<1x12x32xf32, #tpu.memory_space<vmem>>, vector<1x12x32xf32>
    %12 = vector.shape_cast %11 : vector<1x12x32xf32> to vector<12x32xf32>
    %13 = vector.shape_cast %10 : vector<12x32xf32> to vector<1x12x32xf32>
    tpu.vector_store %arg5[%c0_9, %c0_10, %c0_11], %13 {strides = array<i32>} : memref<1x12x32xf32, #tpu.memory_space<vmem>>, vector<1x12x32xf32>,
    return
  }
  func.func @transform_0(%arg0: i32) -> (i32, i32, i32) {
    %c0_i32 = arith.constant 0 : i32
    %c0_i32_0 = arith.constant 0 : i32
    %c0_i32_1 = arith.constant 0 : i32
    return %arg0, %c0_i32, %c0_i32_0 : i32, i32, i32
  }
  func.func @transform_1(%arg0: i32) -> (i32, i32) {
    %c0_i32 = arith.constant 0 : i32
    %c0_i32_0 = arith.constant 0 : i32
    %c0_i32_1 = arith.constant 0 : i32
    return %c0_i32, %c0_i32_0 : i32, i32
  }
  func.func @transform_2(%arg0: i32) -> (i32, i32) {
    %c0_i32 = arith.constant 0 : i32
    %c0_i32_0 = arith.constant 0 : i32
    %c0_i32_1 = arith.constant 0 : i32
    return %c0_i32, %c0_i32_0 : i32, i32
  }
  func.func @transform_3(%arg0: i32) -> (i32, i32) {
    %c0_i32 = arith.constant 0 : i32
    %c0_i32_0 = arith.constant 0 : i32
    %c0_i32_1 = arith.constant 0 : i32
    return %c0_i32, %c0_i32_0 : i32, i32
  }
  func.func @transform_4(%arg0: i32) -> (i32, i32, i32) {
    %c0_i32 = arith.constant 0 : i32
    %c0_i32_0 = arith.constant 0 : i32
    %c0_i32_1 = arith.constant 0 : i32
    return %arg0, %c0_i32, %c0_i32_0 : i32, i32, i32
  }
}

module attributes {stable_mosaic.version = 11 : i64} {
  func.func @_decoder_layer_kernel(%arg0: i32, %arg1: memref<1x12x32xf32, #tpu.memory_space<vmem>>, %arg2: memref<1x8x32xf32, #tpu.memory_space<vmem>>, %arg3: memref<32x96xf32, #tpu.memory_space<vmem>>, %arg4: memref<1x96xf32, #tpu.memory_space<vmem>>, %arg5: memref<32x32xf32, #tpu.memory_space<vmem>>, %arg6: memref<1x32xf32, #tpu.memory_space<vmem>>, %arg7: memref<32x32xf32, #tpu.memory_space<vmem>>, %arg8: memref<1x32xf32, #tpu.memory_space<vmem>>, %arg9: memref<32x64xf32, #tpu.memory_space<vmem>>, %arg10: memref<1x64xf32, #tpu.memory_space<vmem>>, %arg11: memref<32x32xf32, #tpu.memory_space<vmem>>, %arg12: memref<1x32xf32, #tpu.memory_space<vmem>>, %arg13: memref<32x64xf32, #tpu.memory_space<vmem>>, %arg14: memref<1x64xf32, #tpu.memory_space<vmem>>, %arg15: memref<64x32xf32, #tpu.memory_space<vmem>>, %arg16: memref<1x32xf32, #tpu.memory_space<vmem>>, %arg17: memref<4x32xf32, #tpu.memory_space<vmem>>, %arg18: memref<4x32xf32, #tpu.memory_space<vmem>>, %arg19: memref<1x12x32xf32, #tpu.memory_space<vmem>>) attributes {dimension_semantics = [#tpu.dimension_semantics<parallel>], iteration_bounds = array<i64: 2>, scalar_prefetch = 0 : i64, scratch_operands = 0 : i64, tpu.core_type = #tpu.core_type<tc>, window_params = [{transform_indices = @transform_0, window_bounds = array<i64: 1, 12, 32>}, {transform_indices = @transform_1, window_bounds = array<i64: 1, 8, 32>}, {pipeline_mode = #tpu.pipeline_mode<synchronous>, transform_indices = @transform_2, window_bounds = array<i64: 32, 96>}, {pipeline_mode = #tpu.pipeline_mode<synchronous>, transform_indices = @transform_3, window_bounds = array<i64: 1, 96>}, {pipeline_mode = #tpu.pipeline_mode<synchronous>, transform_indices = @transform_4, window_bounds = array<i64: 32, 32>}, {pipeline_mode = #tpu.pipeline_mode<synchronous>, transform_indices = @transform_5, window_bounds = array<i64: 1, 32>}, {pipeline_mode = #tpu.pipeline_mode<synchronous>, transform_indices = @transform_6, window_bounds = array<i64: 32, 32>}, {pipeline_mode = #tpu.pipeline_mode<synchronous>, transform_indices = @transform_7, window_bounds = array<i64: 1, 32>}, {pipeline_mode = #tpu.pipeline_mode<synchronous>, transform_indices = @transform_8, window_bounds = array<i64: 32, 64>}, {pipeline_mode = #tpu.pipeline_mode<synchronous>, transform_indices = @transform_9, window_bounds = array<i64: 1, 64>}, {pipeline_mode = #tpu.pipeline_mode<synchronous>, transform_indices = @transform_10, window_bounds = array<i64: 32, 32>}, {pipeline_mode = #tpu.pipeline_mode<synchronous>, transform_indices = @transform_11, window_bounds = array<i64: 1, 32>}, {pipeline_mode = #tpu.pipeline_mode<synchronous>, transform_indices = @transform_12, window_bounds = array<i64: 32, 64>}, {pipeline_mode = #tpu.pipeline_mode<synchronous>, transform_indices = @transform_13, window_bounds = array<i64: 1, 64>}, {pipeline_mode = #tpu.pipeline_mode<synchronous>, transform_indices = @transform_14, window_bounds = array<i64: 64, 32>}, {pipeline_mode = #tpu.pipeline_mode<synchronous>, transform_indices = @transform_15, window_bounds = array<i64: 1, 32>}, {pipeline_mode = #tpu.pipeline_mode<synchronous>, transform_indices = @transform_16, window_bounds = array<i64: 4, 32>}, {pipeline_mode = #tpu.pipeline_mode<synchronous>, transform_indices = @transform_17, window_bounds = array<i64: 4, 32>}, {transform_indices = @transform_18, window_bounds = array<i64: 1, 12, 32>}]} {
    %c0 = arith.constant 0 : index
    %c0_0 = arith.constant 0 : index
    %c0_1 = arith.constant 0 : index
    %0 = vector.load %arg1[%c0, %c0_0, %c0_1] : memref<1x12x32xf32, #tpu.memory_space<vmem>>, vector<1x12x32xf32>
    %1 = vector.shape_cast %0 : vector<1x12x32xf32> to vector<12x32xf32>
    %c0_2 = arith.constant 0 : index
    %c0_3 = arith.constant 0 : index
    %c0_4 = arith.constant 0 : index
    %2 = vector.load %arg2[%c0_2, %c0_3, %c0_4] : memref<1x8x32xf32, #tpu.memory_space<vmem>>, vector<1x8x32xf32>
    %3 = vector.shape_cast %2 : vector<1x8x32xf32> to vector<8x32xf32>
    %c0_5 = arith.constant 0 : index
    %c0_6 = arith.constant 0 : index
    %4 = vector.load %arg17[%c0_5, %c0_6] : memref<4x32xf32, #tpu.memory_space<vmem>>, vector<4x32xf32>
    %c0_7 = arith.constant 0 : index
    %c0_8 = arith.constant 0 : index
    %5 = vector.load %arg18[%c0_7, %c0_8] : memref<4x32xf32, #tpu.memory_space<vmem>>, vector<4x32xf32>
    %6 = vector.extract_strided_slice %4 {offsets = [0, 0], sizes = [1, 32], strides = [1, 1]} : vector<4x32xf32> to vector<1x32xf32>
    %7 = vector.extract_strided_slice %5 {offsets = [0, 0], sizes = [1, 32], strides = [1, 1]} : vector<4x32xf32> to vector<1x32xf32>
    %cst = arith.constant dense<0.000000e+00> : vector<12xf32>
    %8 = vector.multi_reduction <add>, %1, %cst [1] : vector<12x32xf32> to vector<12xf32>
    %9 = vector.shape_cast %8 : vector<12xf32> to vector<12x1xf32>
    %cst_9 = arith.constant 3.200000e+01 : f32
    %10 = vector.broadcast %cst_9 : f32 to vector<12x1xf32>
    %11 = arith.divf %9, %10 : vector<12x1xf32>
    %12 = vector.broadcast %11 : vector<12x1xf32> to vector<12x32xf32>
    %13 = arith.subf %1, %12 : vector<12x32xf32>
    %14 = arith.mulf %13, %13 : vector<12x32xf32>
    %cst_10 = arith.constant dense<0.000000e+00> : vector<12xf32>
    %15 = vector.multi_reduction <add>, %14, %cst_10 [1] : vector<12x32xf32> to vector<12xf32>
    %16 = vector.shape_cast %15 : vector<12xf32> to vector<12x1xf32>
    %cst_11 = arith.constant 3.200000e+01 : f32
    %17 = vector.broadcast %cst_11 : f32 to vector<12x1xf32>
    %18 = arith.divf %16, %17 : vector<12x1xf32>
    %19 = vector.broadcast %11 : vector<12x1xf32> to vector<12x32xf32>
    %20 = arith.subf %1, %19 : vector<12x32xf32>
    %cst_12 = arith.constant 9.99999974E-6 : f32
    %21 = vector.broadcast %cst_12 : f32 to vector<12x1xf32>
    %22 = arith.addf %18, %21 : vector<12x1xf32>
    %23 = math.rsqrt %22 : vector<12x1xf32>
    %24 = vector.broadcast %23 : vector<12x1xf32> to vector<12x32xf32>
    %25 = arith.mulf %20, %24 : vector<12x32xf32>
    %26 = vector.broadcast %6 : vector<1x32xf32> to vector<12x32xf32>
    %27 = arith.mulf %25, %26 : vector<12x32xf32>
    %28 = vector.broadcast %7 : vector<1x32xf32> to vector<12x32xf32>
    %29 = arith.addf %27, %28 : vector<12x32xf32>
    %c0_13 = arith.constant 0 : index
    %c0_14 = arith.constant 0 : index
    %30 = vector.load %arg3[%c0_13, %c0_14] : memref<32x96xf32, #tpu.memory_space<vmem>>, vector<32x96xf32>
    %cst_15 = arith.constant dense<0.000000e+00> : vector<12x96xf32>
    %31 = tpu.matmul %29, %30, %cst_15 {dimension_numbers = #tpu.dot_dimension_numbers<[1], [0], [0], [1], [0, 0, 1, 1], [], []>} : vector<12x32xf32>, vector<32x96xf32>, vector<12x96xf32> -> vector<12x96xf32>
    %c0_16 = arith.constant 0 : index
    %c0_17 = arith.constant 0 : index
    %32 = vector.load %arg4[%c0_16, %c0_17] : memref<1x96xf32, #tpu.memory_space<vmem>>, vector<1x96xf32>
    %33 = vector.broadcast %32 : vector<1x96xf32> to vector<12x96xf32>
    %34 = arith.addf %31, %33 : vector<12x96xf32>
    %35 = vector.extract_strided_slice %34 {offsets = [0, 0], sizes = [12, 32], strides = [1, 1]} : vector<12x96xf32> to vector<12x32xf32>
    %36 = vector.extract_strided_slice %34 {offsets = [0, 32], sizes = [12, 32], strides = [1, 1]} : vector<12x96xf32> to vector<12x32xf32>
    %37 = vector.extract_strided_slice %34 {offsets = [0, 64], sizes = [12, 32], strides = [1, 1]} : vector<12x96xf32> to vector<12x32xf32>
    %c0_18 = arith.constant 0 : index
    %c0_19 = arith.constant 0 : index
    %38 = vector.load %arg5[%c0_18, %c0_19] : memref<32x32xf32, #tpu.memory_space<vmem>>, vector<32x32xf32>
    %cst_20 = arith.constant 0.000000e+00 : f32
    %39 = vector.broadcast %cst_20 : f32 to vector<12x32xf32>
    %40 = vector.extract_strided_slice %35 {offsets = [0, 0], sizes = [12, 8], strides = [1, 1]} : vector<12x32xf32> to vector<12x8xf32>
    %cst_21 = arith.constant 0.353553385 : f32
    %41 = vector.broadcast %cst_21 : f32 to vector<12x8xf32>
    %42 = arith.mulf %40, %41 : vector<12x8xf32>
    %43 = vector.extract_strided_slice %36 {offsets = [0, 0], sizes = [12, 8], strides = [1, 1]} : vector<12x32xf32> to vector<12x8xf32>
    %44 = vector.extract_strided_slice %37 {offsets = [0, 0], sizes = [12, 8], strides = [1, 1]} : vector<12x32xf32> to vector<12x8xf32>
    %cst_22 = arith.constant dense<0.000000e+00> : vector<12x12xf32>
    %45 = tpu.matmul %42, %43, %cst_22 {dimension_numbers = #tpu.dot_dimension_numbers<[1], [1], [0], [0], [0, 0, 1, 0], [], []>} : vector<12x8xf32>, vector<12x8xf32>, vector<12x12xf32> -> vector<12x12xf32>
    %46 = tpu.iota {dimensions = array<i32: 0>} : vector<12x12xi32>
    %47 = tpu.iota {dimensions = array<i32: 1>} : vector<12x12xi32>
    %48 = arith.cmpi sge, %46, %47 : vector<12x12xi32>
    %cst_23 = arith.constant -1.000000e+09 : f32
    %49 = vector.broadcast %cst_23 : f32 to vector<12x12xf32>
    %50 = arith.select %48, %45, %49 : vector<12x12xi1>, vector<12x12xf32>
    %cst_24 = arith.constant dense<0xFF800000> : vector<12xf32>
    %51 = vector.multi_reduction <maximumf>, %50, %cst_24 [1] : vector<12x12xf32> to vector<12xf32>
    %52 = vector.shape_cast %51 : vector<12xf32> to vector<12x1xf32>
    %53 = vector.broadcast %52 : vector<12x1xf32> to vector<12x12xf32>
    %54 = arith.subf %50, %53 : vector<12x12xf32>
    %55 = math.exp %54 : vector<12x12xf32>
    %cst_25 = arith.constant dense<0.000000e+00> : vector<12xf32>
    %56 = vector.multi_reduction <add>, %55, %cst_25 [1] : vector<12x12xf32> to vector<12xf32>
    %57 = vector.shape_cast %56 : vector<12xf32> to vector<12x1xf32>
    %58 = tpu.reciprocal %57 : vector<12x1xf32> -> vector<12x1xf32>
    %59 = vector.broadcast %58 : vector<12x1xf32> to vector<12x12xf32>
    %60 = arith.mulf %55, %59 : vector<12x12xf32>
    %cst_26 = arith.constant dense<0.000000e+00> : vector<12x8xf32>
    %61 = tpu.matmul %60, %44, %cst_26 {dimension_numbers = #tpu.dot_dimension_numbers<[1], [0], [0], [1], [0, 0, 1, 1], [], []>} : vector<12x12xf32>, vector<12x8xf32>, vector<12x8xf32> -> vector<12x8xf32>
    %62 = vector.extract_strided_slice %38 {offsets = [0, 0], sizes = [8, 32], strides = [1, 1]} : vector<32x32xf32> to vector<8x32xf32>
    %cst_27 = arith.constant dense<0.000000e+00> : vector<12x32xf32>
    %63 = tpu.matmul %61, %62, %cst_27 {dimension_numbers = #tpu.dot_dimension_numbers<[1], [0], [0], [1], [0, 0, 1, 1], [], []>} : vector<12x8xf32>, vector<8x32xf32>, vector<12x32xf32> -> vector<12x32xf32>
    %64 = arith.addf %39, %63 : vector<12x32xf32>
    %65 = vector.extract_strided_slice %35 {offsets = [0, 8], sizes = [12, 8], strides = [1, 1]} : vector<12x32xf32> to vector<12x8xf32>
    %cst_28 = arith.constant 0.353553385 : f32
    %66 = vector.broadcast %cst_28 : f32 to vector<12x8xf32>
    %67 = arith.mulf %65, %66 : vector<12x8xf32>
    %68 = vector.extract_strided_slice %36 {offsets = [0, 8], sizes = [12, 8], strides = [1, 1]} : vector<12x32xf32> to vector<12x8xf32>
    %69 = vector.extract_strided_slice %37 {offsets = [0, 8], sizes = [12, 8], strides = [1, 1]} : vector<12x32xf32> to vector<12x8xf32>
    %cst_29 = arith.constant dense<0.000000e+00> : vector<12x12xf32>
    %70 = tpu.matmul %67, %68, %cst_29 {dimension_numbers = #tpu.dot_dimension_numbers<[1], [1], [0], [0], [0, 0, 1, 0], [], []>} : vector<12x8xf32>, vector<12x8xf32>, vector<12x12xf32> -> vector<12x12xf32>
    %71 = tpu.iota {dimensions = array<i32: 0>} : vector<12x12xi32>
    %72 = tpu.iota {dimensions = array<i32: 1>} : vector<12x12xi32>
    %73 = arith.cmpi sge, %71, %72 : vector<12x12xi32>
    %cst_30 = arith.constant -1.000000e+09 : f32
    %74 = vector.broadcast %cst_30 : f32 to vector<12x12xf32>
    %75 = arith.select %73, %70, %74 : vector<12x12xi1>, vector<12x12xf32>
    %cst_31 = arith.constant dense<0xFF800000> : vector<12xf32>
    %76 = vector.multi_reduction <maximumf>, %75, %cst_31 [1] : vector<12x12xf32> to vector<12xf32>
    %77 = vector.shape_cast %76 : vector<12xf32> to vector<12x1xf32>
    %78 = vector.broadcast %77 : vector<12x1xf32> to vector<12x12xf32>
    %79 = arith.subf %75, %78 : vector<12x12xf32>
    %80 = math.exp %79 : vector<12x12xf32>
    %cst_32 = arith.constant dense<0.000000e+00> : vector<12xf32>
    %81 = vector.multi_reduction <add>, %80, %cst_32 [1] : vector<12x12xf32> to vector<12xf32>
    %82 = vector.shape_cast %81 : vector<12xf32> to vector<12x1xf32>
    %83 = tpu.reciprocal %82 : vector<12x1xf32> -> vector<12x1xf32>
    %84 = vector.broadcast %83 : vector<12x1xf32> to vector<12x12xf32>
    %85 = arith.mulf %80, %84 : vector<12x12xf32>
    %cst_33 = arith.constant dense<0.000000e+00> : vector<12x8xf32>
    %86 = tpu.matmul %85, %69, %cst_33 {dimension_numbers = #tpu.dot_dimension_numbers<[1], [0], [0], [1], [0, 0, 1, 1], [], []>} : vector<12x12xf32>, vector<12x8xf32>, vector<12x8xf32> -> vector<12x8xf32>
    %87 = vector.extract_strided_slice %38 {offsets = [8, 0], sizes = [8, 32], strides = [1, 1]} : vector<32x32xf32> to vector<8x32xf32>
    %cst_34 = arith.constant dense<0.000000e+00> : vector<12x32xf32>
    %88 = tpu.matmul %86, %87, %cst_34 {dimension_numbers = #tpu.dot_dimension_numbers<[1], [0], [0], [1], [0, 0, 1, 1], [], []>} : vector<12x8xf32>, vector<8x32xf32>, vector<12x32xf32> -> vector<12x32xf32>
    %89 = arith.addf %64, %88 : vector<12x32xf32>
    %90 = vector.extract_strided_slice %35 {offsets = [0, 16], sizes = [12, 8], strides = [1, 1]} : vector<12x32xf32> to vector<12x8xf32>
    %cst_35 = arith.constant 0.353553385 : f32
    %91 = vector.broadcast %cst_35 : f32 to vector<12x8xf32>
    %92 = arith.mulf %90, %91 : vector<12x8xf32>
    %93 = vector.extract_strided_slice %36 {offsets = [0, 16], sizes = [12, 8], strides = [1, 1]} : vector<12x32xf32> to vector<12x8xf32>
    %94 = vector.extract_strided_slice %37 {offsets = [0, 16], sizes = [12, 8], strides = [1, 1]} : vector<12x32xf32> to vector<12x8xf32>
    %cst_36 = arith.constant dense<0.000000e+00> : vector<12x12xf32>
    %95 = tpu.matmul %92, %93, %cst_36 {dimension_numbers = #tpu.dot_dimension_numbers<[1], [1], [0], [0], [0, 0, 1, 0], [], []>} : vector<12x8xf32>, vector<12x8xf32>, vector<12x12xf32> -> vector<12x12xf32>
    %96 = tpu.iota {dimensions = array<i32: 0>} : vector<12x12xi32>
    %97 = tpu.iota {dimensions = array<i32: 1>} : vector<12x12xi32>
    %98 = arith.cmpi sge, %96, %97 : vector<12x12xi32>
    %cst_37 = arith.constant -1.000000e+09 : f32
    %99 = vector.broadcast %cst_37 : f32 to vector<12x12xf32>
    %100 = arith.select %98, %95, %99 : vector<12x12xi1>, vector<12x12xf32>
    %cst_38 = arith.constant dense<0xFF800000> : vector<12xf32>
    %101 = vector.multi_reduction <maximumf>, %100, %cst_38 [1] : vector<12x12xf32> to vector<12xf32>
    %102 = vector.shape_cast %101 : vector<12xf32> to vector<12x1xf32>
    %103 = vector.broadcast %102 : vector<12x1xf32> to vector<12x12xf32>
    %104 = arith.subf %100, %103 : vector<12x12xf32>
    %105 = math.exp %104 : vector<12x12xf32>
    %cst_39 = arith.constant dense<0.000000e+00> : vector<12xf32>
    %106 = vector.multi_reduction <add>, %105, %cst_39 [1] : vector<12x12xf32> to vector<12xf32>
    %107 = vector.shape_cast %106 : vector<12xf32> to vector<12x1xf32>
    %108 = tpu.reciprocal %107 : vector<12x1xf32> -> vector<12x1xf32>
    %109 = vector.broadcast %108 : vector<12x1xf32> to vector<12x12xf32>
    %110 = arith.mulf %105, %109 : vector<12x12xf32>
    %cst_40 = arith.constant dense<0.000000e+00> : vector<12x8xf32>
    %111 = tpu.matmul %110, %94, %cst_40 {dimension_numbers = #tpu.dot_dimension_numbers<[1], [0], [0], [1], [0, 0, 1, 1], [], []>} : vector<12x12xf32>, vector<12x8xf32>, vector<12x8xf32> -> vector<12x8xf32>
    %112 = vector.extract_strided_slice %38 {offsets = [16, 0], sizes = [8, 32], strides = [1, 1]} : vector<32x32xf32> to vector<8x32xf32>
    %cst_41 = arith.constant dense<0.000000e+00> : vector<12x32xf32>
    %113 = tpu.matmul %111, %112, %cst_41 {dimension_numbers = #tpu.dot_dimension_numbers<[1], [0], [0], [1], [0, 0, 1, 1], [], []>} : vector<12x8xf32>, vector<8x32xf32>, vector<12x32xf32> -> vector<12x32xf32>
    %114 = arith.addf %89, %113 : vector<12x32xf32>
    %115 = vector.extract_strided_slice %35 {offsets = [0, 24], sizes = [12, 8], strides = [1, 1]} : vector<12x32xf32> to vector<12x8xf32>
    %cst_42 = arith.constant 0.353553385 : f32
    %116 = vector.broadcast %cst_42 : f32 to vector<12x8xf32>
    %117 = arith.mulf %115, %116 : vector<12x8xf32>
    %118 = vector.extract_strided_slice %36 {offsets = [0, 24], sizes = [12, 8], strides = [1, 1]} : vector<12x32xf32> to vector<12x8xf32>
    %119 = vector.extract_strided_slice %37 {offsets = [0, 24], sizes = [12, 8], strides = [1, 1]} : vector<12x32xf32> to vector<12x8xf32>
    %cst_43 = arith.constant dense<0.000000e+00> : vector<12x12xf32>
    %120 = tpu.matmul %117, %118, %cst_43 {dimension_numbers = #tpu.dot_dimension_numbers<[1], [1], [0], [0], [0, 0, 1, 0], [], []>} : vector<12x8xf32>, vector<12x8xf32>, vector<12x12xf32> -> vector<12x12xf32>
    %121 = tpu.iota {dimensions = array<i32: 0>} : vector<12x12xi32>
    %122 = tpu.iota {dimensions = array<i32: 1>} : vector<12x12xi32>
    %123 = arith.cmpi sge, %121, %122 : vector<12x12xi32>
    %cst_44 = arith.constant -1.000000e+09 : f32
    %124 = vector.broadcast %cst_44 : f32 to vector<12x12xf32>
    %125 = arith.select %123, %120, %124 : vector<12x12xi1>, vector<12x12xf32>
    %cst_45 = arith.constant dense<0xFF800000> : vector<12xf32>
    %126 = vector.multi_reduction <maximumf>, %125, %cst_45 [1] : vector<12x12xf32> to vector<12xf32>
    %127 = vector.shape_cast %126 : vector<12xf32> to vector<12x1xf32>
    %128 = vector.broadcast %127 : vector<12x1xf32> to vector<12x12xf32>
    %129 = arith.subf %125, %128 : vector<12x12xf32>
    %130 = math.exp %129 : vector<12x12xf32>
    %cst_46 = arith.constant dense<0.000000e+00> : vector<12xf32>
    %131 = vector.multi_reduction <add>, %130, %cst_46 [1] : vector<12x12xf32> to vector<12xf32>
    %132 = vector.shape_cast %131 : vector<12xf32> to vector<12x1xf32>
    %133 = tpu.reciprocal %132 : vector<12x1xf32> -> vector<12x1xf32>
    %134 = vector.broadcast %133 : vector<12x1xf32> to vector<12x12xf32>
    %135 = arith.mulf %130, %134 : vector<12x12xf32>
    %cst_47 = arith.constant dense<0.000000e+00> : vector<12x8xf32>
    %136 = tpu.matmul %135, %119, %cst_47 {dimension_numbers = #tpu.dot_dimension_numbers<[1], [0], [0], [1], [0, 0, 1, 1], [], []>} : vector<12x12xf32>, vector<12x8xf32>, vector<12x8xf32> -> vector<12x8xf32>
    %137 = vector.extract_strided_slice %38 {offsets = [24, 0], sizes = [8, 32], strides = [1, 1]} : vector<32x32xf32> to vector<8x32xf32>
    %cst_48 = arith.constant dense<0.000000e+00> : vector<12x32xf32>
    %138 = tpu.matmul %136, %137, %cst_48 {dimension_numbers = #tpu.dot_dimension_numbers<[1], [0], [0], [1], [0, 0, 1, 1], [], []>} : vector<12x8xf32>, vector<8x32xf32>, vector<12x32xf32> -> vector<12x32xf32>
    %139 = arith.addf %114, %138 : vector<12x32xf32>
    %c0_49 = arith.constant 0 : index
    %c0_50 = arith.constant 0 : index
    %140 = vector.load %arg6[%c0_49, %c0_50] : memref<1x32xf32, #tpu.memory_space<vmem>>, vector<1x32xf32>
    %141 = vector.broadcast %140 : vector<1x32xf32> to vector<12x32xf32>
    %142 = arith.addf %139, %141 : vector<12x32xf32>
    %143 = arith.addf %1, %142 : vector<12x32xf32>
    %144 = vector.extract_strided_slice %4 {offsets = [1, 0], sizes = [1, 32], strides = [1, 1]} : vector<4x32xf32> to vector<1x32xf32>
    %145 = vector.extract_strided_slice %5 {offsets = [1, 0], sizes = [1, 32], strides = [1, 1]} : vector<4x32xf32> to vector<1x32xf32>
    %cst_51 = arith.constant dense<0.000000e+00> : vector<12xf32>
    %146 = vector.multi_reduction <add>, %143, %cst_51 [1] : vector<12x32xf32> to vector<12xf32>
    %147 = vector.shape_cast %146 : vector<12xf32> to vector<12x1xf32>
    %cst_52 = arith.constant 3.200000e+01 : f32
    %148 = vector.broadcast %cst_52 : f32 to vector<12x1xf32>
    %149 = arith.divf %147, %148 : vector<12x1xf32>
    %150 = vector.broadcast %149 : vector<12x1xf32> to vector<12x32xf32>
    %151 = arith.subf %143, %150 : vector<12x32xf32>
    %152 = arith.mulf %151, %151 : vector<12x32xf32>
    %cst_53 = arith.constant dense<0.000000e+00> : vector<12xf32>
    %153 = vector.multi_reduction <add>, %152, %cst_53 [1] : vector<12x32xf32> to vector<12xf32>
    %154 = vector.shape_cast %153 : vector<12xf32> to vector<12x1xf32>
    %cst_54 = arith.constant 3.200000e+01 : f32
    %155 = vector.broadcast %cst_54 : f32 to vector<12x1xf32>
    %156 = arith.divf %154, %155 : vector<12x1xf32>
    %157 = vector.broadcast %149 : vector<12x1xf32> to vector<12x32xf32>
    %158 = arith.subf %143, %157 : vector<12x32xf32>
    %cst_55 = arith.constant 9.99999974E-6 : f32
    %159 = vector.broadcast %cst_55 : f32 to vector<12x1xf32>
    %160 = arith.addf %156, %159 : vector<12x1xf32>
    %161 = math.rsqrt %160 : vector<12x1xf32>
    %162 = vector.broadcast %161 : vector<12x1xf32> to vector<12x32xf32>
    %163 = arith.mulf %158, %162 : vector<12x32xf32>
    %164 = vector.broadcast %144 : vector<1x32xf32> to vector<12x32xf32>
    %165 = arith.mulf %163, %164 : vector<12x32xf32>
    %166 = vector.broadcast %145 : vector<1x32xf32> to vector<12x32xf32>
    %167 = arith.addf %165, %166 : vector<12x32xf32>
    %168 = vector.extract_strided_slice %4 {offsets = [1, 0], sizes = [1, 32], strides = [1, 1]} : vector<4x32xf32> to vector<1x32xf32>
    %169 = vector.extract_strided_slice %5 {offsets = [1, 0], sizes = [1, 32], strides = [1, 1]} : vector<4x32xf32> to vector<1x32xf32>
    %cst_56 = arith.constant dense<0.000000e+00> : vector<8xf32>
    %170 = vector.multi_reduction <add>, %3, %cst_56 [1] : vector<8x32xf32> to vector<8xf32>
    %171 = vector.shape_cast %170 : vector<8xf32> to vector<8x1xf32>
    %cst_57 = arith.constant 3.200000e+01 : f32
    %172 = vector.broadcast %cst_57 : f32 to vector<8x1xf32>
    %173 = arith.divf %171, %172 : vector<8x1xf32>
    %174 = vector.broadcast %173 : vector<8x1xf32> to vector<8x32xf32>
    %175 = arith.subf %3, %174 : vector<8x32xf32>
    %176 = arith.mulf %175, %175 : vector<8x32xf32>
    %cst_58 = arith.constant dense<0.000000e+00> : vector<8xf32>
    %177 = vector.multi_reduction <add>, %176, %cst_58 [1] : vector<8x32xf32> to vector<8xf32>
    %178 = vector.shape_cast %177 : vector<8xf32> to vector<8x1xf32>
    %cst_59 = arith.constant 3.200000e+01 : f32
    %179 = vector.broadcast %cst_59 : f32 to vector<8x1xf32>
    %180 = arith.divf %178, %179 : vector<8x1xf32>
    %181 = vector.broadcast %173 : vector<8x1xf32> to vector<8x32xf32>
    %182 = arith.subf %3, %181 : vector<8x32xf32>
    %cst_60 = arith.constant 9.99999974E-6 : f32
    %183 = vector.broadcast %cst_60 : f32 to vector<8x1xf32>
    %184 = arith.addf %180, %183 : vector<8x1xf32>
    %185 = math.rsqrt %184 : vector<8x1xf32>
    %186 = vector.broadcast %185 : vector<8x1xf32> to vector<8x32xf32>
    %187 = arith.mulf %182, %186 : vector<8x32xf32>
    %188 = vector.broadcast %168 : vector<1x32xf32> to vector<8x32xf32>
    %189 = arith.mulf %187, %188 : vector<8x32xf32>
    %190 = vector.broadcast %169 : vector<1x32xf32> to vector<8x32xf32>
    %191 = arith.addf %189, %190 : vector<8x32xf32>
    %c0_61 = arith.constant 0 : index
    %c0_62 = arith.constant 0 : index
    %192 = vector.load %arg7[%c0_61, %c0_62] : memref<32x32xf32, #tpu.memory_space<vmem>>, vector<32x32xf32>
    %cst_63 = arith.constant dense<0.000000e+00> : vector<12x32xf32>
    %193 = tpu.matmul %167, %192, %cst_63 {dimension_numbers = #tpu.dot_dimension_numbers<[1], [0], [0], [1], [0, 0, 1, 1], [], []>} : vector<12x32xf32>, vector<32x32xf32>, vector<12x32xf32> -> vector<12x32xf32>
    %c0_64 = arith.constant 0 : index
    %c0_65 = arith.constant 0 : index
    %194 = vector.load %arg8[%c0_64, %c0_65] : memref<1x32xf32, #tpu.memory_space<vmem>>, vector<1x32xf32>
    %195 = vector.broadcast %194 : vector<1x32xf32> to vector<12x32xf32>
    %196 = arith.addf %193, %195 : vector<12x32xf32>
    %c0_66 = arith.constant 0 : index
    %c0_67 = arith.constant 0 : index
    %197 = vector.load %arg9[%c0_66, %c0_67] : memref<32x64xf32, #tpu.memory_space<vmem>>, vector<32x64xf32>
    %cst_68 = arith.constant dense<0.000000e+00> : vector<8x64xf32>
    %198 = tpu.matmul %191, %197, %cst_68 {dimension_numbers = #tpu.dot_dimension_numbers<[1], [0], [0], [1], [0, 0, 1, 1], [], []>} : vector<8x32xf32>, vector<32x64xf32>, vector<8x64xf32> -> vector<8x64xf32>
    %c0_69 = arith.constant 0 : index
    %c0_70 = arith.constant 0 : index
    %199 = vector.load %arg10[%c0_69, %c0_70] : memref<1x64xf32, #tpu.memory_space<vmem>>, vector<1x64xf32>
    %200 = vector.broadcast %199 : vector<1x64xf32> to vector<8x64xf32>
    %201 = arith.addf %198, %200 : vector<8x64xf32>
    %202 = vector.extract_strided_slice %201 {offsets = [0, 0], sizes = [8, 32], strides = [1, 1]} : vector<8x64xf32> to vector<8x32xf32>
    %203 = vector.extract_strided_slice %201 {offsets = [0, 32], sizes = [8, 32], strides = [1, 1]} : vector<8x64xf32> to vector<8x32xf32>
    %c0_71 = arith.constant 0 : index
    %c0_72 = arith.constant 0 : index
    %204 = vector.load %arg11[%c0_71, %c0_72] : memref<32x32xf32, #tpu.memory_space<vmem>>, vector<32x32xf32>
    %cst_73 = arith.constant 0.000000e+00 : f32
    %205 = vector.broadcast %cst_73 : f32 to vector<12x32xf32>
    %206 = vector.extract_strided_slice %196 {offsets = [0, 0], sizes = [12, 8], strides = [1, 1]} : vector<12x32xf32> to vector<12x8xf32>
    %cst_74 = arith.constant 0.353553385 : f32
    %207 = vector.broadcast %cst_74 : f32 to vector<12x8xf32>
    %208 = arith.mulf %206, %207 : vector<12x8xf32>
    %209 = vector.extract_strided_slice %202 {offsets = [0, 0], sizes = [8, 8], strides = [1, 1]} : vector<8x32xf32> to vector<8x8xf32>
    %210 = vector.extract_strided_slice %203 {offsets = [0, 0], sizes = [8, 8], strides = [1, 1]} : vector<8x32xf32> to vector<8x8xf32>
    %cst_75 = arith.constant dense<0.000000e+00> : vector<12x8xf32>
    %211 = tpu.matmul %208, %209, %cst_75 {dimension_numbers = #tpu.dot_dimension_numbers<[1], [1], [0], [0], [0, 0, 1, 0], [], []>} : vector<12x8xf32>, vector<8x8xf32>, vector<12x8xf32> -> vector<12x8xf32>
    %cst_76 = arith.constant dense<0xFF800000> : vector<12xf32>
    %212 = vector.multi_reduction <maximumf>, %211, %cst_76 [1] : vector<12x8xf32> to vector<12xf32>
    %213 = vector.shape_cast %212 : vector<12xf32> to vector<12x1xf32>
    %214 = vector.broadcast %213 : vector<12x1xf32> to vector<12x8xf32>
    %215 = arith.subf %211, %214 : vector<12x8xf32>
    %216 = math.exp %215 : vector<12x8xf32>
    %cst_77 = arith.constant dense<0.000000e+00> : vector<12xf32>
    %217 = vector.multi_reduction <add>, %216, %cst_77 [1] : vector<12x8xf32> to vector<12xf32>
    %218 = vector.shape_cast %217 : vector<12xf32> to vector<12x1xf32>
    %219 = tpu.reciprocal %218 : vector<12x1xf32> -> vector<12x1xf32>
    %220 = vector.broadcast %219 : vector<12x1xf32> to vector<12x8xf32>
    %221 = arith.mulf %216, %220 : vector<12x8xf32>
    %cst_78 = arith.constant dense<0.000000e+00> : vector<12x8xf32>
    %222 = tpu.matmul %221, %210, %cst_78 {dimension_numbers = #tpu.dot_dimension_numbers<[1], [0], [0], [1], [0, 0, 1, 1], [], []>} : vector<12x8xf32>, vector<8x8xf32>, vector<12x8xf32> -> vector<12x8xf32>
    %223 = vector.extract_strided_slice %204 {offsets = [0, 0], sizes = [8, 32], strides = [1, 1]} : vector<32x32xf32> to vector<8x32xf32>
    %cst_79 = arith.constant dense<0.000000e+00> : vector<12x32xf32>
    %224 = tpu.matmul %222, %223, %cst_79 {dimension_numbers = #tpu.dot_dimension_numbers<[1], [0], [0], [1], [0, 0, 1, 1], [], []>} : vector<12x8xf32>, vector<8x32xf32>, vector<12x32xf32> -> vector<12x32xf32>
    %225 = arith.addf %205, %224 : vector<12x32xf32>
    %226 = vector.extract_strided_slice %196 {offsets = [0, 8], sizes = [12, 8], strides = [1, 1]} : vector<12x32xf32> to vector<12x8xf32>
    %cst_80 = arith.constant 0.353553385 : f32
    %227 = vector.broadcast %cst_80 : f32 to vector<12x8xf32>
    %228 = arith.mulf %226, %227 : vector<12x8xf32>
    %229 = vector.extract_strided_slice %202 {offsets = [0, 8], sizes = [8, 8], strides = [1, 1]} : vector<8x32xf32> to vector<8x8xf32>
    %230 = vector.extract_strided_slice %203 {offsets = [0, 8], sizes = [8, 8], strides = [1, 1]} : vector<8x32xf32> to vector<8x8xf32>
    %cst_81 = arith.constant dense<0.000000e+00> : vector<12x8xf32>
    %231 = tpu.matmul %228, %229, %cst_81 {dimension_numbers = #tpu.dot_dimension_numbers<[1], [1], [0], [0], [0, 0, 1, 0], [], []>} : vector<12x8xf32>, vector<8x8xf32>, vector<12x8xf32> -> vector<12x8xf32>
    %cst_82 = arith.constant dense<0xFF800000> : vector<12xf32>
    %232 = vector.multi_reduction <maximumf>, %231, %cst_82 [1] : vector<12x8xf32> to vector<12xf32>
    %233 = vector.shape_cast %232 : vector<12xf32> to vector<12x1xf32>
    %234 = vector.broadcast %233 : vector<12x1xf32> to vector<12x8xf32>
    %235 = arith.subf %231, %234 : vector<12x8xf32>
    %236 = math.exp %235 : vector<12x8xf32>
    %cst_83 = arith.constant dense<0.000000e+00> : vector<12xf32>
    %237 = vector.multi_reduction <add>, %236, %cst_83 [1] : vector<12x8xf32> to vector<12xf32>
    %238 = vector.shape_cast %237 : vector<12xf32> to vector<12x1xf32>
    %239 = tpu.reciprocal %238 : vector<12x1xf32> -> vector<12x1xf32>
    %240 = vector.broadcast %239 : vector<12x1xf32> to vector<12x8xf32>
    %241 = arith.mulf %236, %240 : vector<12x8xf32>
    %cst_84 = arith.constant dense<0.000000e+00> : vector<12x8xf32>
    %242 = tpu.matmul %241, %230, %cst_84 {dimension_numbers = #tpu.dot_dimension_numbers<[1], [0], [0], [1], [0, 0, 1, 1], [], []>} : vector<12x8xf32>, vector<8x8xf32>, vector<12x8xf32> -> vector<12x8xf32>
    %243 = vector.extract_strided_slice %204 {offsets = [8, 0], sizes = [8, 32], strides = [1, 1]} : vector<32x32xf32> to vector<8x32xf32>
    %cst_85 = arith.constant dense<0.000000e+00> : vector<12x32xf32>
    %244 = tpu.matmul %242, %243, %cst_85 {dimension_numbers = #tpu.dot_dimension_numbers<[1], [0], [0], [1], [0, 0, 1, 1], [], []>} : vector<12x8xf32>, vector<8x32xf32>, vector<12x32xf32> -> vector<12x32xf32>
    %245 = arith.addf %225, %244 : vector<12x32xf32>
    %246 = vector.extract_strided_slice %196 {offsets = [0, 16], sizes = [12, 8], strides = [1, 1]} : vector<12x32xf32> to vector<12x8xf32>
    %cst_86 = arith.constant 0.353553385 : f32
    %247 = vector.broadcast %cst_86 : f32 to vector<12x8xf32>
    %248 = arith.mulf %246, %247 : vector<12x8xf32>
    %249 = vector.extract_strided_slice %202 {offsets = [0, 16], sizes = [8, 8], strides = [1, 1]} : vector<8x32xf32> to vector<8x8xf32>
    %250 = vector.extract_strided_slice %203 {offsets = [0, 16], sizes = [8, 8], strides = [1, 1]} : vector<8x32xf32> to vector<8x8xf32>
    %cst_87 = arith.constant dense<0.000000e+00> : vector<12x8xf32>
    %251 = tpu.matmul %248, %249, %cst_87 {dimension_numbers = #tpu.dot_dimension_numbers<[1], [1], [0], [0], [0, 0, 1, 0], [], []>} : vector<12x8xf32>, vector<8x8xf32>, vector<12x8xf32> -> vector<12x8xf32>
    %cst_88 = arith.constant dense<0xFF800000> : vector<12xf32>
    %252 = vector.multi_reduction <maximumf>, %251, %cst_88 [1] : vector<12x8xf32> to vector<12xf32>
    %253 = vector.shape_cast %252 : vector<12xf32> to vector<12x1xf32>
    %254 = vector.broadcast %253 : vector<12x1xf32> to vector<12x8xf32>
    %255 = arith.subf %251, %254 : vector<12x8xf32>
    %256 = math.exp %255 : vector<12x8xf32>
    %cst_89 = arith.constant dense<0.000000e+00> : vector<12xf32>
    %257 = vector.multi_reduction <add>, %256, %cst_89 [1] : vector<12x8xf32> to vector<12xf32>
    %258 = vector.shape_cast %257 : vector<12xf32> to vector<12x1xf32>
    %259 = tpu.reciprocal %258 : vector<12x1xf32> -> vector<12x1xf32>
    %260 = vector.broadcast %259 : vector<12x1xf32> to vector<12x8xf32>
    %261 = arith.mulf %256, %260 : vector<12x8xf32>
    %cst_90 = arith.constant dense<0.000000e+00> : vector<12x8xf32>
    %262 = tpu.matmul %261, %250, %cst_90 {dimension_numbers = #tpu.dot_dimension_numbers<[1], [0], [0], [1], [0, 0, 1, 1], [], []>} : vector<12x8xf32>, vector<8x8xf32>, vector<12x8xf32> -> vector<12x8xf32>
    %263 = vector.extract_strided_slice %204 {offsets = [16, 0], sizes = [8, 32], strides = [1, 1]} : vector<32x32xf32> to vector<8x32xf32>
    %cst_91 = arith.constant dense<0.000000e+00> : vector<12x32xf32>
    %264 = tpu.matmul %262, %263, %cst_91 {dimension_numbers = #tpu.dot_dimension_numbers<[1], [0], [0], [1], [0, 0, 1, 1], [], []>} : vector<12x8xf32>, vector<8x32xf32>, vector<12x32xf32> -> vector<12x32xf32>
    %265 = arith.addf %245, %264 : vector<12x32xf32>
    %266 = vector.extract_strided_slice %196 {offsets = [0, 24], sizes = [12, 8], strides = [1, 1]} : vector<12x32xf32> to vector<12x8xf32>
    %cst_92 = arith.constant 0.353553385 : f32
    %267 = vector.broadcast %cst_92 : f32 to vector<12x8xf32>
    %268 = arith.mulf %266, %267 : vector<12x8xf32>
    %269 = vector.extract_strided_slice %202 {offsets = [0, 24], sizes = [8, 8], strides = [1, 1]} : vector<8x32xf32> to vector<8x8xf32>
    %270 = vector.extract_strided_slice %203 {offsets = [0, 24], sizes = [8, 8], strides = [1, 1]} : vector<8x32xf32> to vector<8x8xf32>
    %cst_93 = arith.constant dense<0.000000e+00> : vector<12x8xf32>
    %271 = tpu.matmul %268, %269, %cst_93 {dimension_numbers = #tpu.dot_dimension_numbers<[1], [1], [0], [0], [0, 0, 1, 0], [], []>} : vector<12x8xf32>, vector<8x8xf32>, vector<12x8xf32> -> vector<12x8xf32>
    %cst_94 = arith.constant dense<0xFF800000> : vector<12xf32>
    %272 = vector.multi_reduction <maximumf>, %271, %cst_94 [1] : vector<12x8xf32> to vector<12xf32>
    %273 = vector.shape_cast %272 : vector<12xf32> to vector<12x1xf32>
    %274 = vector.broadcast %273 : vector<12x1xf32> to vector<12x8xf32>
    %275 = arith.subf %271, %274 : vector<12x8xf32>
    %276 = math.exp %275 : vector<12x8xf32>
    %cst_95 = arith.constant dense<0.000000e+00> : vector<12xf32>
    %277 = vector.multi_reduction <add>, %276, %cst_95 [1] : vector<12x8xf32> to vector<12xf32>
    %278 = vector.shape_cast %277 : vector<12xf32> to vector<12x1xf32>
    %279 = tpu.reciprocal %278 : vector<12x1xf32> -> vector<12x1xf32>
    %280 = vector.broadcast %279 : vector<12x1xf32> to vector<12x8xf32>
    %281 = arith.mulf %276, %280 : vector<12x8xf32>
    %cst_96 = arith.constant dense<0.000000e+00> : vector<12x8xf32>
    %282 = tpu.matmul %281, %270, %cst_96 {dimension_numbers = #tpu.dot_dimension_numbers<[1], [0], [0], [1], [0, 0, 1, 1], [], []>} : vector<12x8xf32>, vector<8x8xf32>, vector<12x8xf32> -> vector<12x8xf32>
    %283 = vector.extract_strided_slice %204 {offsets = [24, 0], sizes = [8, 32], strides = [1, 1]} : vector<32x32xf32> to vector<8x32xf32>
    %cst_97 = arith.constant dense<0.000000e+00> : vector<12x32xf32>
    %284 = tpu.matmul %282, %283, %cst_97 {dimension_numbers = #tpu.dot_dimension_numbers<[1], [0], [0], [1], [0, 0, 1, 1], [], []>} : vector<12x8xf32>, vector<8x32xf32>, vector<12x32xf32> -> vector<12x32xf32>
    %285 = arith.addf %265, %284 : vector<12x32xf32>
    %c0_98 = arith.constant 0 : index
    %c0_99 = arith.constant 0 : index
    %286 = vector.load %arg12[%c0_98, %c0_99] : memref<1x32xf32, #tpu.memory_space<vmem>>, vector<1x32xf32>
    %287 = vector.broadcast %286 : vector<1x32xf32> to vector<12x32xf32>
    %288 = arith.addf %285, %287 : vector<12x32xf32>
    %289 = arith.addf %143, %288 : vector<12x32xf32>
    %290 = vector.extract_strided_slice %4 {offsets = [2, 0], sizes = [1, 32], strides = [1, 1]} : vector<4x32xf32> to vector<1x32xf32>
    %291 = vector.extract_strided_slice %5 {offsets = [2, 0], sizes = [1, 32], strides = [1, 1]} : vector<4x32xf32> to vector<1x32xf32>
    %cst_100 = arith.constant dense<0.000000e+00> : vector<12xf32>
    %292 = vector.multi_reduction <add>, %289, %cst_100 [1] : vector<12x32xf32> to vector<12xf32>
    %293 = vector.shape_cast %292 : vector<12xf32> to vector<12x1xf32>
    %cst_101 = arith.constant 3.200000e+01 : f32
    %294 = vector.broadcast %cst_101 : f32 to vector<12x1xf32>
    %295 = arith.divf %293, %294 : vector<12x1xf32>
    %296 = vector.broadcast %295 : vector<12x1xf32> to vector<12x32xf32>
    %297 = arith.subf %289, %296 : vector<12x32xf32>
    %298 = arith.mulf %297, %297 : vector<12x32xf32>
    %cst_102 = arith.constant dense<0.000000e+00> : vector<12xf32>
    %299 = vector.multi_reduction <add>, %298, %cst_102 [1] : vector<12x32xf32> to vector<12xf32>
    %300 = vector.shape_cast %299 : vector<12xf32> to vector<12x1xf32>
    %cst_103 = arith.constant 3.200000e+01 : f32
    %301 = vector.broadcast %cst_103 : f32 to vector<12x1xf32>
    %302 = arith.divf %300, %301 : vector<12x1xf32>
    %303 = vector.broadcast %295 : vector<12x1xf32> to vector<12x32xf32>
    %304 = arith.subf %289, %303 : vector<12x32xf32>
    %cst_104 = arith.constant 9.99999974E-6 : f32
    %305 = vector.broadcast %cst_104 : f32 to vector<12x1xf32>
    %306 = arith.addf %302, %305 : vector<12x1xf32>
    %307 = math.rsqrt %306 : vector<12x1xf32>
    %308 = vector.broadcast %307 : vector<12x1xf32> to vector<12x32xf32>
    %309 = arith.mulf %304, %308 : vector<12x32xf32>
    %310 = vector.broadcast %290 : vector<1x32xf32> to vector<12x32xf32>
    %311 = arith.mulf %309, %310 : vector<12x32xf32>
    %312 = vector.broadcast %291 : vector<1x32xf32> to vector<12x32xf32>
    %313 = arith.addf %311, %312 : vector<12x32xf32>
    %c0_105 = arith.constant 0 : index
    %c0_106 = arith.constant 0 : index
    %314 = vector.load %arg13[%c0_105, %c0_106] : memref<32x64xf32, #tpu.memory_space<vmem>>, vector<32x64xf32>
    %cst_107 = arith.constant dense<0.000000e+00> : vector<12x64xf32>
    %315 = tpu.matmul %313, %314, %cst_107 {dimension_numbers = #tpu.dot_dimension_numbers<[1], [0], [0], [1], [0, 0, 1, 1], [], []>} : vector<12x32xf32>, vector<32x64xf32>, vector<12x64xf32> -> vector<12x64xf32>
    %c0_108 = arith.constant 0 : index
    %c0_109 = arith.constant 0 : index
    %316 = vector.load %arg14[%c0_108, %c0_109] : memref<1x64xf32, #tpu.memory_space<vmem>>, vector<1x64xf32>
    %317 = vector.broadcast %316 : vector<1x64xf32> to vector<12x64xf32>
    %318 = arith.addf %315, %317 : vector<12x64xf32>
    %cst_110 = arith.constant 0.000000e+00 : f32
    %319 = vector.broadcast %cst_110 : f32 to vector<12x64xf32>
    %320 = arith.maximumf %318, %319 : vector<12x64xf32>
    %c0_111 = arith.constant 0 : index
    %c0_112 = arith.constant 0 : index
    %321 = vector.load %arg15[%c0_111, %c0_112] : memref<64x32xf32, #tpu.memory_space<vmem>>, vector<64x32xf32>
    %cst_113 = arith.constant dense<0.000000e+00> : vector<12x32xf32>
    %322 = tpu.matmul %320, %321, %cst_113 {dimension_numbers = #tpu.dot_dimension_numbers<[1], [0], [0], [1], [0, 0, 1, 1], [], []>} : vector<12x64xf32>, vector<64x32xf32>, vector<12x32xf32> -> vector<12x32xf32>
    %c0_114 = arith.constant 0 : index
    %c0_115 = arith.constant 0 : index
    %323 = vector.load %arg16[%c0_114, %c0_115] : memref<1x32xf32, #tpu.memory_space<vmem>>, vector<1x32xf32>
    %324 = vector.broadcast %323 : vector<1x32xf32> to vector<12x32xf32>
    %325 = arith.addf %322, %324 : vector<12x32xf32>
    %326 = arith.addf %313, %325 : vector<12x32xf32>
    %327 = vector.extract_strided_slice %4 {offsets = [3, 0], sizes = [1, 32], strides = [1, 1]} : vector<4x32xf32> to vector<1x32xf32>
    %328 = vector.extract_strided_slice %5 {offsets = [3, 0], sizes = [1, 32], strides = [1, 1]} : vector<4x32xf32> to vector<1x32xf32>
    %cst_116 = arith.constant dense<0.000000e+00> : vector<12xf32>
    %329 = vector.multi_reduction <add>, %326, %cst_116 [1] : vector<12x32xf32> to vector<12xf32>
    %330 = vector.shape_cast %329 : vector<12xf32> to vector<12x1xf32>
    %cst_117 = arith.constant 3.200000e+01 : f32
    %331 = vector.broadcast %cst_117 : f32 to vector<12x1xf32>
    %332 = arith.divf %330, %331 : vector<12x1xf32>
    %333 = vector.broadcast %332 : vector<12x1xf32> to vector<12x32xf32>
    %334 = arith.subf %326, %333 : vector<12x32xf32>
    %335 = arith.mulf %334, %334 : vector<12x32xf32>
    %cst_118 = arith.constant dense<0.000000e+00> : vector<12xf32>
    %336 = vector.multi_reduction <add>, %335, %cst_118 [1] : vector<12x32xf32> to vector<12xf32>
    %337 = vector.shape_cast %336 : vector<12xf32> to vector<12x1xf32>
    %cst_119 = arith.constant 3.200000e+01 : f32
    %338 = vector.broadcast %cst_119 : f32 to vector<12x1xf32>
    %339 = arith.divf %337, %338 : vector<12x1xf32>
    %340 = vector.broadcast %332 : vector<12x1xf32> to vector<12x32xf32>
    %341 = arith.subf %326, %340 : vector<12x32xf32>
    %cst_120 = arith.constant 9.99999974E-6 : f32
    %342 = vector.broadcast %cst_120 : f32 to vector<12x1xf32>
    %343 = arith.addf %339, %342 : vector<12x1xf32>
    %344 = math.rsqrt %343 : vector<12x1xf32>
    %345 = vector.broadcast %344 : vector<12x1xf32> to vector<12x32xf32>
    %346 = arith.mulf %341, %345 : vector<12x32xf32>
    %347 = vector.broadcast %327 : vector<1x32xf32> to vector<12x32xf32>
    %348 = arith.mulf %346, %347 : vector<12x32xf32>
    %349 = vector.broadcast %328 : vector<1x32xf32> to vector<12x32xf32>
    %350 = arith.addf %348, %349 : vector<12x32xf32>
    %c0_121 = arith.constant 0 : index
    %c0_122 = arith.constant 0 : index
    %c0_123 = arith.constant 0 : index
    %351 = vector.load %arg19[%c0_121, %c0_122, %c0_123] : memref<1x12x32xf32, #tpu.memory_space<vmem>>, vector<1x12x32xf32>
    %352 = vector.shape_cast %351 : vector<1x12x32xf32> to vector<12x32xf32>
    %353 = vector.shape_cast %350 : vector<12x32xf32> to vector<1x12x32xf32>
    tpu.vector_store %arg19[%c0_121, %c0_122, %c0_123], %353 {strides = array<i32>} : memref<1x12x32xf32, #tpu.memory_space<vmem>>, vector<1x12x32xf32>,
    return
  }
  func.func @transform_0(%arg0: i32) -> (i32, i32, i32) {
    %c0_i32 = arith.constant 0 : i32
    %c0_i32_0 = arith.constant 0 : i32
    %c0_i32_1 = arith.constant 0 : i32
    return %arg0, %c0_i32, %c0_i32_0 : i32, i32, i32
  }
  func.func @transform_1(%arg0: i32) -> (i32, i32, i32) {
    %c0_i32 = arith.constant 0 : i32
    %c0_i32_0 = arith.constant 0 : i32
    %c0_i32_1 = arith.constant 0 : i32
    return %arg0, %c0_i32, %c0_i32_0 : i32, i32, i32
  }
  func.func @transform_2(%arg0: i32) -> (i32, i32) {
    %c0_i32 = arith.constant 0 : i32
    %c0_i32_0 = arith.constant 0 : i32
    %c0_i32_1 = arith.constant 0 : i32
    return %c0_i32, %c0_i32_0 : i32, i32
  }
  func.func @transform_3(%arg0: i32) -> (i32, i32) {
    %c0_i32 = arith.constant 0 : i32
    %c0_i32_0 = arith.constant 0 : i32
    %c0_i32_1 = arith.constant 0 : i32
    return %c0_i32, %c0_i32_0 : i32, i32
  }
  func.func @transform_4(%arg0: i32) -> (i32, i32) {
    %c0_i32 = arith.constant 0 : i32
    %c0_i32_0 = arith.constant 0 : i32
    %c0_i32_1 = arith.constant 0 : i32
    return %c0_i32, %c0_i32_0 : i32, i32
  }
  func.func @transform_5(%arg0: i32) -> (i32, i32) {
    %c0_i32 = arith.constant 0 : i32
    %c0_i32_0 = arith.constant 0 : i32
    %c0_i32_1 = arith.constant 0 : i32
    return %c0_i32, %c0_i32_0 : i32, i32
  }
  func.func @transform_6(%arg0: i32) -> (i32, i32) {
    %c0_i32 = arith.constant 0 : i32
    %c0_i32_0 = arith.constant 0 : i32
    %c0_i32_1 = arith.constant 0 : i32
    return %c0_i32, %c0_i32_0 : i32, i32
  }
  func.func @transform_7(%arg0: i32) -> (i32, i32) {
    %c0_i32 = arith.constant 0 : i32
    %c0_i32_0 = arith.constant 0 : i32
    %c0_i32_1 = arith.constant 0 : i32
    return %c0_i32, %c0_i32_0 : i32, i32
  }
  func.func @transform_8(%arg0: i32) -> (i32, i32) {
    %c0_i32 = arith.constant 0 : i32
    %c0_i32_0 = arith.constant 0 : i32
    %c0_i32_1 = arith.constant 0 : i32
    return %c0_i32, %c0_i32_0 : i32, i32
  }
  func.func @transform_9(%arg0: i32) -> (i32, i32) {
    %c0_i32 = arith.constant 0 : i32
    %c0_i32_0 = arith.constant 0 : i32
    %c0_i32_1 = arith.constant 0 : i32
    return %c0_i32, %c0_i32_0 : i32, i32
  }
  func.func @transform_10(%arg0: i32) -> (i32, i32) {
    %c0_i32 = arith.constant 0 : i32
    %c0_i32_0 = arith.constant 0 : i32
    %c0_i32_1 = arith.constant 0 : i32
    return %c0_i32, %c0_i32_0 : i32, i32
  }
  func.func @transform_11(%arg0: i32) -> (i32, i32) {
    %c0_i32 = arith.constant 0 : i32
    %c0_i32_0 = arith.constant 0 : i32
    %c0_i32_1 = arith.constant 0 : i32
    return %c0_i32, %c0_i32_0 : i32, i32
  }
  func.func @transform_12(%arg0: i32) -> (i32, i32) {
    %c0_i32 = arith.constant 0 : i32
    %c0_i32_0 = arith.constant 0 : i32
    %c0_i32_1 = arith.constant 0 : i32
    return %c0_i32, %c0_i32_0 : i32, i32
  }
  func.func @transform_13(%arg0: i32) -> (i32, i32) {
    %c0_i32 = arith.constant 0 : i32
    %c0_i32_0 = arith.constant 0 : i32
    %c0_i32_1 = arith.constant 0 : i32
    return %c0_i32, %c0_i32_0 : i32, i32
  }
  func.func @transform_14(%arg0: i32) -> (i32, i32) {
    %c0_i32 = arith.constant 0 : i32
    %c0_i32_0 = arith.constant 0 : i32
    %c0_i32_1 = arith.constant 0 : i32
    return %c0_i32, %c0_i32_0 : i32, i32
  }
  func.func @transform_15(%arg0: i32) -> (i32, i32) {
    %c0_i32 = arith.constant 0 : i32
    %c0_i32_0 = arith.constant 0 : i32
    %c0_i32_1 = arith.constant 0 : i32
    return %c0_i32, %c0_i32_0 : i32, i32
  }
  func.func @transform_16(%arg0: i32) -> (i32, i32) {
    %c0_i32 = arith.constant 0 : i32
    %c0_i32_0 = arith.constant 0 : i32
    %c0_i32_1 = arith.constant 0 : i32
    return %c0_i32, %c0_i32_0 : i32, i32
  }
  func.func @transform_17(%arg0: i32) -> (i32, i32) {
    %c0_i32 = arith.constant 0 : i32
    %c0_i32_0 = arith.constant 0 : i32
    %c0_i32_1 = arith.constant 0 : i32
    return %c0_i32, %c0_i32_0 : i32, i32
  }
  func.func @transform_18(%arg0: i32) -> (i32, i32, i32) {
    %c0_i32 = arith.constant 0 : i32
    %c0_i32_0 = arith.constant 0 : i32
    %c0_i32_1 = arith.constant 0 : i32
    return %arg0, %c0_i32, %c0_i32_0 : i32, i32, i32
  }
}

module attributes {stable_mosaic.version = 11 : i64} {
  func.func @_linear_kernel(%arg0: i32, %arg1: memref<24x32xf32, #tpu.memory_space<vmem>>, %arg2: memref<32x8xf32, #tpu.memory_space<vmem>>, %arg3: memref<1x8xf32, #tpu.memory_space<vmem>>, %arg4: memref<24x8xf32, #tpu.memory_space<vmem>>) attributes {dimension_semantics = [#tpu.dimension_semantics<arbitrary>], iteration_bounds = array<i64: 1>, scalar_prefetch = 0 : i64, scratch_operands = 0 : i64, tpu.core_type = #tpu.core_type<tc>, window_params = [{pipeline_mode = #tpu.pipeline_mode<synchronous>, transform_indices = @transform_0, window_bounds = array<i64: 24, 32>}, {pipeline_mode = #tpu.pipeline_mode<synchronous>, transform_indices = @transform_1, window_bounds = array<i64: 32, 8>}, {pipeline_mode = #tpu.pipeline_mode<synchronous>, transform_indices = @transform_2, window_bounds = array<i64: 1, 8>}, {pipeline_mode = #tpu.pipeline_mode<synchronous>, transform_indices = @transform_3, window_bounds = array<i64: 24, 8>}]} {
    %c0 = arith.constant 0 : index
    %c0_0 = arith.constant 0 : index
    %0 = vector.load %arg1[%c0, %c0_0] : memref<24x32xf32, #tpu.memory_space<vmem>>, vector<24x32xf32>
    %c0_1 = arith.constant 0 : index
    %c0_2 = arith.constant 0 : index
    %1 = vector.load %arg2[%c0_1, %c0_2] : memref<32x8xf32, #tpu.memory_space<vmem>>, vector<32x8xf32>
    %cst = arith.constant dense<0.000000e+00> : vector<24x8xf32>
    %2 = tpu.matmul %0, %1, %cst {dimension_numbers = #tpu.dot_dimension_numbers<[1], [0], [0], [1], [0, 0, 1, 1], [], []>} : vector<24x32xf32>, vector<32x8xf32>, vector<24x8xf32> -> vector<24x8xf32>
    %c0_3 = arith.constant 0 : index
    %c0_4 = arith.constant 0 : index
    %3 = vector.load %arg3[%c0_3, %c0_4] : memref<1x8xf32, #tpu.memory_space<vmem>>, vector<1x8xf32>
    %4 = vector.broadcast %3 : vector<1x8xf32> to vector<24x8xf32>
    %5 = arith.addf %2, %4 : vector<24x8xf32>
    %c0_5 = arith.constant 0 : index
    %c0_6 = arith.constant 0 : index
    %6 = vector.load %arg4[%c0_5, %c0_6] : memref<24x8xf32, #tpu.memory_space<vmem>>, vector<24x8xf32>
    tpu.vector_store %arg4[%c0_5, %c0_6], %5 {strides = array<i32>} : memref<24x8xf32, #tpu.memory_space<vmem>>, vector<24x8xf32>,
    return
  }
  func.func @transform_0(%arg0: i32) -> (i32, i32) {
    %c0_i32 = arith.constant 0 : i32
    %c0_i32_0 = arith.constant 0 : i32
    %c0_i32_1 = arith.constant 0 : i32
    return %c0_i32, %c0_i32_0 : i32, i32
  }
  func.func @transform_1(%arg0: i32) -> (i32, i32) {
    %c0_i32 = arith.constant 0 : i32
    %c0_i32_0 = arith.constant 0 : i32
    %c0_i32_1 = arith.constant 0 : i32
    return %c0_i32, %c0_i32_0 : i32, i32
  }
  func.func @transform_2(%arg0: i32) -> (i32, i32) {
    %c0_i32 = arith.constant 0 : i32
    %c0_i32_0 = arith.constant 0 : i32
    %c0_i32_1 = arith.constant 0 : i32
    return %c0_i32, %c0_i32_0 : i32, i32
  }
  func.func @transform_3(%arg0: i32) -> (i32, i32) {
    %c0_i32 = arith.constant 0 : i32
    %c0_i32_0 = arith.constant 0 : i32
    %c0_i32_1 = arith.constant 0 : i32
    return %c0_i32, %c0_i32_0 : i32, i32
  }
}

</mosaic_0001>

<bundles_post_ra>
// kernel: transformer_forward.8
= control target key start
LH: loop header
LB: loop body
LE: loop exit
PB: predicated region body
PF: predicated region fallthrough
CT: control target
= control target key end

     0   :  { %s420_s15 = smov 0   ;;  %s449_s0 = inlined_call_operand.vmem [shape: f32[2,12,8], index: 0, kind: input, shape index: {}]   ;;  %s450_s1 = inlined_call_operand.vmem [shape: f32[8,32], index: 1, kind: input, shape index: {}]   ;;  %s451_s2 = inlined_call_operand.vmem [shape: f32[1,32], index: 2, kind: input, shape index: {}]   ;;  %s452_s3 = inlined_call_operand.vmem [shape: f32[12,32], index: 3, kind: input, shape index: {}]   ;;  %s453_s4 = inlined_call_operand.vmem [shape: f32[2,12,32], index: 4, kind: output, shape index: {}]  }
   0x1 LB: > { %s355_s16 = sadd.s32 4294967295, %s393_s15   ;;  %p359_p0 = scmp.ge.s32.totalorder %s393_s15, 1  ;;  %s393_s15 = sphi %s420_s15, %s14_s15  }
   0x2   : > { %p162_p1 = scmp.lt.s32.totalorder %s393_s15, 3 }
   0x4   : > { %p163_p2 = pnand %p359_p0, %p162_p1 }
   0x5   : > { %p188_p3 = scmp.lt.s32.totalorder (!%p163_p2), %s355_s16, 1 }
   0x6   : > { %166 = sbr.rel (%p163_p2) target bundleno = 218 (0xda), region = 36 }
   0xb   : > { %v200_v0 = vld [vmem:[%s450_s1] sm:$0xff]  ;;  %s455_s16 = smov (!%p188_p3, %s355_s16), 1  ;;  %vm208_vm0 = vcmask 64512   ;;  %v293_v6 = vld [vmem:[%s452_s3 + $0x8] sm:$0xf]  ;;  %vm298_vm1 = vcmask 257024  }
   0xc   : > { %374 = vmatprep.subr.mxu0 %v200_v0  ;;  %s369_s19 = sshll.u32 %s455_s16, 4  ;;  %v364_v3 = vld [vmem:[%s451_s2] ss:$0 sm:$0xff]  ;;  %vm296_vm2 = vcmask 261120  }
   0xd   : > { %375 = vmatpush3.msra.mxu0 %v200_v0  ;;  %s192_s22 = scalar_lea.vmem %s449_s0, %s369_s19  ;;  %s197_s29 = scalar_lea.vmem %s453_s4, %s369_s19  ;;  %v292_v10 = vld [vmem:[%s452_s3] sm:$0xff] }
   0xe   : > { %v198_v1 = vld [vmem:[%s192_s22] sm:$0xff]  ;;  %v199_v2 = vld [vmem:[%s192_s22 + $0x8] sm:$0xf] }
   0xf   : > { %376 = vmatprep.mubr.msk.f32.mxu0 %vm208_vm0, %v198_v1 }
  0x10   : > { %377 = vmatmul.mubr.msk.f32.vlgmr.msra.gmra.mxu0 %vm208_vm0, %v199_v2 }
  0xd0   : > { %v378_v4 = vpop.f32.mrf.mxu0 }
  0xd1   : > { %v287_v5 = vadd.f32 %v378_v4, %v364_v3 }
  0xd2   : > { %v281_v7 = vpop.f32.mrf.mxu0 }
  0xd3   : > { %v291_v8 = vmul.f32 5.656854, %v287_v5  ;;  %v282_v9 = vadd.f32 %v364_v3, %v281_v7 }
  0xd5   : > { %v295_v11 = vadd.f32 %v293_v6, %v291_v8  ;;  %v290_v12 = vmul.f32 5.656854, %v282_v9 }
  0xd7   : > { %299 = vst.msk [vmem:[%s197_s29 + $0x8] sm:$0xf] %vm298_vm1, %v295_v11  ;;  %v294_v13 = vadd.f32 %v292_v10, %v290_v12 }
  0xd9   : > { %297 = vst.msk [vmem:[%s197_s29] sm:$0xff] %vm296_vm2, %v294_v13 }
  0xda PF: > { %s14_s15 = sadd.s32 1, %s393_s15  }
  0xdb   : > { %p11_p4 = scmp.ge.s32.totalorder %s14_s15, 4  }
  0xdd   :  { %13 = sbr.rel (!%p11_p4) target bundleno = 1 (0x1), region = 66 }

// kernel: transformer_forward.7
= control target key start
LH: loop header
LB: loop body
LE: loop exit
PB: predicated region body
PF: predicated region fallthrough
CT: control target
= control target key end

     0   :  { %s397_s15 = smov 0   ;;  %s423_s0 = inlined_call_operand.vmem [shape: f32[2,8,8], index: 0, kind: input, shape index: {}]   ;;  %s424_s1 = inlined_call_operand.vmem [shape: f32[8,32], index: 1, kind: input, shape index: {}]   ;;  %s425_s2 = inlined_call_operand.vmem [shape: f32[1,32], index: 2, kind: input, shape index: {}]   ;;  %s426_s3 = inlined_call_operand.vmem [shape: f32[8,32], index: 3, kind: input, shape index: {}]   ;;  %s427_s4 = inlined_call_operand.vmem [shape: f32[2,8,32], index: 4, kind: output, shape index: {}]  }
   0x1 LB: > { %s334_s16 = sadd.s32 4294967295, %s368_s15   ;;  %p338_p0 = scmp.ge.s32.totalorder %s368_s15, 1  ;;  %s368_s15 = sphi %s397_s15, %s14_s15  }
   0x2   : > { %p161_p1 = scmp.lt.s32.totalorder %s368_s15, 3 }
   0x4   : > { %p162_p2 = pnand %p338_p0, %p161_p1 }
   0x5   : > { %p185_p3 = scmp.lt.s32.totalorder (!%p162_p2), %s334_s16, 1 }
   0x6   : > { %165 = sbr.rel (%p162_p2) target bundleno = 215 (0xd7), region = 36 }
   0xb   : > { %v194_v0 = vld [vmem:[%s424_s1] sm:$0xff]  ;;  %v370_v1 = vmov 0.0   ;;  %vm371_vm0 = vmmov 0   ;;  %s429_s16 = smov (!%p185_p3, %s334_s16), 1  ;;  %vm202_vm1 = vcmask 64512   ;;  %vm279_vm2 = vcmask 261120  }
   0xc   : > { %347 = vmatprep.subr.mxu0 %v370_v1  ;;  %349 = vmatprep.mubr.msk.f32.mxu0 %vm371_vm0, %v370_v1  ;;  %s339_s19 = sshll.u32 %s429_s16, 3  ;;  %v341_v3 = vld [vmem:[%s425_s2] ss:$0 sm:$0xff] }
   0xd   : > { %348 = vmatpush3.msra.mxu0 %v194_v0  ;;  %s188_s22 = scalar_lea.vmem %s423_s0, %s339_s19  ;;  %v277_v6 = vld [vmem:[%s426_s3] sm:$0xff]  ;;  %s192_s29 = scalar_lea.vmem %s427_s4, %s339_s19 }
   0xe   : > { %v193_v2 = vld [vmem:[%s188_s22] sm:$0xff] }
   0xf   : > { %350 = vmatmul.mubr.msk.f32.vlgmr.msra.gmra.mxu0 %vm202_vm1, %v193_v2 }
  0xcf   : > { %v272_v4 = vpop.f32.mrf.mxu0 }
  0xd0   : > { %v273_v5 = vadd.f32 %v341_v3, %v272_v4 }
  0xd1   : > { %v351_v7 = vpop.f32.mrf.mxu0 }
  0xd2   : > { %v276_v8 = vmul.f32 5.656854, %v273_v5 }
  0xd4   : > { %v278_v9 = vadd.f32 %v277_v6, %v276_v8 }
  0xd6   : > { %280 = vst.msk [vmem:[%s192_s29] sm:$0xff] %vm279_vm2, %v278_v9 }
  0xd7 PF: > { %s14_s15 = sadd.s32 1, %s368_s15  }
  0xd8   : > { %p11_p4 = scmp.ge.s32.totalorder %s14_s15, 4  }
  0xda   :  { %13 = sbr.rel (!%p11_p4) target bundleno = 1 (0x1), region = 66 }

// kernel: transformer_forward.9
= control target key start
LH: loop header
LB: loop body
LE: loop exit
PB: predicated region body
PF: predicated region fallthrough
CT: control target
= control target key end

     0   :  { %s2038_s17 = smov 0   ;;  %s2268_s0 = inlined_call_operand.vmem [shape: f32[2,8,32], index: 0, kind: input, shape index: {}]   ;;  %s2269_s1 = inlined_call_operand.vmem [shape: f32[32,96], index: 1, kind: input, shape index: {}]   ;;  %s2270_s2 = inlined_call_operand.vmem [shape: f32[1,96], index: 2, kind: input, shape index: {}]   ;;  %s2271_s3 = inlined_call_operand.vmem [shape: f32[32,32], index: 3, kind: input, shape index: {}]   ;;  %s2272_s4 = inlined_call_operand.vmem [shape: f32[1,32], index: 4, kind: input, shape index: {}]   ;;  %s2273_s5 = inlined_call_operand.vmem [shape: f32[32,64], index: 5, kind: input, shape index: {}]   ;;  %s2274_s6 = inlined_call_operand.vmem [shape: f32[1,64], index: 6, kind: input, shape index: {}]   ;;  %s2275_s7 = inlined_call_operand.vmem [shape: f32[64,32], index: 7, kind: input, shape index: {}]   ;;  %s2276_s8 = inlined_call_operand.vmem [shape: f32[1,32], index: 8, kind: input, shape index: {}]   ;;  %s2277_s9 = inlined_call_operand.vmem [shape: f32[3,32], index: 9, kind: input, shape index: {}]   ;;  %s2278_s10 = inlined_call_operand.vmem [shape: f32[3,32], index: 10, kind: input, shape index: {}]   ;;  %s2279_s11 = inlined_call_operand.vmem [shape: f32[2,8,32], index: 11, kind: output, shape index: {}]  }
   0x1 LB: > { %s1738_s18 = sadd.s32 4294967295, %s1963_s17   ;;  %p1742_p0 = scmp.ge.s32.totalorder %s1963_s17, 1  ;;  %s1963_s17 = sphi %s2038_s17, %s21_s17  }
   0x2   : > { %p336_p1 = scmp.lt.s32.totalorder %s1963_s17, 3 }
   0x4   : > { %p337_p2 = pnand %p1742_p0, %p336_p1 }
   0x5   : > { %p374_p3 = scmp.lt.s32.totalorder (!%p337_p2), %s1738_s18, 1  ;;  %s1967_s21 = smov (!%p337_p2), 96  }
   0x6   : > { %340 = sbr.rel (%p337_p2) target bundleno = 3759 (0xeaf), region = 64  ;;  %s1969_s23 = smov (!%p337_p2), 88  }
   0x7   : > { %s1970_s24 = smov (!%p337_p2), 56   ;;  %s1971_s25 = smov (!%p337_p2), 64  }
   0x8   : > { %s1972_s26 = smov (!%p337_p2), 80   ;;  %s1973_s27 = smov (!%p337_p2), 112  }
   0x9   : > { %s1974_s13 = smov (!%p337_p2), 48   ;;  %s1975_s14 = smov (!%p337_p2), 104  }
   0xa   : > { %s1976_s15 = smov (!%p337_p2), 72  }
   0xb   : > { %s2281_s18 = smov (!%p374_p3, %s1738_s18), 1  ;;  %vm385_vm0 = vcmask 261120   ;;  %v413_v7 = vld [vmem:[%s2269_s1 + $0x18] sm:$0xff]  ;;  %v1965_v8 = vmov 0.0   ;;  %v412_v9 = vld [vmem:[%s2269_s1 + $0x10] sm:$0xff]  ;;  %vm1966_vm1 = vmmov 0   ;;  %v400_v15 = vlaneseq }
   0xc   : > { %s1743_s19 = sshll.u32 %s2281_s18, 3  ;;  %1813 = vmatprep.subr.mxu0 %v1965_v8  ;;  %1821 = vmatprep.mubr.msk.f32.mxu0 %vm1966_vm1, %v1965_v8  ;;  %v411_v10 = vld [vmem:[%s2269_s1 + $0x8] sm:$0xff]  ;;  %v410_v11 = vld [vmem:[%s2269_s1] sm:$0xff]  ;;  %vm502_vm2 = vcmask 64512   ;;  %vm1586_vm3 = vcmask 523264  }
   0xd   : > { %s377_s22 = scalar_lea.vmem %s2268_s0, %s1743_s19  ;;  %1814 = vmatpush3.msra.mxu0 %v413_v7  ;;  %1829 = vmatprep.subr.mxu1 %v1965_v8  ;;  %v2082_v16 = vshrl.u32 %v400_v15, 7  ;;  %v2088_v18 = vld [vmem:[%s2277_s9] sm:$0x7]  ;;  %v495_v59 = vld [vmem:[%s2271_s3 + $0x8] sm:$0xff] }
   0xe   : > { %v2054_v0 = vld [vmem:[%s377_s22] sm:$0xff]  ;;  %1815 = vmatprep.subr.mxu0 %v1965_v8  ;;  %1831 = vmatprep.mubr.msk.f32.mxu1 %vm1966_vm1, %v1965_v8  ;;  %s1968_s22 = smov 120  }
   0xf   : > { %v386_v1 = vsel %vm385_vm0, %v2054_v0, 0.0  ;;  %1816 = vmatpush3.msra.mxu0 %v412_v9  ;;  %v402_v17 = vsub.s32 0, %v2082_v16  ;;  %v2093_v19 = vld [vmem:[%s2278_s10] sm:$0x7] }
  0x10   : > { %387 = vadd.xlane.f32.xlu0 %v386_v1  ;;  %1817 = vmatprep.subr.mxu0 %v1965_v8  ;;  %v1745_v26 = vld [vmem:[%s2270_s2] ss:$0 sm:$0xff] }
  0x11   : > { %1818 = vmatpush3.msra.mxu0 %v411_v10  ;;  %v403_v20 = vrot.slane %v2088_v18, %v402_v17  ;;  %v408_v23 = vrot.slane %v2093_v19, %v402_v17  ;;  %v494_v58 = vld [vmem:[%s2271_s3] sm:$0xff] }
  0x12   : > { %1819 = vmatprep.subr.mxu0 %v1965_v8 }
  0x13   : > { %1820 = vmatpush3.msra.mxu0 %v410_v11 }
  0x14   : > { %1824 = vmatprep.subr.mxu0 %v1965_v8 }
  0x99   : > { %v388_v2 = vpop.xlane.xlu0 %387 }
  0x9a   : > { %v390_v3 = vmul.f32 0.03125, %v388_v2 }
  0x9c   : > { %v391_v4 = vsub.f32 %v2054_v0, %v390_v3 }
  0x9e   : > { %v392_v5 = vmul.f32 %v391_v4, %v391_v4 }
  0xa0   : > { %v393_v6 = vsel %vm385_vm0, %v392_v5, 0.0 }
  0xa1   : > { %394 = vadd.xlane.f32.xlu0 %v393_v6 }
 0x12a   : > { %v395_v12 = vpop.xlane.xlu0 %394 }
 0x12b   : > { %v396_v13 = vmul.f32 0.03125, %v395_v12 }
 0x12d   : > { %v397_v14 = vadd.f32 1e-05, %v396_v13 }
 0x12f   : > { %1935 = vrsqrt.f32 %v397_v14 }
 0x13c   : > { %v1936_v21 = vpop.eup %1935 }
 0x13d   : > { %v399_v22 = vmul.f32 %v1936_v21, %v391_v4 }
 0x13f   : > { %v404_v24 = vmul.f32 %v403_v20, %v399_v22 }
 0x141   : > { %v409_v25 = vadd.f32 %v408_v23, %v404_v24 }
 0x143   : > { %1822 = vmatmul.mubr.msk.f32.vlgmr.msra.gmra.mxu0 %vm385_vm0, %v409_v25 }
 0x144   : > { %1826 = vmatprep.mubr.msk.f32.mxu0 %vm1966_vm1, %v1965_v8 }
 0x203   : > { %v490_v27 = vpop.f32.mrf.mxu0 }
 0x204   : > { %v2103_v28 = vadd.f32 %v1745_v26, %v490_v27  ;;  %v496_v26 = vld [vmem:[%s2271_s3 + $0x10] sm:$0xff] }
 0x205   : > { %v1823_v29 = vpop.f32.mrf.mxu0 }
 0x206   : > { %500 = vrot.lane.b32.xlu1 %v2103_v28, %s1967_s21  ;;  %v2107_v30 = vmul.f32 0.35355338, %v2103_v28  ;;  %s1977_s21 = smov 40  }
 0x208   : > { %665 = vrot.lane.b32.xlu0 %v2107_v30, %s1968_s22 }
 0x20a   : > { %667 = vrot.lane.b32.xlu1 %v2103_v28, %s1969_s23 }
 0x278   : > { %v501_v31 = vpop.permute.xlu1 %500 }
 0x279   : > { %1825 = vmatpush3.xpose.msk.msra.mxu0 %vm502_vm2, %v501_v31 }
 0x27a   : > { %1834 = vmatprep.subr.mxu0 %v1965_v8  ;;  %v666_v33 = vpop.permute.xlu0 %665 }
 0x27c   : > { %v668_v32 = vpop.permute.xlu1 %667  ;;  %1827 = vmatmul.mubr.msk.f32.vlgmr.msra.gmra.mxu0 %vm502_vm2, %v2107_v30 }
 0x27d   : > { %1835 = vmatpush3.xpose.msk.msra.mxu0 %vm502_vm2, %v668_v32  ;;  %1836 = vmatprep.mubr.msk.f32.mxu0 %vm1966_vm1, %v1965_v8 }
 0x27e   : > { %1844 = vmatprep.subr.mxu0 %v1965_v8 }
 0x280   : > { %1837 = vmatmul.mubr.msk.f32.vlgmr.msra.gmra.mxu0 %vm502_vm2, %v666_v33 }
 0x281   : > { %1846 = vmatprep.mubr.msk.f32.mxu0 %vm1966_vm1, %v1965_v8  ;;  %1845 = vmatpush3.msra.mxu0 %v495_v59  ;;  %v1489_v59 = vld [vmem:[%s2273_s5 + $0x18] sm:$0xff] }
 0x282   : > { %1854 = vmatprep.subr.mxu0 %v1965_v8 }
 0x33c   : > { %v574_v34 = vpop.f32.mrf.mxu0 }
 0x33d   : > { %v578_v35 = vsel %vm502_vm2, %v574_v34, -inf }
 0x33e   : > { %579 = vmax.xlane.f32.xlu1 %v578_v35  ;;  %v1828_v36 = vpop.f32.mrf.mxu0 }
 0x340   : > { %v739_v37 = vpop.f32.mrf.mxu0 }
 0x341   : > { %v743_v38 = vsel %vm502_vm2, %v739_v37, -inf }
 0x342   : > { %744 = vmax.xlane.f32.xlu0 %v743_v38  ;;  %v1838_v39 = vpop.f32.mrf.mxu0  ;;  %v497_v38 = vld [vmem:[%s2271_s3 + $0x18] sm:$0xff] }
 0x358   : > { %754 = vrot.lane.b32.xlu0 %v2103_v28, %s1970_s24  ;;  %s381_s24 = scalar_lea.vmem %s2279_s11, %s1743_s19 }
 0x3c7   : > { %v580_v40 = vpop.xlane.xlu1 %579 }
 0x3c8   : > { %v581_v41 = vsub.f32 %v574_v34, %v580_v40 }
 0x3ca   : > { %v582_v42 = vmul.f32 1.442695, %v581_v41 }
 0x3cb   : > { %v745_v43 = vpop.xlane.xlu0 %744 }
 0x3cc   : > { %1937 = vpow2.f32 %v582_v42  ;;  %v746_v44 = vsub.f32 %v739_v37, %v745_v43 }
 0x3ce   : > { %v747_v45 = vmul.f32 1.442695, %v746_v44 }
 0x3cf   : > { %v755_v55 = vpop.permute.xlu0 %754 }
 0x3d0   : > { %1939 = vpow2.f32 %v747_v45 }
 0x3d9   : > { %v1938_v46 = vpop.eup %1937 }
 0x3da   : > { %v584_v47 = vsel %vm502_vm2, %v1938_v46, 0.0 }
 0x3db   : > { %585 = vadd.xlane.f32.xlu1 %v584_v47 }
 0x3dd   : > { %v1940_v48 = vpop.eup %1939 }
 0x3de   : > { %v749_v49 = vsel %vm502_vm2, %v1940_v48, 0.0 }
 0x3df   : > { %750 = vadd.xlane.f32.xlu1 %v749_v49 }
 0x3f0   : > { %589 = vrot.lane.b32.xlu1 %v2103_v28, %s1971_s25 }
 0x3f4   : > { %978 = vrot.lane.b32.xlu1 %v2103_v28, %s1972_s26 }
 0x3f8   : > { %976 = vrot.lane.b32.xlu1 %v2107_v30, %s1973_s27 }
 0x464   : > { %v586_v50 = vpop.xlane.xlu1 %585 }
 0x465   : > { %1941 = vrcp.f32 %v586_v50 }
 0x468   : > { %v751_v51 = vpop.xlane.xlu1 %750 }
 0x469   : > { %1943 = vrcp.f32 %v751_v51 }
 0x46c   : > { %v590_v52 = vpop.permute.xlu1 %589 }
 0x46d   : > { %1830 = vmatpush3.msra.mxu1 %v590_v52 }
 0x46e   : > { %1839 = vmatprep.subr.mxu1 %v1965_v8 }
 0x470   : > { %v979_v61 = vpop.permute.xlu1 %978 }
 0x472   : > { %v1942_v53 = vpop.eup %1941 }
 0x473   : > { %v588_v54 = vmul.f32 %v1942_v53, %v1938_v46 }
 0x474   : > { %v977_v2 = vpop.permute.xlu1 %976 }
 0x475   : > { %1832 = vmatmul.mubr.msk.f32.vlgmr.msra.gmra.mxu1 %vm502_vm2, %v588_v54 }
 0x476   : > { %v1944_v56 = vpop.eup %1943  ;;  %1840 = vmatpush3.msra.mxu1 %v755_v55  ;;  %1841 = vmatprep.mubr.msk.f32.mxu1 %vm1966_vm1, %v1965_v8 }
 0x477   : > { %v753_v57 = vmul.f32 %v1944_v56, %v1940_v48  ;;  %1849 = vmatprep.subr.mxu1 %v1965_v8  ;;  %v1763_v48 = vld [vmem:[%s2272_s4] ss:$0 sm:$0xff] }
 0x479   : > { %1842 = vmatmul.mubr.msk.f32.vlgmr.msra.gmra.mxu1 %vm502_vm2, %v753_v57 }
 0x47a   : > { %1851 = vmatprep.mubr.msk.f32.mxu1 %vm1966_vm1, %v1965_v8  ;;  %1850 = vmatpush3.msra.mxu1 %v494_v58 }
 0x47b   : > { %1859 = vmatprep.subr.mxu1 %v1965_v8 }
 0x535   : > { %v661_v60 = vpop.f32.mrf.mxu1 }
 0x536   : > { %1852 = vmatmul.mubr.msk.f32.vlgmr.msra.gmra.mxu1 %vm502_vm2, %v661_v60  ;;  %v1488_v60 = vld [vmem:[%s2273_s5 + $0x10] sm:$0xff] }
 0x537   : > { %v1833_v62 = vpop.f32.mrf.mxu1  ;;  %1861 = vmatprep.mubr.msk.f32.mxu1 %vm1966_vm1, %v1965_v8 }
 0x538   : > { %v1578_v62 = vld [vmem:[%s2275_s7 + $0x38] sm:$0xff] }
 0x539   : > { %v826_v63 = vpop.f32.mrf.mxu1 }
 0x53a   : > { %1847 = vmatmul.mubr.msk.f32.vlgmr.msra.gmra.mxu0 %vm502_vm2, %v826_v63  ;;  %v1577_v63 = vld [vmem:[%s2275_s7 + $0x30] sm:$0xff] }
 0x53b   : > { %1855 = vmatpush3.xpose.msk.msra.mxu0 %vm502_vm2, %v979_v61  ;;  %v1843_v1 = vpop.f32.mrf.mxu1  ;;  %1856 = vmatprep.mubr.msk.f32.mxu0 %vm1966_vm1, %v1965_v8  ;;  %v1486_v61 = vld [vmem:[%s2273_s5] sm:$0xff] }
 0x53c   : > { %1864 = vmatprep.subr.mxu0 %v1965_v8  ;;  %v1576_v1 = vld [vmem:[%s2275_s7 + $0x28] sm:$0xff] }
 0x53e   : > { %1857 = vmatmul.mubr.msk.f32.vlgmr.msra.gmra.mxu0 %vm502_vm2, %v977_v2  ;;  %v1575_v2 = vld [vmem:[%s2275_s7 + $0x20] sm:$0xff] }
 0x53f   : > { %1866 = vmatprep.mubr.msk.f32.mxu0 %vm1966_vm1, %v1965_v8  ;;  %1865 = vmatpush3.msra.mxu0 %v496_v26  ;;  %v1766_v26 = vld [vmem:[%s2276_s8] ss:$0 sm:$0xff] }
 0x540   : > { %1874 = vmatprep.subr.mxu0 %v1965_v8 }
 0x5f6   : > { %v972_v3 = vpop.f32.mrf.mxu1 }
 0x5f8   : > { %v1853_v4 = vpop.f32.mrf.mxu1 }
 0x5fa   : > { %v899_v5 = vpop.f32.mrf.mxu0 }
 0x5fb   : > { %v973_v6 = vadd.f32 %v972_v3, %v899_v5  ;;  %v1574_v3 = vld [vmem:[%s2275_s7 + $0x18] sm:$0xff] }
 0x5fc   : > { %v1848_v7 = vpop.f32.mrf.mxu0 }
 0x5fd   : > { %v1478_v7 = vsub.s32 1, %v2082_v16 }
 0x5fe   : > { %v1050_v9 = vpop.f32.mrf.mxu0 }
 0x5ff   : > { %v1054_v10 = vsel %vm502_vm2, %v1050_v9, -inf }
 0x600   : > { %1055 = vmax.xlane.f32.xlu1 %v1054_v10  ;;  %v1858_v11 = vpop.f32.mrf.mxu0 }
 0x611   : > { %1065 = vrot.lane.b32.xlu1 %v2103_v28, %s1974_s13 }
 0x615   : > { %1215 = vrot.lane.b32.xlu1 %v2107_v30, %s1975_s14 }
 0x689   : > { %v1056_v12 = vpop.xlane.xlu1 %1055 }
 0x68a   : > { %v1057_v13 = vsub.f32 %v1050_v9, %v1056_v12  ;;  %v1479_v9 = vrot.slane %v2088_v18, %v1478_v7  ;;  %v1484_v12 = vrot.slane %v2093_v19, %v1478_v7 }
 0x68c   : > { %v1058_v14 = vmul.f32 1.442695, %v1057_v13 }
 0x68d   : > { %v1066_v15 = vpop.permute.xlu1 %1065 }
 0x68e   : > { %1945 = vpow2.f32 %v1058_v14  ;;  %1860 = vmatpush3.msra.mxu1 %v1066_v15  ;;  %v1573_v15 = vld [vmem:[%s2275_s7 + $0x10] sm:$0xff] }
 0x68f   : > { %1869 = vmatprep.subr.mxu1 %v1965_v8 }
 0x691   : > { %v1216_v25 = vpop.permute.xlu1 %1215 }
 0x69b   : > { %v1946_v17 = vpop.eup %1945 }
 0x69c   : > { %v1060_v20 = vsel %vm502_vm2, %v1946_v17, 0.0 }
 0x69d   : > { %1061 = vadd.xlane.f32.xlu0 %v1060_v20  ;;  %v1571_v20 = vld [vmem:[%s2275_s7] sm:$0xff] }
 0x6b3   : > { %1217 = vrot.lane.b32.xlu0 %v2103_v28, %s1976_s15 }
 0x726   : > { %v1062_v21 = vpop.xlane.xlu0 %1061 }
 0x727   : > { %1947 = vrcp.f32 %v1062_v21  ;;  %v1764_v21 = vld [vmem:[%s2274_s6] ss:$0 sm:$0xff] }
 0x72a   : > { %v1218_v24 = vpop.permute.xlu0 %1217 }
 0x734   : > { %v1948_v22 = vpop.eup %1947 }
 0x735   : > { %v1064_v23 = vmul.f32 %v1948_v22, %v1946_v17  ;;  %v1572_v17 = vld [vmem:[%s2275_s7 + $0x8] sm:$0xff] }
 0x737   : > { %1862 = vmatmul.mubr.msk.f32.vlgmr.msra.gmra.mxu1 %vm502_vm2, %v1064_v23 }
 0x738   : > { %1870 = vmatpush3.xpose.msk.msra.mxu1 %vm502_vm2, %v1218_v24  ;;  %1871 = vmatprep.mubr.msk.f32.mxu1 %vm1966_vm1, %v1965_v8 }
 0x739   : > { %1879 = vmatprep.subr.mxu1 %v1965_v8 }
 0x73b   : > { %1872 = vmatmul.mubr.msk.f32.vlgmr.msra.gmra.mxu1 %vm502_vm2, %v1216_v25 }
 0x73c   : > { %1881 = vmatprep.mubr.msk.f32.mxu1 %vm1966_vm1, %v1965_v8  ;;  %1880 = vmatpush3.msra.mxu1 %v497_v38 }
 0x73d   : > { %1895 = vmatprep.subr.mxu1 %v1965_v8 }
 0x7f7   : > { %v1137_v27 = vpop.f32.mrf.mxu1 }
 0x7f8   : > { %1867 = vmatmul.mubr.msk.f32.vlgmr.msra.gmra.mxu0 %vm502_vm2, %v1137_v27 }
 0x7f9   : > { %v1863_v29 = vpop.f32.mrf.mxu1  ;;  %1876 = vmatprep.mubr.msk.f32.mxu0 %vm1966_vm1, %v1965_v8 }
 0x7fb   : > { %v1289_v30 = vpop.f32.mrf.mxu1 }
 0x7fc   : > { %v1293_v31 = vsel %vm502_vm2, %v1289_v30, -inf }
 0x7fd   : > { %1294 = vmax.xlane.f32.xlu1 %v1293_v31  ;;  %v1873_v32 = vpop.f32.mrf.mxu1 }
 0x886   : > { %v1295_v33 = vpop.xlane.xlu1 %1294 }
 0x887   : > { %v1296_v34 = vsub.f32 %v1289_v30, %v1295_v33 }
 0x889   : > { %v1297_v35 = vmul.f32 1.442695, %v1296_v34 }
 0x88b   : > { %1949 = vpow2.f32 %v1297_v35 }
 0x898   : > { %v1950_v36 = vpop.eup %1949 }
 0x899   : > { %v1299_v37 = vsel %vm502_vm2, %v1950_v36, 0.0 }
 0x89a   : > { %1300 = vadd.xlane.f32.xlu0 %v1299_v37 }
 0x8b0   : > { %1304 = vrot.lane.b32.xlu0 %v2103_v28, %s1977_s21 }
 0x8b8   : > { %v1210_v39 = vpop.f32.mrf.mxu0 }
 0x8b9   : > { %v1214_v40 = vadd.f32 %v1210_v39, %v973_v6 }
 0x8ba   : > { %v1868_v41 = vpop.f32.mrf.mxu0 }
 0x923   : > { %v1301_v42 = vpop.xlane.xlu0 %1300 }
 0x924   : > { %1951 = vrcp.f32 %v1301_v42 }
 0x927   : > { %v1305_v43 = vpop.permute.xlu0 %1304 }
 0x928   : > { %1875 = vmatpush3.msra.mxu0 %v1305_v43 }
 0x929   : > { %1884 = vmatprep.subr.mxu0 %v1965_v8 }
 0x931   : > { %v1952_v44 = vpop.eup %1951 }
 0x932   : > { %v1303_v45 = vmul.f32 %v1952_v44, %v1950_v36 }
 0x934   : > { %1877 = vmatmul.mubr.msk.f32.vlgmr.msra.gmra.mxu0 %vm502_vm2, %v1303_v45 }
 0x935   : > { %1892 = vmatprep.mubr.msk.f32.mxu0 %vm1966_vm1, %v1965_v8  ;;  %1885 = vmatpush3.msra.mxu0 %v1489_v59 }
 0x936   : > { %1886 = vmatprep.subr.mxu0 %v1965_v8 }
 0x937   : > { %1887 = vmatpush3.msra.mxu0 %v1488_v60 }
 0x938   : > { %1888 = vmatprep.subr.mxu0 %v1965_v8 }
 0x9f4   : > { %v1376_v28 = vpop.f32.mrf.mxu0 }
 0x9f5   : > { %1882 = vmatmul.mubr.msk.f32.vlgmr.msra.gmra.mxu1 %vm502_vm2, %v1376_v28 }
 0x9f6   : > { %v1878_v46 = vpop.f32.mrf.mxu0  ;;  %1911 = vmatprep.mubr.msk.f32.mxu1 %vm1966_vm1, %v1965_v8  ;;  %1896 = vmatpush3.msra.mxu1 %v1578_v62 }
 0x9f7   : > { %1897 = vmatprep.subr.mxu1 %v1965_v8 }
 0x9f8   : > { %1898 = vmatpush3.msra.mxu1 %v1577_v63 }
 0x9f9   : > { %1899 = vmatprep.subr.mxu1 %v1965_v8 }
 0x9fa   : > { %1900 = vmatpush3.msra.mxu1 %v1576_v1 }
 0x9fb   : > { %1901 = vmatprep.subr.mxu1 %v1965_v8 }
 0x9fc   : > { %1902 = vmatpush3.msra.mxu1 %v1575_v2 }
 0x9fd   : > { %1903 = vmatprep.subr.mxu1 %v1965_v8 }
 0x9fe   : > { %1904 = vmatpush3.msra.mxu1 %v1574_v3 }
 0x9ff   : > { %1905 = vmatprep.subr.mxu1 %v1965_v8 }
 0xa00   : > { %1906 = vmatpush3.msra.mxu1 %v1573_v15 }
 0xa01   : > { %1907 = vmatprep.subr.mxu1 %v1965_v8 }
 0xa02   : > { %1908 = vmatpush3.msra.mxu1 %v1572_v17 }
 0xa03   : > { %1909 = vmatprep.subr.mxu1 %v1965_v8 }
 0xa04   : > { %1910 = vmatpush3.msra.mxu1 %v1571_v20 }
 0xab5   : > { %v1449_v47 = vpop.f32.mrf.mxu1 }
 0xab6   : > { %v1453_v49 = vadd.f32 %v1449_v47, %v1214_v40  ;;  %v1676_v40 = vsub.s32 2, %v2082_v16 }
 0xab7   : > { %v1883_v50 = vpop.f32.mrf.mxu1 }
 0xab8   : > { %v1461_v51 = vadd.f32 %v1763_v48, %v1453_v49  ;;  %v1677_v41 = vrot.slane %v2088_v18, %v1676_v40  ;;  %v1682_v43 = vrot.slane %v2093_v19, %v1676_v40 }
 0xaba   : > { %v1462_v52 = vadd.f32 %v1461_v51, %v2054_v0  ;;  %v1487_v0 = vld [vmem:[%s2273_s5 + $0x8] sm:$0xff] }
 0xabb   : > { %1889 = vmatpush3.msra.mxu0 %v1487_v0 }
 0xabc   : > { %v1463_v53 = vsel %vm385_vm0, %v1462_v52, 0.0  ;;  %1890 = vmatprep.subr.mxu0 %v1965_v8 }
 0xabd   : > { %1464 = vadd.xlane.f32.xlu1 %v1463_v53  ;;  %1891 = vmatpush3.msra.mxu0 %v1486_v61 }
 0xb46   : > { %v1465_v54 = vpop.xlane.xlu1 %1464 }
 0xb47   : > { %v1466_v55 = vmul.f32 0.03125, %v1465_v54 }
 0xb49   : > { %v1467_v56 = vsub.f32 %v1462_v52, %v1466_v55 }
 0xb4b   : > { %v1468_v57 = vmul.f32 %v1467_v56, %v1467_v56 }
 0xb4d   : > { %v1469_v58 = vsel %vm385_vm0, %v1468_v57, 0.0 }
 0xb4e   : > { %1470 = vadd.xlane.f32.xlu1 %v1469_v58 }
 0xbd7   : > { %v1471_v4 = vpop.xlane.xlu1 %1470 }
 0xbd8   : > { %v1472_v5 = vmul.f32 0.03125, %v1471_v4 }
 0xbda   : > { %v1473_v6 = vadd.f32 1e-05, %v1472_v5 }
 0xbdc   : > { %1953 = vrsqrt.f32 %v1473_v6 }
 0xbe9   : > { %v1954_v10 = vpop.eup %1953 }
 0xbea   : > { %v1475_v11 = vmul.f32 %v1954_v10, %v1467_v56 }
 0xbec   : > { %v1480_v13 = vmul.f32 %v1479_v9, %v1475_v11 }
 0xbee   : > { %v1485_v14 = vadd.f32 %v1484_v12, %v1480_v13 }
 0xbf0   : > { %1893 = vmatmul.mubr.msk.f32.vlgmr.msra.gmra.mxu0 %vm385_vm0, %v1485_v14 }
 0xcb0   : > { %v1566_v22 = vpop.f32.mrf.mxu0 }
 0xcb1   : > { %v1567_v23 = vadd.f32 %v1764_v21, %v1566_v22 }
 0xcb2   : > { %v1894_v24 = vpop.f32.mrf.mxu0 }
 0xcb3   : > { %v1570_v25 = vmax.f32 %v1567_v23, 0.0 }
 0xcb5   : > { %1912 = vmatmul.mubr.msk.f32.vlgmr.msra.gmra.mxu1 %vm1586_vm3, %v1570_v25 }
 0xd75   : > { %v1656_v27 = vpop.f32.mrf.mxu1 }
 0xd76   : > { %v1657_v29 = vadd.f32 %v1766_v26, %v1656_v27 }
 0xd77   : > { %v1913_v30 = vpop.f32.mrf.mxu1 }
 0xd78   : > { %v1660_v31 = vadd.f32 %v1657_v29, %v1485_v14 }
 0xd7a   : > { %v1661_v8 = vsel %vm385_vm0, %v1660_v31, 0.0 }
 0xd7b   : > { %1662 = vadd.xlane.f32.xlu1 %v1661_v8 }
 0xe04   : > { %v1663_v32 = vpop.xlane.xlu1 %1662 }
 0xe05   : > { %v1664_v33 = vmul.f32 0.03125, %v1663_v32 }
 0xe07   : > { %v1665_v34 = vsub.f32 %v1660_v31, %v1664_v33 }
 0xe09   : > { %v1666_v35 = vmul.f32 %v1665_v34, %v1665_v34 }
 0xe0b   : > { %v1667_v36 = vsel %vm385_vm0, %v1666_v35, 0.0 }
 0xe0c   : > { %1668 = vadd.xlane.f32.xlu1 %v1667_v36 }
 0xe95   : > { %v1669_v37 = vpop.xlane.xlu1 %1668 }
 0xe96   : > { %v1670_v38 = vmul.f32 0.03125, %v1669_v37 }
 0xe98   : > { %v1671_v39 = vadd.f32 1e-05, %v1670_v38 }
 0xe9a   : > { %1955 = vrsqrt.f32 %v1671_v39 }
 0xea7   : > { %v1956_v42 = vpop.eup %1955 }
 0xea8   : > { %v1673_v44 = vmul.f32 %v1956_v42, %v1665_v34 }
 0xeaa   : > { %v1678_v45 = vmul.f32 %v1677_v41, %v1673_v44 }
 0xeac   : > { %v1683_v28 = vadd.f32 %v1682_v43, %v1678_v45 }
 0xeae   : > { %1684 = vst.msk [vmem:[%s381_s24] sm:$0xff] %vm385_vm0, %v1683_v28 }
 0xeaf PF: > { %s21_s17 = sadd.s32 1, %s1963_s17  }
 0xeb0   : > { %p18_p4 = scmp.ge.s32.totalorder %s21_s17, 4  }
 0xeb2   :  { %20 = sbr.rel (!%p18_p4) target bundleno = 1 (0x1), region = 94 }

// kernel: transformer_forward.13
= control target key start
LH: loop header
LB: loop body
LE: loop exit
PB: predicated region body
PF: predicated region fallthrough
CT: control target
= control target key end

     0   :  { %v164_v0 = vmov 0.0   ;;  %vm28_vm0 = vcmask 261120   ;;  %vm165_vm1 = vmmov 0   ;;  %vm118_vm2 = vcmask 64512   ;;  %s219_s1 = inlined_call_operand.vmem [shape: f32[32,8], index: 1, kind: input, shape index: {}]   ;;  %s220_s0 = inlined_call_operand.vmem [shape: f32[24,32], index: 0, kind: input, shape index: {}]   ;;  %s221_s2 = inlined_call_operand.vmem [shape: f32[1,8], index: 2, kind: input, shape index: {}]   ;;  %s222_s3 = inlined_call_operand.vmem [shape: f32[24,8], index: 3, kind: output, shape index: {}]  }
   0x1   :  { %154 = vmatprep.subr.mxu1 %v164_v0  ;;  %v20_v1 = vld [vmem:[%s219_s1 + $0x18] sm:$0xff]  ;;  %137 = vmatprep.subr.mxu0 %v164_v0  ;;  %v19_v2 = vld [vmem:[%s219_s1 + $0x10] sm:$0xff]  ;;  %v18_v3 = vld [vmem:[%s219_s1 + $0x8] sm:$0xff] }
   0x2   :  { %158 = vmatpush3.msra.mxu1 %v20_v1  ;;  %138 = vmatpush3.msra.mxu0 %v20_v1  ;;  %v17_v4 = vld [vmem:[%s219_s1] sm:$0xff]  ;;  %v15_v5 = vld [vmem:[%s220_s0 + $0x8] sm:$0xff]  ;;  %v16_v7 = vld [vmem:[%s220_s0 + $0x10] sm:$0xff] }
   0x3   :  { %155 = vmatprep.subr.mxu1 %v164_v0  ;;  %139 = vmatprep.subr.mxu0 %v164_v0  ;;  %v14_v6 = vld [vmem:[%s220_s0] sm:$0xff] }
   0x4   :  { %159 = vmatpush3.msra.mxu1 %v19_v2  ;;  %140 = vmatpush3.msra.mxu0 %v19_v2  ;;  %v126_v8 = vld [vmem:[%s221_s2] ss:$0 sm:$0xff] }
   0x5   :  { %156 = vmatprep.subr.mxu1 %v164_v0  ;;  %141 = vmatprep.subr.mxu0 %v164_v0 }
   0x6   :  { %160 = vmatpush3.msra.mxu1 %v18_v3  ;;  %142 = vmatpush3.msra.mxu0 %v18_v3 }
   0x7   :  { %157 = vmatprep.subr.mxu1 %v164_v0  ;;  %148 = vmatprep.mubr.msk.f32.mxu1 %vm165_vm1, %v164_v0 }
   0x8   :  { %161 = vmatpush3.msra.mxu1 %v17_v4  ;;  %143 = vmatprep.subr.mxu0 %v164_v0 }
   0x9   :  { %149 = vmatmul.mubr.msk.f32.vlgmr.msra.gmra.mxu1 %vm28_vm0, %v15_v5  ;;  %144 = vmatpush3.msra.mxu0 %v17_v4 }
   0xa   :  { %145 = vmatprep.mubr.msk.f32.mxu0 %vm165_vm1, %v164_v0  ;;  %151 = vmatprep.mubr.msk.f32.mxu1 %vm165_vm1, %v164_v0 }
   0xb   :  { %146 = vmatmul.mubr.msk.f32.vlgmr.msra.gmra.mxu0 %vm28_vm0, %v14_v6 }
   0xd   :  { %152 = vmatmul.mubr.msk.f32.gmra.mxu1 %vm28_vm0, %v16_v7 }
  0xc9   :  { %v109_v9 = vpop.f32.mrf.mxu1 }
  0xca   :  { %v110_v10 = vadd.f32 %v126_v8, %v109_v9 }
  0xcb   :  { %v104_v11 = vpop.f32.mrf.mxu0  ;;  %v150_v12 = vpop.f32.mrf.mxu1 }
  0xcc   :  { %120 = vst.msk [vmem:[%s222_s3 + $0x8] sm:$0xff] %vm118_vm2, %v110_v10  ;;  %v105_v13 = vadd.f32 %v126_v8, %v104_v11 }
  0xcd   :  { %v147_v14 = vpop.f32.mrf.mxu0  ;;  %v114_v15 = vpop.f32.mrf.mxu1 }
  0xce   :  { %119 = vst.msk [vmem:[%s222_s3] sm:$0xff] %vm118_vm2, %v105_v13  ;;  %v115_v16 = vadd.f32 %v126_v8, %v114_v15 }
  0xcf   :  { %v153_v17 = vpop.f32.mrf.mxu1 }
  0xd0   :  { %121 = vst.msk [vmem:[%s222_s3 + $0x10] sm:$0xff] %vm118_vm2, %v115_v16 }

// kernel: transformer_forward.11
= control target key start
LH: loop header
LB: loop body
LE: loop exit
PB: predicated region body
PF: predicated region fallthrough
CT: control target
= control target key end

     0   :  { %s4208_s27 = smov 0   ;;  %s4675_s0 = inlined_call_operand.vmem [shape: f32[2,12,32], index: 0, kind: input, shape index: {}]   ;;  %s4676_s1 = inlined_call_operand.vmem [shape: f32[2,8,32], index: 1, kind: input, shape index: {}]   ;;  %s4677_s2 = inlined_call_operand.vmem [shape: f32[32,96], index: 2, kind: input, shape index: {}]   ;;  %s4678_s3 = inlined_call_operand.vmem [shape: f32[1,96], index: 3, kind: input, shape index: {}]   ;;  %s4679_s4 = inlined_call_operand.vmem [shape: f32[32,32], index: 4, kind: input, shape index: {}]   ;;  %s4680_s5 = inlined_call_operand.vmem [shape: f32[1,32], index: 5, kind: input, shape index: {}]   ;;  %s4681_s6 = inlined_call_operand.vmem [shape: f32[32,32], index: 6, kind: input, shape index: {}]   ;;  %s4682_s7 = inlined_call_operand.vmem [shape: f32[1,32], index: 7, kind: input, shape index: {}]   ;;  %s4683_s8 = inlined_call_operand.vmem [shape: f32[32,64], index: 8, kind: input, shape index: {}]   ;;  %s4684_s9 = inlined_call_operand.vmem [shape: f32[1,64], index: 9, kind: input, shape index: {}]   ;;  %s4685_s10 = inlined_call_operand.vmem [shape: f32[32,32], index: 10, kind: input, shape index: {}]   ;;  %s4686_s11 = inlined_call_operand.vmem [shape: f32[1,32], index: 11, kind: input, shape index: {}]   ;;  %s4687_s12 = inlined_call_operand.vmem [shape: f32[32,64], index: 12, kind: input, shape index: {}]   ;;  %s4688_s13 = inlined_call_operand.vmem [shape: f32[1,64], index: 13, kind: input, shape index: {}]   ;;  %s4689_s14 = inlined_call_operand.vmem [shape: f32[64,32], index: 14, kind: input, shape index: {}]   ;;  %s4690_s15 = inlined_call_operand.vmem [shape: f32[1,32], index: 15, kind: input, shape index: {}]   ;;  %s4691_s16 = inlined_call_operand.vmem [shape: f32[4,32], index: 16, kind: input, shape index: {}]   ;;  %s4692_s17 = inlined_call_operand.vmem [shape: f32[4,32], index: 17, kind: input, shape index: {}]   ;;  %s4693_s18 = inlined_call_operand.vmem [shape: f32[2,12,32], index: 18, kind: output, shape index: {}]  }
   0x1   :  { %4700 = sst [smem:[#allocation2_spill]] %s4675_s0 }
   0x2   :  { %4701 = sst [smem:[#allocation3_spill]] %s4676_s1 }
   0x3   :  { %4702 = sst [smem:[#allocation4_spill]] %s4677_s2 }
   0x4 LB: > { %s3581_s28 = sadd.s32 4294967295, %s4098_s27   ;;  %p3585_p0 = scmp.ge.s32.totalorder %s4098_s27, 1  ;;  %s4098_s27 = sphi %s4208_s27, %s28_s27  }
   0x5   : > { %p521_p1 = scmp.lt.s32.totalorder %s4098_s27, 3 }
   0x7   : > { %p522_p2 = pnand %p3585_p0, %p521_p1 }
   0x8   : > { %p579_p3 = scmp.lt.s32.totalorder (!%p522_p2), %s3581_s28, 1  ;;  %s4703_s19 = sld [smem:[#allocation2_spill]] (!%p522_p2) }
   0x9   : > { %525 = sbr.rel (%p522_p2) target bundleno = 6276 (0x1884), region = 92  ;;  %s4704_s22 = sld [smem:[#allocation4_spill]] (!%p522_p2) }
   0xa   : > { %s4100_s23 = smov (!%p522_p2), 96   ;;  %s4101_s24 = smov (!%p522_p2), 120  }
   0xb   : > { %s4102_s25 = smov (!%p522_p2), 88   ;;  %s4103_s26 = smov (!%p522_p2), 64  }
   0xc   : > { %s4104_s30 = smov (!%p522_p2), 56   ;;  %s4697_s0 = smov (!%p522_p2), 80  }
   0xd   : > { %s4698_s20 = smov (!%p522_p2), 104   ;;  %s4109_s21 = smov (!%p522_p2), 48  }
   0xe   : > { %s4711_s28 = smov (!%p579_p3, %s3581_s28), 1  ;;  %vm598_vm0 = vcmask 261120   ;;  %vm602_vm1 = vcmask 257024   ;;  %v627_v23 = vlaneseq  ;;  %v4254_v27 = vld [vmem:[%s4691_s16] sm:$0xf]  ;;  %vm743_vm2 = vcmask 64512  }
   0xf   : > { %s4695_s29 = sshll.u32 %s4711_s28, 4  ;;  %v642_v14 = vld [vmem:[%s4704_s22 + $0x18] sm:$0xff]  ;;  %v641_v15 = vld [vmem:[%s4704_s22 + $0x10] sm:$0xff]  ;;  %v640_v16 = vld [vmem:[%s4704_s22 + $0x8] sm:$0xff]  ;;  %vm842_vm4 = vcmask 93184   ;;  %vm838_vm6 = vcmask 97280  }
  0x10   : > { %s583_s1 = scalar_lea.vmem %s4703_s19, %s4695_s29  ;;  %3788 = vmatprep.subr.mxu0 %v642_v14  ;;  %v639_v17 = vld [vmem:[%s4704_s22] sm:$0xff]  ;;  %v4248_v25 = vshrl.u32 %v627_v23, 7  ;;  %v4307_v53 = vand.u32 127, %v627_v23  ;;  %s4106_s19 = smov 112   ;;  %vm873_vm7 = vcmask 1043456   ;;  %vm4112_vm8 = vmmov 0  }
  0x11   : > { %v4224_v0 = vld [vmem:[%s583_s1] sm:$0xff]  ;;  %v4226_v1 = vld [vmem:[%s583_s1 + $0x8] sm:$0xf]  ;;  %3789 = vmatpush3.msra.mxu0 %v642_v14  ;;  %s4696_s1 = smov 72   ;;  %s4110_s2 = smov 40   ;;  %vm2221_vm9 = vcmask 60416  }
  0x12   : > { %v599_v2 = vsel %vm598_vm0, %v4224_v0, 0.0  ;;  %v603_v3 = vsel %vm602_vm1, %v4226_v1, 0.0  ;;  %3790 = vmatprep.subr.mxu0 %v641_v15  ;;  %v629_v26 = vsub.s32 0, %v4248_v25  ;;  %v4259_v28 = vld [vmem:[%s4692_s17] sm:$0xf]  ;;  %v4305_v52 = vadd.s32 8, %v4248_v25 }
  0x13   : > { %600 = vadd.xlane.f32.xlu0 %v599_v2  ;;  %3791 = vmatpush3.msra.mxu0 %v641_v15  ;;  %v3591_v39 = vld [vmem:[%s4678_s3] ss:$0 sm:$0xff]  ;;  %vm834_vm5 = vcmp.ge.s32.totalorder %v4248_v25, %v4307_v53  ;;  %s4708_s29 = smov 72   ;;  %vm3390_vm10 = vcmask 523264  }
  0x14   : > { %3792 = vmatprep.subr.mxu0 %v640_v16  ;;  %v630_v29 = vrot.slane %v4254_v27, %v629_v26  ;;  %v636_v32 = vrot.slane %v4259_v28, %v629_v26  ;;  %vm835_vm3 = vcmp.ge.s32.totalorder %v4305_v52, %v4307_v53  ;;  %v733_v52 = vld [vmem:[%s4679_s4 + $0x10] sm:$0xff] }
  0x15   : > { %3793 = vmatpush3.msra.mxu0 %v640_v16 }
  0x16   : > { %3794 = vmatprep.subr.mxu0 %v639_v17 }
  0x17   : > { %604 = vadd.xlane.f32.xlu0 %v603_v3  ;;  %3795 = vmatpush3.msra.mxu0 %v639_v17 }
  0x9c   : > { %v601_v4 = vpop.xlane.xlu0 %600 }
  0x9d   : > { %v607_v5 = vmul.f32 0.03125, %v601_v4 }
  0x9f   : > { %v609_v6 = vsub.f32 %v4224_v0, %v607_v5 }
  0xa0   : > { %v605_v7 = vpop.xlane.xlu0 %604 }
  0xa1   : > { %v608_v8 = vmul.f32 0.03125, %v605_v7  ;;  %v611_v9 = vmul.f32 %v609_v6, %v609_v6 }
  0xa3   : > { %v610_v10 = vsub.f32 %v4226_v1, %v608_v8  ;;  %v613_v11 = vsel %vm598_vm0, %v611_v9, 0.0 }
  0xa4   : > { %614 = vadd.xlane.f32.xlu1 %v613_v11 }
  0xa5   : > { %v612_v12 = vmul.f32 %v610_v10, %v610_v10 }
  0xa7   : > { %v616_v13 = vsel %vm602_vm1, %v612_v12, 0.0 }
  0xa8   : > { %617 = vadd.xlane.f32.xlu1 %v616_v13 }
 0x12d   : > { %v615_v18 = vpop.xlane.xlu1 %614 }
 0x12e   : > { %v619_v19 = vmul.f32 0.03125, %v615_v18 }
 0x130   : > { %v621_v20 = vadd.f32 1e-05, %v619_v19 }
 0x131   : > { %v618_v21 = vpop.xlane.xlu1 %617 }
 0x132   : > { %4008 = vrsqrt.f32 %v621_v20  ;;  %v620_v22 = vmul.f32 0.03125, %v618_v21 }
 0x134   : > { %v622_v24 = vadd.f32 1e-05, %v620_v22 }
 0x136   : > { %4010 = vrsqrt.f32 %v622_v24 }
 0x13f   : > { %v4009_v30 = vpop.eup %4008 }
 0x140   : > { %v625_v31 = vmul.f32 %v4009_v30, %v609_v6 }
 0x142   : > { %v631_v33 = vmul.f32 %v630_v29, %v625_v31 }
 0x143   : > { %v4011_v34 = vpop.eup %4010 }
 0x144   : > { %v626_v35 = vmul.f32 %v4011_v34, %v610_v10  ;;  %v637_v36 = vadd.f32 %v636_v32, %v631_v33 }
 0x146   : > { %v632_v37 = vmul.f32 %v630_v29, %v626_v35  ;;  %3796 = vmatprep.mubr.msk.f32.mxu0 %vm598_vm0, %v637_v36 }
 0x148   : > { %v638_v38 = vadd.f32 %v636_v32, %v632_v37 }
 0x14a   : > { %3797 = vmatmul.mubr.msk.f32.vlgmr.msra.gmra.mxu0 %vm598_vm0, %v638_v38 }
 0x20a   : > { %v3798_v40 = vpop.f32.mrf.mxu0 }
 0x20b   : > { %v4268_v41 = vadd.f32 %v3798_v40, %v3591_v39 }
 0x20c   : > { %v722_v42 = vpop.f32.mrf.mxu0 }
 0x20d   : > { %v4270_v43 = vadd.f32 %v3591_v39, %v722_v42  ;;  %741 = vrot.lane.b32.xlu0 %v4268_v41, %s4100_s23  ;;  %v4288_v45 = vmul.f32 0.35355338, %v4268_v41 }
 0x20f   : > { %739 = vrot.lane.b32.xlu1 %v4270_v43, %s4100_s23  ;;  %v4277_v44 = vmul.f32 0.35355338, %v4270_v43 }
 0x211   : > { %951 = vrot.lane.b32.xlu0 %v4277_v44, %s4101_s24  ;;  %3803 = vmatprep.mubr.msk.f32.mxu1 %vm743_vm2, %v4277_v44 }
 0x213   : > { %957 = vrot.lane.b32.xlu1 %v4268_v41, %s4102_s25 }
 0x217   : > { %955 = vrot.lane.b32.xlu1 %v4270_v43, %s4102_s25 }
 0x21b   : > { %953 = vrot.lane.b32.xlu1 %v4288_v45, %s4101_s24 }
 0x27f   : > { %v742_v46 = vpop.permute.xlu0 %741 }
 0x280   : > { %3799 = vmatprep.subr.msk.mxu1 %vm743_vm2, %v742_v46 }
 0x281   : > { %3800 = vmatpush3.xpose.msk.msra.mxu1 %vm743_vm2, %v742_v46  ;;  %v740_v47 = vpop.permute.xlu1 %739  ;;  %v731_v46 = vld [vmem:[%s4679_s4] sm:$0xff] }
 0x282   : > { %3801 = vmatprep.subr.msk.mxu1 %vm743_vm2, %v740_v47 }
 0x283   : > { %v952_v49 = vpop.permute.xlu0 %951 }
 0x285   : > { %3802 = vmatpush3.xpose.msk.msra.mxu1 %vm743_vm2, %v740_v47  ;;  %v958_v48 = vpop.permute.xlu1 %957 }
 0x286   : > { %3813 = vmatprep.subr.msk.mxu1 %vm743_vm2, %v958_v48 }
 0x288   : > { %3804 = vmatmul.mubr.msk.f32.vlgmr.msra.gmra.mxu1 %vm743_vm2, %v4288_v45 }
 0x289   : > { %v956_v50 = vpop.permute.xlu1 %955  ;;  %3814 = vmatpush3.xpose.msk.msra.mxu1 %vm743_vm2, %v958_v48  ;;  %3817 = vmatprep.mubr.msk.f32.mxu1 %vm743_vm2, %v952_v49 }
 0x28a   : > { %3815 = vmatprep.subr.msk.mxu1 %vm743_vm2, %v956_v50 }
 0x28d   : > { %3816 = vmatpush3.xpose.msk.msra.mxu1 %vm743_vm2, %v956_v50  ;;  %v954_v51 = vpop.permute.xlu1 %953 }
 0x290   : > { %3818 = vmatmul.mubr.msk.f32.vlgmr.msra.gmra.mxu1 %vm743_vm2, %v954_v51 }
 0x348   : > { %v3805_v54 = vpop.f32.mrf.mxu1 }
 0x349   : > { %v837_v55 = vsel %vm835_vm3, %v3805_v54, -1e+09 }
 0x34a   : > { %v820_v56 = vpop.f32.mrf.mxu1  ;;  %v843_v57 = vsel %vm842_vm4, %v837_v55, -inf }
 0x34b   : > { %v836_v58 = vsel %vm834_vm5, %v820_v56, -1e+09  ;;  %844 = vmax.xlane.f32.xlu1 %v843_v57 }
 0x34c   : > { %v839_v59 = vsel %vm838_vm6, %v836_v58, -inf }
 0x34d   : > { %840 = vmax.xlane.f32.xlu0 %v839_v59 }
 0x350   : > { %v3819_v60 = vpop.f32.mrf.mxu1 }
 0x351   : > { %v1043_v2 = vsel %vm835_vm3, %v3819_v60, -1e+09 }
 0x352   : > { %v1033_v61 = vpop.f32.mrf.mxu1  ;;  %v1047_v3 = vsel %vm842_vm4, %v1043_v2, -inf }
 0x353   : > { %v1042_v62 = vsel %vm834_vm5, %v1033_v61, -1e+09 }
 0x354   : > { %v1044_v63 = vsel %vm838_vm6, %v1042_v62, -inf }
 0x355   : > { %1045 = vmax.xlane.f32.xlu0 %v1044_v63 }
 0x359   : > { %1048 = vmax.xlane.f32.xlu0 %v1047_v3 }
 0x3d4   : > { %v845_v4 = vpop.xlane.xlu1 %844 }
 0x3d5   : > { %v847_v5 = vsub.f32 %v837_v55, %v845_v4 }
 0x3d6   : > { %v841_v6 = vpop.xlane.xlu0 %840 }
 0x3d7   : > { %v850_v7 = vmul.f32 1.442695, %v847_v5  ;;  %v846_v8 = vsub.f32 %v836_v58, %v841_v6 }
 0x3d9   : > { %4012 = vpow2.f32 %v850_v7  ;;  %v848_v9 = vmul.f32 1.442695, %v846_v8 }
 0x3db   : > { %4014 = vpow2.f32 %v848_v9 }
 0x3de   : > { %v1046_v10 = vpop.xlane.xlu0 %1045 }
 0x3df   : > { %v1050_v11 = vsub.f32 %v1042_v62, %v1046_v10 }
 0x3e1   : > { %v1052_v12 = vmul.f32 1.442695, %v1050_v11 }
 0x3e2   : > { %v1049_v13 = vpop.xlane.xlu0 %1048 }
 0x3e3   : > { %4016 = vpow2.f32 %v1052_v12  ;;  %v1051_v14 = vsub.f32 %v1043_v2, %v1049_v13 }
 0x3e5   : > { %v1054_v15 = vmul.f32 1.442695, %v1051_v14 }
 0x3e6   : > { %v4013_v16 = vpop.eup %4012 }
 0x3e7   : > { %4018 = vpow2.f32 %v1054_v15  ;;  %v855_v17 = vsel %vm842_vm4, %v4013_v16, 0.0 }
 0x3e8   : > { %v4015_v18 = vpop.eup %4014  ;;  %856 = vadd.xlane.f32.xlu1 %v855_v17 }
 0x3e9   : > { %v852_v19 = vsel %vm838_vm6, %v4015_v18, 0.0 }
 0x3ea   : > { %853 = vadd.xlane.f32.xlu0 %v852_v19 }
 0x3f0   : > { %v4017_v20 = vpop.eup %4016 }
 0x3f1   : > { %v1056_v21 = vsel %vm838_vm6, %v4017_v20, 0.0 }
 0x3f2   : > { %1057 = vadd.xlane.f32.xlu0 %v1056_v21 }
 0x3f4   : > { %v4019_v22 = vpop.eup %4018 }
 0x3f5   : > { %v1059_v23 = vsel %vm842_vm4, %v4019_v22, 0.0 }
 0x3f6   : > { %1060 = vadd.xlane.f32.xlu1 %v1059_v23 }
 0x407   : > { %862 = vrot.lane.b32.xlu1 %v4270_v43, %s4103_s26 }
 0x408   : > { %864 = vrot.lane.b32.xlu0 %v4268_v41, %s4103_s26 }
 0x40b   : > { %1068 = vrot.lane.b32.xlu1 %v4268_v41, %s4104_s30 }
 0x40c   : > { %1322 = vrot.lane.b32.xlu0 %v4268_v41, %s4697_s0 }
 0x40f   : > { %1066 = vrot.lane.b32.xlu1 %v4270_v43, %s4104_s30 }
 0x410   : > { %1316 = vrot.lane.b32.xlu0 %v4277_v44, %s4106_s19 }
 0x413   : > { %1320 = vrot.lane.b32.xlu1 %v4270_v43, %s4697_s0 }
 0x414   : > { %1608 = vrot.lane.b32.xlu0 %v4268_v41, %s4696_s1 }
 0x417   : > { %1318 = vrot.lane.b32.xlu1 %v4288_v45, %s4106_s19 }
 0x418   : > { %1602 = vrot.lane.b32.xlu0 %v4277_v44, %s4698_s20 }
 0x41b   : > { %1606 = vrot.lane.b32.xlu1 %v4270_v43, %s4696_s1  ;;  %s4705_s1 = sld [smem:[#allocation3_spill]] }
 0x41f   : > { %1604 = vrot.lane.b32.xlu1 %v4288_v45, %s4698_s20  ;;  %v732_v45 = vld [vmem:[%s4679_s4 + $0x8] sm:$0xff] }
 0x471   : > { %v857_v24 = vpop.xlane.xlu1 %856 }
 0x472   : > { %4020 = vrcp.f32 %v857_v24 }
 0x473   : > { %v854_v26 = vpop.xlane.xlu0 %853 }
 0x474   : > { %4022 = vrcp.f32 %v854_v26 }
 0x47b   : > { %v1058_v29 = vpop.xlane.xlu0 %1057 }
 0x47c   : > { %4024 = vrcp.f32 %v1058_v29 }
 0x47f   : > { %v1061_v30 = vpop.xlane.xlu1 %1060  ;;  %v865_v31 = vpop.permute.xlu0 %864 }
 0x480   : > { %v4021_v32 = vpop.eup %4020  ;;  %4026 = vrcp.f32 %v1061_v30  ;;  %3806 = vmatprep.subr.msk.mxu0 %vm873_vm7, %v865_v31 }
 0x481   : > { %v4023_v33 = vpop.eup %4022  ;;  %3807 = vmatpush3.msk.msra.mxu0 %vm873_vm7, %v865_v31  ;;  %v861_v36 = vmul.f32 %v4021_v32, %v4013_v16 }
 0x482   : > { %v860_v34 = vmul.f32 %v4023_v33, %v4015_v18 }
 0x483   : > { %v863_v35 = vpop.permute.xlu1 %862  ;;  %v1323_v48 = vpop.permute.xlu0 %1322 }
 0x484   : > { %3808 = vmatprep.subr.mxu0 %v863_v35  ;;  %3810 = vmatprep.mubr.msk.f32.mxu0 %vm838_vm6, %v860_v34 }
 0x485   : > { %3809 = vmatpush3.msra.mxu0 %v863_v35 }
 0x486   : > { %3811 = vmatmul.mubr.msk.f32.vlgmr.msra.gmra.mxu0 %vm838_vm6, %v861_v36 }
 0x487   : > { %v1069_v37 = vpop.permute.xlu1 %1068  ;;  %v1317_v54 = vpop.permute.xlu0 %1316 }
 0x488   : > { %3820 = vmatprep.subr.msk.mxu0 %vm873_vm7, %v1069_v37 }
 0x489   : > { %v4025_v38 = vpop.eup %4024  ;;  %3821 = vmatpush3.msk.msra.mxu0 %vm873_vm7, %v1069_v37 }
 0x48a   : > { %v1064_v39 = vmul.f32 %v4025_v38, %v4017_v20 }
 0x48b   : > { %v1067_v40 = vpop.permute.xlu1 %1066  ;;  %v1609_v56 = vpop.permute.xlu0 %1608 }
 0x48c   : > { %3822 = vmatprep.subr.mxu0 %v1067_v40  ;;  %3824 = vmatprep.mubr.msk.f32.mxu0 %vm838_vm6, %v1064_v39 }
 0x48d   : > { %v4027_v42 = vpop.eup %4026  ;;  %3823 = vmatpush3.msra.mxu0 %v1067_v40 }
 0x48e   : > { %v1065_v44 = vmul.f32 %v4027_v42, %v4019_v22  ;;  %3827 = vmatprep.subr.mxu0 %v732_v45 }
 0x48f   : > { %v1321_v55 = vpop.permute.xlu1 %1320  ;;  %v1603_v58 = vpop.permute.xlu0 %1602 }
 0x490   : > { %3825 = vmatmul.mubr.msk.f32.vlgmr.msra.gmra.mxu0 %vm838_vm6, %v1065_v44 }
 0x491   : > { %3828 = vmatpush3.msra.mxu0 %v732_v45 }
 0x492   : > { %3832 = vmatprep.subr.mxu0 %v731_v46 }
 0x493   : > { %v1319_v57 = vpop.permute.xlu1 %1318 }
 0x497   : > { %v1607_v59 = vpop.permute.xlu1 %1606 }
 0x49b   : > { %v1605_v60 = vpop.permute.xlu1 %1604 }
 0x546   : > { %v3812_v47 = vpop.f32.mrf.mxu0 }
 0x548   : > { %v942_v49 = vpop.f32.mrf.mxu0 }
 0x550   : > { %v3826_v50 = vpop.f32.mrf.mxu0 }
 0x552   : > { %v1145_v51 = vpop.f32.mrf.mxu0 }
 0x553   : > { %3829 = vmatprep.mubr.msk.f32.mxu0 %vm743_vm2, %v1145_v51 }
 0x554   : > { %3830 = vmatmul.mubr.msk.f32.vlgmr.msra.gmra.mxu0 %vm743_vm2, %v3826_v50 }
 0x555   : > { %3833 = vmatpush3.msra.mxu0 %v731_v46  ;;  %3834 = vmatprep.mubr.msk.f32.mxu0 %vm743_vm2, %v942_v49 }
 0x556   : > { %3837 = vmatprep.subr.msk.mxu0 %vm743_vm2, %v1323_v48 }
 0x558   : > { %3835 = vmatmul.mubr.msk.f32.vlgmr.msra.gmra.mxu0 %vm743_vm2, %v3812_v47 }
 0x559   : > { %3838 = vmatpush3.xpose.msk.msra.mxu0 %vm743_vm2, %v1323_v48  ;;  %3841 = vmatprep.mubr.msk.f32.mxu0 %vm743_vm2, %v1317_v54 }
 0x55a   : > { %3839 = vmatprep.subr.msk.mxu0 %vm743_vm2, %v1321_v55 }
 0x55d   : > { %3840 = vmatpush3.xpose.msk.msra.mxu0 %vm743_vm2, %v1321_v55 }
 0x55e   : > { %3856 = vmatprep.subr.msk.mxu0 %vm743_vm2, %v1609_v56 }
 0x560   : > { %3842 = vmatmul.mubr.msk.f32.vlgmr.msra.gmra.mxu0 %vm743_vm2, %v1319_v57 }
 0x561   : > { %3857 = vmatpush3.xpose.msk.msra.mxu0 %vm743_vm2, %v1609_v56  ;;  %3860 = vmatprep.mubr.msk.f32.mxu0 %vm743_vm2, %v1603_v58 }
 0x562   : > { %3858 = vmatprep.subr.msk.mxu0 %vm743_vm2, %v1607_v59 }
 0x565   : > { %3859 = vmatpush3.xpose.msk.msra.mxu0 %vm743_vm2, %v1607_v59  ;;  %v734_v59 = vld [vmem:[%s4679_s4 + $0x18] sm:$0xff] }
 0x568   : > { %3861 = vmatmul.mubr.msk.f32.vlgmr.msra.gmra.mxu0 %vm743_vm2, %v1605_v60 }
 0x614   : > { %v3831_v61 = vpop.f32.mrf.mxu0 }
 0x616   : > { %v1226_v62 = vpop.f32.mrf.mxu0 }
 0x618   : > { %v3836_v63 = vpop.f32.mrf.mxu0 }
 0x619   : > { %v4383_v2 = vadd.f32 %v3836_v63, %v3831_v61 }
 0x61a   : > { %v1307_v3 = vpop.f32.mrf.mxu0 }
 0x61b   : > { %v4385_v4 = vadd.f32 %v1307_v3, %v1226_v62 }
 0x620   : > { %v3843_v5 = vpop.f32.mrf.mxu0 }
 0x621   : > { %v1408_v6 = vsel %vm835_vm3, %v3843_v5, -1e+09 }
 0x622   : > { %v1398_v7 = vpop.f32.mrf.mxu0  ;;  %v1412_v8 = vsel %vm842_vm4, %v1408_v6, -inf }
 0x623   : > { %v1407_v9 = vsel %vm834_vm5, %v1398_v7, -1e+09  ;;  %1413 = vmax.xlane.f32.xlu1 %v1412_v8  ;;  %v3630_v7 = vld [vmem:[%s4680_s5] ss:$0 sm:$0xff] }
 0x624   : > { %v1409_v10 = vsel %vm838_vm6, %v1407_v9, -inf }
 0x625   : > { %1410 = vmax.xlane.f32.xlu0 %v1409_v10 }
 0x628   : > { %v3862_v11 = vpop.f32.mrf.mxu0 }
 0x629   : > { %v1694_v32 = vsel %vm835_vm3, %v3862_v11, -1e+09 }
 0x62a   : > { %v1684_v12 = vpop.f32.mrf.mxu0  ;;  %v1698_v33 = vsel %vm842_vm4, %v1694_v32, -inf }
 0x62b   : > { %v1693_v13 = vsel %vm834_vm5, %v1684_v12, -1e+09 }
 0x62c   : > { %v1695_v14 = vsel %vm838_vm6, %v1693_v13, -inf }
 0x634   : > { %1431 = vrot.lane.b32.xlu1 %v4270_v43, %s4109_s21 }
 0x658   : > { %1696 = vmax.xlane.f32.xlu1 %v1695_v14 }
 0x6ac   : > { %v1414_v15 = vpop.xlane.xlu1 %1413 }
 0x6ad   : > { %v1416_v16 = vsub.f32 %v1408_v6, %v1414_v15 }
 0x6ae   : > { %v1411_v17 = vpop.xlane.xlu0 %1410 }
 0x6af   : > { %v1419_v18 = vmul.f32 1.442695, %v1416_v16  ;;  %v1415_v19 = vsub.f32 %v1407_v9, %v1411_v17 }
 0x6b0   : > { %v1432_v26 = vpop.permute.xlu1 %1431 }
 0x6b1   : > { %4028 = vpow2.f32 %v1419_v18  ;;  %v1417_v20 = vmul.f32 1.442695, %v1415_v19 }
 0x6b3   : > { %4030 = vpow2.f32 %v1417_v20 }
 0x6be   : > { %v4029_v21 = vpop.eup %4028 }
 0x6bf   : > { %v1424_v22 = vsel %vm842_vm4, %v4029_v21, 0.0 }
 0x6c0   : > { %v4031_v23 = vpop.eup %4030  ;;  %1425 = vadd.xlane.f32.xlu0 %v1424_v22 }
 0x6c1   : > { %v1421_v24 = vsel %vm838_vm6, %v4031_v23, 0.0 }
 0x6c4   : > { %1422 = vadd.xlane.f32.xlu0 %v1421_v24 }
 0x6da   : > { %1433 = vrot.lane.b32.xlu0 %v4268_v41, %s4109_s21  ;;  %s3588_s21 = sshll.u32 %s4711_s28, 3 }
 0x6db   : > { %s587_s0 = scalar_lea.vmem %s4705_s1, %s3588_s21  ;;  %s4707_s21 = smov 80  }
 0x6dc   : > { %v595_v12 = vld [vmem:[%s587_s0] sm:$0xff]  ;;  %s4709_s0 = sshll.u32 %s4711_s28, 4 }
 0x6dd   : > { %v1937_v16 = vsel %vm598_vm0, %v595_v12, 0.0 }
 0x6e1   : > { %v1697_v29 = vpop.xlane.xlu1 %1696 }
 0x6e2   : > { %v1701_v30 = vsub.f32 %v1693_v13, %v1697_v29 }
 0x6e4   : > { %v1703_v31 = vmul.f32 1.442695, %v1701_v30 }
 0x6e6   : > { %4032 = vpow2.f32 %v1703_v31 }
 0x6f3   : > { %v4033_v34 = vpop.eup %4032 }
 0x6f4   : > { %v1707_v35 = vsel %vm838_vm6, %v4033_v34, 0.0 }
 0x6f9   : > { %1699 = vmax.xlane.f32.xlu0 %v1698_v33  ;;  %v1955_v33 = vld [vmem:[%s4681_s6 + $0x18] sm:$0xff] }
 0x6fa   : > { %3875 = vmatprep.subr.mxu0 %v1955_v33 }
 0x6fb   : > { %3876 = vmatpush3.msra.mxu0 %v1955_v33 }
 0x6fd   : > { %1708 = vadd.xlane.f32.xlu0 %v1707_v35  ;;  %v4111_v35 = vmov 0.0  }
 0x713   : > { %1719 = vrot.lane.b32.xlu0 %v4268_v41, %s4110_s2 }
 0x749   : > { %v1426_v36 = vpop.xlane.xlu0 %1425 }
 0x74a   : > { %4034 = vrcp.f32 %v1426_v36  ;;  %v1953_v36 = vld [vmem:[%s4681_s6 + $0x8] sm:$0xff] }
 0x74d   : > { %v1423_v37 = vpop.xlane.xlu0 %1422 }
 0x74e   : > { %4036 = vrcp.f32 %v1423_v37  ;;  %v2047_v37 = vld [vmem:[%s4683_s8 + $0x18] sm:$0xff] }
 0x751   : > { %v1434_v38 = vpop.permute.xlu0 %1433 }
 0x752   : > { %3844 = vmatprep.subr.msk.mxu1 %vm873_vm7, %v1434_v38 }
 0x753   : > { %3845 = vmatpush3.msk.msra.mxu1 %vm873_vm7, %v1434_v38  ;;  %v1952_v38 = vld [vmem:[%s4681_s6] sm:$0xff] }
 0x754   : > { %3846 = vmatprep.subr.mxu1 %v1432_v26 }
 0x755   : > { %3847 = vmatpush3.msra.mxu1 %v1432_v26 }
 0x756   : > { %3851 = vmatprep.subr.mxu1 %v733_v52 }
 0x757   : > { %v4035_v53 = vpop.eup %4034 }
 0x758   : > { %v1430_v41 = vmul.f32 %v4035_v53, %v4029_v21  ;;  %v2045_v53 = vld [vmem:[%s4683_s8 + $0x8] sm:$0xff] }
 0x75b   : > { %v4037_v39 = vpop.eup %4036 }
 0x75c   : > { %v1429_v40 = vmul.f32 %v4037_v39, %v4031_v23  ;;  %v2044_v39 = vld [vmem:[%s4683_s8] sm:$0xff] }
 0x75e   : > { %3848 = vmatprep.mubr.msk.f32.mxu1 %vm838_vm6, %v1429_v40 }
 0x75f   : > { %3849 = vmatmul.mubr.msk.f32.vlgmr.msra.gmra.mxu1 %vm838_vm6, %v1430_v41 }
 0x760   : > { %3852 = vmatpush3.msra.mxu1 %v733_v52  ;;  %v2046_v52 = vld [vmem:[%s4683_s8 + $0x10] sm:$0xff] }
 0x782   : > { %v1700_v42 = vpop.xlane.xlu0 %1699 }
 0x783   : > { %v1702_v44 = vsub.f32 %v1694_v32, %v1700_v42 }
 0x785   : > { %v1705_v45 = vmul.f32 1.442695, %v1702_v44 }
 0x786   : > { %v1709_v46 = vpop.xlane.xlu0 %1708 }
 0x787   : > { %4038 = vpow2.f32 %v1705_v45 }
 0x788   : > { %4040 = vrcp.f32 %v1709_v46 }
 0x78a   : > { %v1720_v47 = vpop.permute.xlu0 %1719 }
 0x78b   : > { %3863 = vmatprep.subr.msk.mxu1 %vm873_vm7, %v1720_v47 }
 0x794   : > { %v4039_v48 = vpop.eup %4038 }
 0x795   : > { %v1710_v49 = vsel %vm842_vm4, %v4039_v48, 0.0  ;;  %v4041_v50 = vpop.eup %4040 }
 0x796   : > { %1711 = vadd.xlane.f32.xlu1 %v1710_v49  ;;  %v1715_v56 = vmul.f32 %v4041_v50, %v4033_v34  ;;  %v1954_v34 = vld [vmem:[%s4681_s6 + $0x10] sm:$0xff]  ;;  %v1927_v50 = vsub.s32 1, %v4248_v25 }
 0x797   : > { %3877 = vmatprep.subr.mxu0 %v1954_v34 }
 0x798   : > { %3878 = vmatpush3.msra.mxu0 %v1954_v34 }
 0x799   : > { %3879 = vmatprep.subr.mxu0 %v1953_v36 }
 0x79a   : > { %3880 = vmatpush3.msra.mxu0 %v1953_v36 }
 0x79b   : > { %3881 = vmatprep.subr.mxu0 %v1952_v38 }
 0x79c   : > { %3882 = vmatpush3.msra.mxu0 %v1952_v38 }
 0x7a7   : > { %1717 = vrot.lane.b32.xlu1 %v4270_v43, %s4110_s2 }
 0x81f   : > { %v3850_v51 = vpop.f32.mrf.mxu1  ;;  %v1712_v54 = vpop.xlane.xlu1 %1711 }
 0x820   : > { %4042 = vrcp.f32 %v1712_v54  ;;  %v1928_v54 = vrot.slane %v4254_v27, %v1927_v50 }
 0x821   : > { %v1510_v55 = vpop.f32.mrf.mxu1 }
 0x822   : > { %3853 = vmatprep.mubr.msk.f32.mxu1 %vm743_vm2, %v1510_v55 }
 0x823   : > { %3854 = vmatmul.mubr.msk.f32.vlgmr.msra.gmra.mxu1 %vm743_vm2, %v3850_v51  ;;  %v1718_v57 = vpop.permute.xlu1 %1717 }
 0x824   : > { %3864 = vmatpush3.msk.msra.mxu1 %vm873_vm7, %v1720_v47  ;;  %3867 = vmatprep.mubr.msk.f32.mxu1 %vm838_vm6, %v1715_v56 }
 0x825   : > { %3865 = vmatprep.subr.mxu1 %v1718_v57 }
 0x826   : > { %3866 = vmatpush3.msra.mxu1 %v1718_v57 }
 0x827   : > { %3870 = vmatprep.subr.mxu1 %v734_v59 }
 0x82d   : > { %v4043_v58 = vpop.eup %4042 }
 0x82e   : > { %v1716_v43 = vmul.f32 %v4043_v58, %v4039_v48  ;;  %v1934_v58 = vrot.slane %v4259_v28, %v1927_v50  ;;  %v3634_v28 = vld [vmem:[%s4684_s9] ss:$0 sm:$0xff] }
 0x830   : > { %3868 = vmatmul.mubr.msk.f32.vlgmr.msra.gmra.mxu1 %vm838_vm6, %v1716_v43 }
 0x831   : > { %3871 = vmatpush3.msra.mxu1 %v734_v59 }
 0x832   : > { %3886 = vmatprep.subr.mxu1 %v4111_v35 }
 0x8e3   : > { %v3855_v60 = vpop.f32.mrf.mxu1 }
 0x8e4   : > { %v1601_v61 = vadd.f32 %v3855_v60, %v4383_v2 }
 0x8e5   : > { %v1591_v62 = vpop.f32.mrf.mxu1 }
 0x8e6   : > { %v1600_v63 = vadd.f32 %v1591_v62, %v4385_v4 }
 0x8f0   : > { %v3869_v3 = vpop.f32.mrf.mxu1 }
 0x8f2   : > { %v1796_v5 = vpop.f32.mrf.mxu1 }
 0x8f3   : > { %3872 = vmatprep.mubr.msk.f32.mxu1 %vm743_vm2, %v1796_v5 }
 0x8f4   : > { %3873 = vmatmul.mubr.msk.f32.vlgmr.msra.gmra.mxu1 %vm743_vm2, %v3869_v3 }
 0x8f5   : > { %3887 = vmatpush3.msra.mxu1 %v2047_v37  ;;  %3894 = vmatprep.mubr.msk.f32.mxu1 %vm4112_vm8, %v4111_v35 }
 0x8f6   : > { %3888 = vmatprep.subr.mxu1 %v4111_v35 }
 0x8f7   : > { %3889 = vmatpush3.msra.mxu1 %v2046_v52 }
 0x8f8   : > { %3890 = vmatprep.subr.mxu1 %v4111_v35 }
 0x8f9   : > { %3891 = vmatpush3.msra.mxu1 %v2045_v53 }
 0x8fa   : > { %3892 = vmatprep.subr.mxu1 %v4111_v35 }
 0x8fb   : > { %3893 = vmatpush3.msra.mxu1 %v2044_v39 }
 0x9b4   : > { %v3874_v6 = vpop.f32.mrf.mxu1 }
 0x9b5   : > { %v1887_v8 = vadd.f32 %v3874_v6, %v1601_v61  ;;  %v3631_v6 = vld [vmem:[%s4682_s7] ss:$0 sm:$0xff] }
 0x9b6   : > { %v1877_v9 = vpop.f32.mrf.mxu1 }
 0x9b7   : > { %v1896_v10 = vadd.f32 %v3630_v7, %v1887_v8  ;;  %v1886_v11 = vadd.f32 %v1877_v9, %v1600_v63 }
 0x9b9   : > { %v4439_v2 = vadd.f32 %v1896_v10, %v4226_v1  ;;  %v1895_v4 = vadd.f32 %v3630_v7, %v1886_v11 }
 0x9bb   : > { %v4442_v13 = vadd.f32 %v1895_v4, %v4224_v0  ;;  %v1902_v14 = vsel %vm602_vm1, %v4439_v2, 0.0 }
 0x9bc   : > { %1903 = vadd.xlane.f32.xlu0 %v1902_v14 }
 0x9bd   : > { %v1899_v15 = vsel %vm598_vm0, %v4442_v13, 0.0 }
 0x9be   : > { %1900 = vadd.xlane.f32.xlu1 %v1899_v15 }
 0x9c0   : > { %1938 = vadd.xlane.f32.xlu0 %v1937_v16 }
 0xa45   : > { %v1904_v17 = vpop.xlane.xlu0 %1903 }
 0xa46   : > { %v1906_v18 = vmul.f32 0.03125, %v1904_v17 }
 0xa47   : > { %v1901_v1 = vpop.xlane.xlu1 %1900 }
 0xa48   : > { %v1908_v19 = vsub.f32 %v4439_v2, %v1906_v18  ;;  %v1905_v20 = vmul.f32 0.03125, %v1901_v1 }
 0xa49   : > { %v1939_v21 = vpop.xlane.xlu0 %1938 }
 0xa4a   : > { %v1907_v0 = vsub.f32 %v4442_v13, %v1905_v20  ;;  %v1940_v22 = vmul.f32 0.03125, %v1939_v21  ;;  %v1910_v23 = vmul.f32 %v1908_v19, %v1908_v19 }
 0xa4c   : > { %v1941_v24 = vsub.f32 %v595_v12, %v1940_v22  ;;  %v1914_v26 = vsel %vm602_vm1, %v1910_v23, 0.0  ;;  %v1909_v29 = vmul.f32 %v1907_v0, %v1907_v0 }
 0xa4d   : > { %1915 = vadd.xlane.f32.xlu0 %v1914_v26 }
 0xa4e   : > { %v1911_v30 = vsel %vm598_vm0, %v1909_v29, 0.0  ;;  %v1942_v31 = vmul.f32 %v1941_v24, %v1941_v24 }
 0xa4f   : > { %1912 = vadd.xlane.f32.xlu1 %v1911_v30 }
 0xa50   : > { %v1943_v32 = vsel %vm598_vm0, %v1942_v31, 0.0 }
 0xa53   : > { %1944 = vadd.xlane.f32.xlu1 %v1943_v32 }
 0xad6   : > { %v1916_v40 = vpop.xlane.xlu0 %1915 }
 0xad7   : > { %v1918_v41 = vmul.f32 0.03125, %v1916_v40 }
 0xad8   : > { %v1913_v42 = vpop.xlane.xlu1 %1912 }
 0xad9   : > { %v1920_v44 = vadd.f32 1e-05, %v1918_v41  ;;  %v1917_v45 = vmul.f32 0.03125, %v1913_v42 }
 0xadb   : > { %4044 = vrsqrt.f32 %v1920_v44  ;;  %v1919_v46 = vadd.f32 1e-05, %v1917_v45 }
 0xadc   : > { %v1945_v47 = vpop.xlane.xlu1 %1944 }
 0xadd   : > { %4046 = vrsqrt.f32 %v1919_v46  ;;  %v1946_v48 = vmul.f32 0.03125, %v1945_v47  ;;  %v2129_v46 = vld [vmem:[%s4685_s10 + $0x8] sm:$0xff] }
 0xadf   : > { %v1947_v49 = vadd.f32 1e-05, %v1946_v48 }
 0xae1   : > { %4048 = vrsqrt.f32 %v1947_v49 }
 0xae8   : > { %v4045_v51 = vpop.eup %4044 }
 0xae9   : > { %v1924_v55 = vmul.f32 %v4045_v51, %v1908_v19 }
 0xaea   : > { %v4047_v56 = vpop.eup %4046 }
 0xaeb   : > { %v1923_v57 = vmul.f32 %v4047_v56, %v1907_v0  ;;  %v1930_v43 = vmul.f32 %v1928_v54, %v1924_v55 }
 0xaed   : > { %v1929_v59 = vmul.f32 %v1928_v54, %v1923_v57  ;;  %v1936_v63 = vadd.f32 %v1934_v58, %v1930_v43 }
 0xaee   : > { %v4049_v60 = vpop.eup %4048 }
 0xaef   : > { %v1949_v61 = vmul.f32 %v4049_v60, %v1941_v24  ;;  %v1935_v62 = vadd.f32 %v1934_v58, %v1929_v59 }
 0xaf1   : > { %3883 = vmatprep.mubr.msk.f32.mxu0 %vm598_vm0, %v1935_v62  ;;  %v1950_v3 = vmul.f32 %v1949_v61, %v1928_v54 }
 0xaf2   : > { %3884 = vmatmul.mubr.msk.f32.vlgmr.msra.gmra.mxu0 %vm598_vm0, %v1936_v63  ;;  %v2128_v63 = vld [vmem:[%s4685_s10] sm:$0xff] }
 0xaf3   : > { %v1951_v5 = vadd.f32 %v1950_v3, %v1934_v58 }
 0xaf5   : > { %3895 = vmatmul.mubr.msk.f32.vlgmr.msra.gmra.mxu1 %vm598_vm0, %v1951_v5 }
 0xbb2   : > { %v3885_v27 = vpop.f32.mrf.mxu0 }
 0xbb3   : > { %v2041_v10 = vadd.f32 %v3885_v27, %v3631_v6 }
 0xbb4   : > { %v2035_v7 = vpop.f32.mrf.mxu0 }
 0xbb5   : > { %v2036_v8 = vadd.f32 %v3631_v6, %v2035_v7  ;;  %v2124_v9 = vpop.f32.mrf.mxu1  ;;  %v4502_v14 = vmul.f32 0.35355338, %v2041_v10 }
 0xbb6   : > { %v4490_v11 = vadd.f32 %v3634_v28, %v2124_v9 }
 0xbb7   : > { %v4492_v4 = vmul.f32 0.35355338, %v2036_v8  ;;  %v3896_v12 = vpop.f32.mrf.mxu1 }
 0xbb8   : > { %2329 = vrot.lane.b32.xlu0 %v4490_v11, %s4101_s24  ;;  %3897 = vmatprep.subr.msk.mxu0 %vm743_vm2, %v4490_v11 }
 0xbb9   : > { %2325 = vrot.lane.b32.xlu1 %v4492_v4, %s4101_s24  ;;  %3898 = vmatpush3.xpose.msk.msra.mxu0 %vm743_vm2, %v4490_v11 }
 0xbba   : > { %3899 = vmatprep.mubr.msk.f32.mxu0 %vm743_vm2, %v4492_v4 }
 0xbbc   : > { %3900 = vmatmul.mubr.msk.f32.vlgmr.msra.gmra.mxu0 %vm743_vm2, %v4502_v14 }
 0xbbd   : > { %2327 = vrot.lane.b32.xlu1 %v4502_v14, %s4101_s24  ;;  %s592_s24 = scalar_lea.vmem %s4693_s18, %s4709_s0 }
 0xc2a   : > { %v2330_v15 = vpop.permute.xlu0 %2329 }
 0xc2b   : > { %3907 = vmatprep.subr.msk.mxu0 %vm743_vm2, %v2330_v15  ;;  %v2326_v16 = vpop.permute.xlu1 %2325 }
 0xc2c   : > { %3908 = vmatpush3.xpose.msk.msra.mxu0 %vm743_vm2, %v2330_v15  ;;  %3909 = vmatprep.mubr.msk.f32.mxu0 %vm743_vm2, %v2326_v16 }
 0xc2d   : > { %3917 = vmatprep.subr.mxu0 %v2129_v46 }
 0xc2f   : > { %v2328_v17 = vpop.permute.xlu1 %2327 }
 0xc30   : > { %3910 = vmatmul.mubr.msk.f32.vlgmr.msra.gmra.mxu0 %vm743_vm2, %v2328_v17 }
 0xc31   : > { %3918 = vmatpush3.msra.mxu0 %v2129_v46 }
 0xc7c   : > { %v3901_v18 = vpop.f32.mrf.mxu0 }
 0xc7d   : > { %v2222_v1 = vsel %vm2221_vm9, %v3901_v18, -inf }
 0xc7e   : > { %2223 = vmax.xlane.f32.xlu0 %v2222_v1  ;;  %v2209_v19 = vpop.f32.mrf.mxu0 }
 0xc7f   : > { %v2218_v20 = vsel %vm743_vm2, %v2209_v19, -inf }
 0xc80   : > { %2219 = vmax.xlane.f32.xlu1 %v2218_v20 }
 0xcf0   : > { %v3911_v21 = vpop.f32.mrf.mxu0 }
 0xcf1   : > { %v2415_v23 = vsel %vm2221_vm9, %v3911_v21, -inf }
 0xcf2   : > { %v2403_v0 = vpop.f32.mrf.mxu0 }
 0xcf3   : > { %v2412_v22 = vsel %vm743_vm2, %v2403_v0, -inf }
 0xcf4   : > { %2413 = vmax.xlane.f32.xlu0 %v2412_v22 }
 0xcf8   : > { %2416 = vmax.xlane.f32.xlu0 %v2415_v23 }
 0xd07   : > { %v2224_v24 = vpop.xlane.xlu0 %2223 }
 0xd08   : > { %v2226_v26 = vsub.f32 %v3901_v18, %v2224_v24 }
 0xd09   : > { %v2220_v29 = vpop.xlane.xlu1 %2219 }
 0xd0a   : > { %v2229_v30 = vmul.f32 1.442695, %v2226_v26  ;;  %v2225_v31 = vsub.f32 %v2209_v19, %v2220_v29 }
 0xd0c   : > { %4050 = vpow2.f32 %v2229_v30  ;;  %v2227_v32 = vmul.f32 1.442695, %v2225_v31 }
 0xd0e   : > { %4052 = vpow2.f32 %v2227_v32 }
 0xd19   : > { %v4051_v33 = vpop.eup %4050 }
 0xd1a   : > { %v2234_v34 = vsel %vm2221_vm9, %v4051_v33, 0.0 }
 0xd1b   : > { %v4053_v35 = vpop.eup %4052  ;;  %2235 = vadd.xlane.f32.xlu0 %v2234_v34 }
 0xd1c   : > { %v2231_v36 = vsel %vm743_vm2, %v4053_v35, 0.0 }
 0xd1d   : > { %2232 = vadd.xlane.f32.xlu1 %v2231_v36 }
 0xd7d   : > { %v2414_v37 = vpop.xlane.xlu0 %2413 }
 0xd7e   : > { %v2418_v38 = vsub.f32 %v2403_v0, %v2414_v37 }
 0xd80   : > { %v2420_v52 = vmul.f32 1.442695, %v2418_v38  ;;  %v2130_v38 = vld [vmem:[%s4685_s10 + $0x10] sm:$0xff] }
 0xd81   : > { %v2417_v53 = vpop.xlane.xlu0 %2416 }
 0xd82   : > { %4054 = vpow2.f32 %v2420_v52  ;;  %v2419_v39 = vsub.f32 %v3911_v21, %v2417_v53 }
 0xd84   : > { %v2422_v40 = vmul.f32 1.442695, %v2419_v39 }
 0xd86   : > { %4056 = vpow2.f32 %v2422_v40 }
 0xd8f   : > { %v4055_v41 = vpop.eup %4054 }
 0xd90   : > { %v2424_v42 = vsel %vm743_vm2, %v4055_v41, 0.0 }
 0xd91   : > { %2425 = vadd.xlane.f32.xlu1 %v2424_v42 }
 0xd93   : > { %v4057_v44 = vpop.eup %4056 }
 0xd94   : > { %v2427_v45 = vsel %vm2221_vm9, %v4057_v44, 0.0 }
 0xd95   : > { %2428 = vadd.xlane.f32.xlu0 %v2427_v45 }
 0xda2   : > { %2241 = vrot.lane.b32.xlu1 %v4490_v11, %s4100_s23 }
 0xda4   : > { %v2236_v50 = vpop.xlane.xlu0 %2235 }
 0xda6   : > { %2684 = vrot.lane.b32.xlu1 %v4490_v11, %s4106_s19  ;;  %v2233_v47 = vpop.xlane.xlu1 %2232 }
 0xda7   : > { %4058 = vrcp.f32 %v2233_v47 }
 0xda8   : > { %4060 = vrcp.f32 %v2236_v50 }
 0xdaa   : > { %2680 = vrot.lane.b32.xlu1 %v4492_v4, %s4106_s19 }
 0xdab   : > { %2434 = vrot.lane.b32.xlu0 %v4490_v11, %s4102_s25 }
 0xdae   : > { %2682 = vrot.lane.b32.xlu1 %v4502_v14, %s4106_s19  ;;  %s4706_s19 = smov 104  }
 0xdb4   : > { %v4059_v48 = vpop.eup %4058 }
 0xdb5   : > { %v2239_v49 = vmul.f32 %v4059_v48, %v4053_v35  ;;  %v4061_v54 = vpop.eup %4060 }
 0xdb6   : > { %v2240_v57 = vmul.f32 %v4061_v54, %v4051_v33 }
 0xdb7   : > { %3904 = vmatprep.mubr.msk.f32.mxu1 %vm743_vm2, %v2239_v49 }
 0xe1a   : > { %v2426_v51 = vpop.xlane.xlu1 %2425 }
 0xe1b   : > { %4062 = vrcp.f32 %v2426_v51 }
 0xe1e   : > { %v2429_v55 = vpop.xlane.xlu0 %2428  ;;  %v2242_v56 = vpop.permute.xlu1 %2241 }
 0xe1f   : > { %4064 = vrcp.f32 %v2429_v55  ;;  %3902 = vmatprep.subr.mxu1 %v2242_v56 }
 0xe20   : > { %3903 = vmatpush3.msra.mxu1 %v2242_v56 }
 0xe21   : > { %3905 = vmatmul.mubr.msk.f32.vlgmr.msra.gmra.mxu1 %vm743_vm2, %v2240_v57  ;;  %v2131_v57 = vld [vmem:[%s4685_s10 + $0x18] sm:$0xff] }
 0xe22   : > { %v2435_v58 = vpop.permute.xlu0 %2434  ;;  %v2685_v43 = vpop.permute.xlu1 %2684 }
 0xe23   : > { %3912 = vmatprep.subr.mxu1 %v2435_v58  ;;  %3927 = vmatprep.subr.msk.mxu0 %vm743_vm2, %v2685_v43 }
 0xe24   : > { %3913 = vmatpush3.msra.mxu1 %v2435_v58 }
 0xe25   : > { %3922 = vmatprep.subr.mxu1 %v2128_v63 }
 0xe26   : > { %v2681_v6 = vpop.permute.xlu1 %2680 }
 0xe28   : > { %v4063_v59 = vpop.eup %4062 }
 0xe29   : > { %v2432_v60 = vmul.f32 %v4063_v59, %v4055_v41 }
 0xe2a   : > { %v2683_v7 = vpop.permute.xlu1 %2682 }
 0xe2b   : > { %3914 = vmatprep.mubr.msk.f32.mxu1 %vm743_vm2, %v2432_v60 }
 0xe2c   : > { %v4065_v61 = vpop.eup %4064 }
 0xe2d   : > { %v2433_v62 = vmul.f32 %v4065_v61, %v4057_v44 }
 0xe2f   : > { %3915 = vmatmul.mubr.msk.f32.vlgmr.msra.gmra.mxu1 %vm743_vm2, %v2433_v62 }
 0xe30   : > { %3923 = vmatpush3.msra.mxu1 %v2128_v63 }
 0xee1   : > { %v3906_v3 = vpop.f32.mrf.mxu1 }
 0xee3   : > { %v2316_v5 = vpop.f32.mrf.mxu1 }
 0xee4   : > { %3924 = vmatprep.mubr.msk.f32.mxu1 %vm743_vm2, %v2316_v5 }
 0xee5   : > { %3925 = vmatmul.mubr.msk.f32.vlgmr.msra.gmra.mxu1 %vm743_vm2, %v3906_v3 }
 0xeef   : > { %v3916_v27 = vpop.f32.mrf.mxu1 }
 0xef1   : > { %v2509_v28 = vpop.f32.mrf.mxu1 }
 0xef2   : > { %3919 = vmatprep.mubr.msk.f32.mxu0 %vm743_vm2, %v2509_v28 }
 0xef3   : > { %3920 = vmatmul.mubr.msk.f32.vlgmr.msra.gmra.mxu0 %vm743_vm2, %v3916_v27 }
 0xef4   : > { %3928 = vmatpush3.xpose.msk.msra.mxu0 %vm743_vm2, %v2685_v43  ;;  %3929 = vmatprep.mubr.msk.f32.mxu0 %vm743_vm2, %v2681_v6 }
 0xef5   : > { %3937 = vmatprep.subr.mxu0 %v2130_v38 }
 0xef7   : > { %3930 = vmatmul.mubr.msk.f32.vlgmr.msra.gmra.mxu0 %vm743_vm2, %v2683_v7 }
 0xef8   : > { %3938 = vmatpush3.msra.mxu0 %v2130_v38 }
 0xfa5   : > { %v3926_v8 = vpop.f32.mrf.mxu1 }
 0xfa7   : > { %v2671_v52 = vpop.f32.mrf.mxu1 }
 0xfb3   : > { %v3921_v9 = vpop.f32.mrf.mxu0 }
 0xfb4   : > { %v4550_v10 = vadd.f32 %v3926_v8, %v3921_v9 }
 0xfb5   : > { %v4552_v12 = vpop.f32.mrf.mxu0 }
 0xfb6   : > { %v2672_v28 = vadd.f32 %v2671_v52, %v4552_v12 }
 0xfb7   : > { %v3931_v15 = vpop.f32.mrf.mxu0 }
 0xfb8   : > { %v2770_v16 = vsel %vm2221_vm9, %v3931_v15, -inf }
 0xfb9   : > { %2771 = vmax.xlane.f32.xlu1 %v2770_v16  ;;  %v2758_v17 = vpop.f32.mrf.mxu0 }
 0xfba   : > { %v2767_v18 = vsel %vm743_vm2, %v2758_v17, -inf }
 0xfbb   : > { %2768 = vmax.xlane.f32.xlu0 %v2767_v18 }
 0xfca   : > { %2960 = vrot.lane.b32.xlu1 %v4490_v11, %s4706_s19 }
 0xfce   : > { %2956 = vrot.lane.b32.xlu1 %v4492_v4, %s4706_s19 }
 0xfd2   : > { %2958 = vrot.lane.b32.xlu1 %v4502_v14, %s4706_s19 }
0x1042   : > { %v2772_v1 = vpop.xlane.xlu1 %2771 }
0x1043   : > { %v2774_v19 = vsub.f32 %v3931_v15, %v2772_v1 }
0x1044   : > { %v2769_v20 = vpop.xlane.xlu0 %2768 }
0x1045   : > { %v2777_v21 = vmul.f32 1.442695, %v2774_v19  ;;  %v2773_v0 = vsub.f32 %v2758_v17, %v2769_v20 }
0x1046   : > { %v2961_v31 = vpop.permute.xlu1 %2960 }
0x1047   : > { %4066 = vpow2.f32 %v2777_v21  ;;  %v2775_v22 = vmul.f32 1.442695, %v2773_v0 }
0x1049   : > { %4068 = vpow2.f32 %v2775_v22 }
0x104a   : > { %v2957_v34 = vpop.permute.xlu1 %2956 }
0x104e   : > { %v2959_v37 = vpop.permute.xlu1 %2958 }
0x1054   : > { %v4067_v23 = vpop.eup %4066 }
0x1055   : > { %v2782_v24 = vsel %vm2221_vm9, %v4067_v23, 0.0 }
0x1056   : > { %v4069_v26 = vpop.eup %4068  ;;  %2783 = vadd.xlane.f32.xlu0 %v2782_v24 }
0x1057   : > { %v2779_v29 = vsel %vm743_vm2, %v4069_v26, 0.0 }
0x105a   : > { %2780 = vadd.xlane.f32.xlu0 %v2779_v29 }
0x1070   : > { %2789 = vrot.lane.b32.xlu0 %v4490_v11, %s4707_s21 }
0x10df   : > { %v2784_v4 = vpop.xlane.xlu0 %2783 }
0x10e0   : > { %4070 = vrcp.f32 %v2784_v4 }
0x10e3   : > { %v2781_v14 = vpop.xlane.xlu0 %2780 }
0x10e4   : > { %4072 = vrcp.f32 %v2781_v14 }
0x10e7   : > { %v2790_v30 = vpop.permute.xlu0 %2789 }
0x10e8   : > { %3932 = vmatprep.subr.mxu1 %v2790_v30 }
0x10e9   : > { %3933 = vmatpush3.msra.mxu1 %v2790_v30  ;;  %v3283_v30 = vld [vmem:[%s4687_s12 + $0x10] sm:$0xff] }
0x10ea   : > { %3942 = vmatprep.subr.msk.mxu1 %vm743_vm2, %v2961_v31 }
0x10ed   : > { %v4071_v32 = vpop.eup %4070 }
0x10ee   : > { %v2788_v36 = vmul.f32 %v4071_v32, %v4067_v23  ;;  %v3281_v32 = vld [vmem:[%s4687_s12] sm:$0xff] }
0x10f1   : > { %v4073_v33 = vpop.eup %4072 }
0x10f2   : > { %v2787_v35 = vmul.f32 %v4073_v33, %v4069_v26  ;;  %v3382_v33 = vld [vmem:[%s4689_s14 + $0x38] sm:$0xff] }
0x10f4   : > { %3934 = vmatprep.mubr.msk.f32.mxu1 %vm743_vm2, %v2787_v35  ;;  %v3380_v35 = vld [vmem:[%s4689_s14 + $0x28] sm:$0xff] }
0x10f5   : > { %3935 = vmatmul.mubr.msk.f32.vlgmr.msra.gmra.mxu1 %vm743_vm2, %v2788_v36  ;;  %v3379_v36 = vld [vmem:[%s4689_s14 + $0x20] sm:$0xff] }
0x10f6   : > { %3943 = vmatpush3.xpose.msk.msra.mxu1 %vm743_vm2, %v2961_v31  ;;  %3944 = vmatprep.mubr.msk.f32.mxu1 %vm743_vm2, %v2957_v34  ;;  %v3282_v31 = vld [vmem:[%s4687_s12 + $0x8] sm:$0xff]  ;;  %v3381_v34 = vld [vmem:[%s4689_s14 + $0x30] sm:$0xff] }
0x10f7   : > { %3952 = vmatprep.subr.mxu1 %v2131_v57 }
0x10f9   : > { %3945 = vmatmul.mubr.msk.f32.vlgmr.msra.gmra.mxu1 %vm743_vm2, %v2959_v37 }
0x10fa   : > { %3953 = vmatpush3.msra.mxu1 %v2131_v57  ;;  %v3378_v57 = vld [vmem:[%s4689_s14 + $0x18] sm:$0xff] }
0x10fb   : > { %3968 = vmatprep.subr.mxu1 %v3382_v33 }
0x11b5   : > { %v3936_v53 = vpop.f32.mrf.mxu1 }
0x11b7   : > { %v2864_v39 = vpop.f32.mrf.mxu1 }
0x11b8   : > { %3939 = vmatprep.mubr.msk.f32.mxu0 %vm743_vm2, %v2864_v39 }
0x11b9   : > { %3940 = vmatmul.mubr.msk.f32.vlgmr.msra.gmra.mxu0 %vm743_vm2, %v3936_v53  ;;  %v3946_v40 = vpop.f32.mrf.mxu1 }
0x11ba   : > { %v3046_v41 = vsel %vm2221_vm9, %v3946_v40, -inf }
0x11bb   : > { %3047 = vmax.xlane.f32.xlu1 %v3046_v41  ;;  %v3034_v42 = vpop.f32.mrf.mxu1  ;;  %v3271_v41 = vsub.s32 2, %v4248_v25 }
0x11bc   : > { %v3043_v44 = vsel %vm743_vm2, %v3034_v42, -inf }
0x11bd   : > { %3044 = vmax.xlane.f32.xlu0 %v3043_v44 }
0x1244   : > { %v3048_v45 = vpop.xlane.xlu1 %3047 }
0x1245   : > { %v3050_v46 = vsub.f32 %v3946_v40, %v3048_v45 }
0x1246   : > { %v3045_v47 = vpop.xlane.xlu0 %3044 }
0x1247   : > { %v3053_v48 = vmul.f32 1.442695, %v3050_v46  ;;  %v3049_v49 = vsub.f32 %v3034_v42, %v3045_v47  ;;  %v4629_v42 = vld [vmem:[%s4691_s16] sm:$0xf] }
0x1248   : > { %v3272_v44 = vrot.slane %v4629_v42, %v3271_v41  ;;  %v4635_v47 = vld [vmem:[%s4692_s17] sm:$0xf] }
0x1249   : > { %4074 = vpow2.f32 %v3053_v48  ;;  %v3051_v50 = vmul.f32 1.442695, %v3049_v49  ;;  %v3278_v48 = vrot.slane %v4635_v47, %v3271_v41 }
0x124b   : > { %4076 = vpow2.f32 %v3051_v50 }
0x1256   : > { %v4075_v51 = vpop.eup %4074 }
0x1257   : > { %v3058_v54 = vsel %vm2221_vm9, %v4075_v51, 0.0 }
0x1258   : > { %v4077_v55 = vpop.eup %4076  ;;  %3059 = vadd.xlane.f32.xlu0 %v3058_v54 }
0x1259   : > { %v3055_v56 = vsel %vm743_vm2, %v4077_v55, 0.0 }
0x125c   : > { %3056 = vadd.xlane.f32.xlu0 %v3055_v56 }
0x1272   : > { %3065 = vrot.lane.b32.xlu0 %v4490_v11, %s4708_s29 }
0x1279   : > { %v3941_v58 = vpop.f32.mrf.mxu0 }
0x127a   : > { %v2955_v43 = vadd.f32 %v3941_v58, %v4550_v10  ;;  %v3664_v10 = vld [vmem:[%s4686_s11] ss:$0 sm:$0xff]  ;;  %v3377_v58 = vld [vmem:[%s4689_s14 + $0x10] sm:$0xff] }
0x127b   : > { %v2945_v5 = vpop.f32.mrf.mxu0 }
0x127c   : > { %v2954_v8 = vadd.f32 %v2945_v5, %v2672_v28 }
0x12e1   : > { %v3060_v59 = vpop.xlane.xlu0 %3059 }
0x12e2   : > { %4078 = vrcp.f32 %v3060_v59  ;;  %v3375_v59 = vld [vmem:[%s4689_s14] sm:$0xff] }
0x12e5   : > { %v3057_v60 = vpop.xlane.xlu0 %3056 }
0x12e6   : > { %4080 = vrcp.f32 %v3057_v60  ;;  %v3665_v60 = vld [vmem:[%s4688_s13] ss:$0 sm:$0xff] }
0x12e9   : > { %v3066_v61 = vpop.permute.xlu0 %3065 }
0x12ea   : > { %3947 = vmatprep.subr.mxu0 %v3066_v61 }
0x12eb   : > { %3948 = vmatpush3.msra.mxu0 %v3066_v61 }
0x12ef   : > { %v4079_v62 = vpop.eup %4078 }
0x12f0   : > { %v3064_v11 = vmul.f32 %v4079_v62, %v4075_v51 }
0x12f3   : > { %v4081_v63 = vpop.eup %4080 }
0x12f4   : > { %v3063_v3 = vmul.f32 %v4081_v63, %v4077_v55 }
0x12f6   : > { %3949 = vmatprep.mubr.msk.f32.mxu0 %vm743_vm2, %v3063_v3 }
0x12f7   : > { %3950 = vmatmul.mubr.msk.f32.vlgmr.msra.gmra.mxu0 %vm743_vm2, %v3064_v11 }
0x13b7   : > { %v3951_v27 = vpop.f32.mrf.mxu0 }
0x13b9   : > { %v3140_v6 = vpop.f32.mrf.mxu0 }
0x13ba   : > { %3954 = vmatprep.mubr.msk.f32.mxu1 %vm743_vm2, %v3140_v6  ;;  %v3668_v6 = vld [vmem:[%s4690_s15] ss:$0 sm:$0xff] }
0x13bb   : > { %3955 = vmatmul.mubr.msk.f32.vlgmr.msra.gmra.mxu1 %vm743_vm2, %v3951_v27 }
0x13bc   : > { %3969 = vmatpush3.msra.mxu1 %v3382_v33 }
0x13bd   : > { %3970 = vmatprep.subr.mxu1 %v3381_v34 }
0x13be   : > { %3971 = vmatpush3.msra.mxu1 %v3381_v34 }
0x13bf   : > { %3972 = vmatprep.subr.mxu1 %v3380_v35 }
0x13c0   : > { %3973 = vmatpush3.msra.mxu1 %v3380_v35 }
0x13c1   : > { %3974 = vmatprep.subr.mxu1 %v3379_v36 }
0x13c2   : > { %3975 = vmatpush3.msra.mxu1 %v3379_v36 }
0x13c3   : > { %3976 = vmatprep.subr.mxu1 %v3378_v57 }
0x13c4   : > { %3977 = vmatpush3.msra.mxu1 %v3378_v57 }
0x13c5   : > { %3978 = vmatprep.subr.mxu1 %v3377_v58 }
0x13c6   : > { %3979 = vmatpush3.msra.mxu1 %v3377_v58 }
0x147b   : > { %v3956_v7 = vpop.f32.mrf.mxu1 }
0x147c   : > { %v3231_v9 = vadd.f32 %v3956_v7, %v2955_v43  ;;  %v3376_v43 = vld [vmem:[%s4689_s14 + $0x8] sm:$0xff] }
0x147d   : > { %v3221_v15 = vpop.f32.mrf.mxu1  ;;  %3980 = vmatprep.subr.mxu1 %v3376_v43 }
0x147e   : > { %v3230_v16 = vadd.f32 %v3221_v15, %v2954_v8  ;;  %v3240_v17 = vadd.f32 %v3664_v10, %v3231_v9  ;;  %3981 = vmatpush3.msra.mxu1 %v3376_v43 }
0x147f   : > { %3982 = vmatprep.subr.mxu1 %v3375_v59 }
0x1480   : > { %v3239_v18 = vadd.f32 %v3664_v10, %v3230_v16  ;;  %v3242_v20 = vadd.f32 %v3240_v17, %v4439_v2  ;;  %v3284_v2 = vld [vmem:[%s4687_s12 + $0x18] sm:$0xff]  ;;  %3983 = vmatpush3.msra.mxu1 %v3375_v59 }
0x1481   : > { %3957 = vmatprep.subr.mxu0 %v3284_v2 }
0x1482   : > { %v3241_v1 = vadd.f32 %v3239_v18, %v4442_v13  ;;  %v3246_v12 = vsel %vm602_vm1, %v3242_v20, 0.0  ;;  %3958 = vmatpush3.msra.mxu0 %v3284_v2  ;;  %v3502_v2 = vsub.s32 3, %v4248_v25 }
0x1483   : > { %3959 = vmatprep.subr.mxu0 %v3283_v30 }
0x1484   : > { %v3243_v19 = vsel %vm598_vm0, %v3241_v1, 0.0  ;;  %3960 = vmatpush3.msra.mxu0 %v3283_v30  ;;  %v3503_v30 = vrot.slane %v4629_v42, %v3502_v2 }
0x1485   : > { %3244 = vadd.xlane.f32.xlu1 %v3243_v19  ;;  %3961 = vmatprep.subr.mxu0 %v3282_v31 }
0x1486   : > { %3962 = vmatpush3.msra.mxu0 %v3282_v31 }
0x1487   : > { %3963 = vmatprep.subr.mxu0 %v3281_v32 }
0x1488   : > { %3964 = vmatpush3.msra.mxu0 %v3281_v32  ;;  %v3509_v32 = vrot.slane %v4635_v47, %v3502_v2 }
0x1489   : > { %3247 = vadd.xlane.f32.xlu1 %v3246_v12 }
0x150e   : > { %v3245_v21 = vpop.xlane.xlu1 %3244 }
0x150f   : > { %v3249_v0 = vmul.f32 0.03125, %v3245_v21 }
0x1511   : > { %v3251_v22 = vsub.f32 %v3241_v1, %v3249_v0 }
0x1512   : > { %v3248_v23 = vpop.xlane.xlu1 %3247 }
0x1513   : > { %v3250_v24 = vmul.f32 0.03125, %v3248_v23  ;;  %v3253_v26 = vmul.f32 %v3251_v22, %v3251_v22 }
0x1515   : > { %v3252_v29 = vsub.f32 %v3242_v20, %v3250_v24  ;;  %v3255_v4 = vsel %vm598_vm0, %v3253_v26, 0.0 }
0x1516   : > { %3256 = vadd.xlane.f32.xlu1 %v3255_v4 }
0x1517   : > { %v3254_v14 = vmul.f32 %v3252_v29, %v3252_v29 }
0x1519   : > { %v3258_v13 = vsel %vm602_vm1, %v3254_v14, 0.0 }
0x151a   : > { %3259 = vadd.xlane.f32.xlu1 %v3258_v13 }
0x159f   : > { %v3257_v37 = vpop.xlane.xlu1 %3256 }
0x15a0   : > { %v3261_v38 = vmul.f32 0.03125, %v3257_v37 }
0x15a2   : > { %v3263_v52 = vadd.f32 1e-05, %v3261_v38 }
0x15a3   : > { %v3260_v53 = vpop.xlane.xlu1 %3259 }
0x15a4   : > { %4082 = vrsqrt.f32 %v3263_v52  ;;  %v3262_v39 = vmul.f32 0.03125, %v3260_v53 }
0x15a6   : > { %v3264_v40 = vadd.f32 1e-05, %v3262_v39 }
0x15a8   : > { %4084 = vrsqrt.f32 %v3264_v40 }
0x15b1   : > { %v4083_v45 = vpop.eup %4082 }
0x15b2   : > { %v3267_v46 = vmul.f32 %v4083_v45, %v3251_v22 }
0x15b4   : > { %v3273_v49 = vmul.f32 %v3272_v44, %v3267_v46 }
0x15b5   : > { %v4085_v50 = vpop.eup %4084 }
0x15b6   : > { %v3268_v51 = vmul.f32 %v4085_v50, %v3252_v29  ;;  %v3279_v54 = vadd.f32 %v3278_v48, %v3273_v49 }
0x15b8   : > { %v3274_v55 = vmul.f32 %v3272_v44, %v3268_v51  ;;  %3965 = vmatprep.mubr.msk.f32.mxu0 %vm598_vm0, %v3279_v54 }
0x15ba   : > { %v3280_v56 = vadd.f32 %v3278_v48, %v3274_v55 }
0x15bc   : > { %3966 = vmatmul.mubr.msk.f32.vlgmr.msra.gmra.mxu0 %vm598_vm0, %v3280_v56 }
0x167c   : > { %v3967_v61 = vpop.f32.mrf.mxu0 }
0x167d   : > { %v3370_v62 = vadd.f32 %v3967_v61, %v3665_v60 }
0x167e   : > { %v3364_v63 = vpop.f32.mrf.mxu0 }
0x167f   : > { %v3365_v3 = vadd.f32 %v3665_v60, %v3364_v63  ;;  %v3374_v5 = vmax.f32 %v3370_v62, 0.0 }
0x1681   : > { %v3373_v11 = vmax.f32 %v3365_v3, 0.0 }
0x1683   : > { %3984 = vmatprep.mubr.msk.f32.mxu1 %vm3390_vm10, %v3373_v11 }
0x1684   : > { %3985 = vmatmul.mubr.msk.f32.vlgmr.msra.gmra.mxu1 %vm3390_vm10, %v3374_v5 }
0x1744   : > { %v3986_v27 = vpop.f32.mrf.mxu1 }
0x1745   : > { %v3469_v7 = vadd.f32 %v3986_v27, %v3668_v6 }
0x1746   : > { %v3463_v28 = vpop.f32.mrf.mxu1 }
0x1747   : > { %v3464_v8 = vadd.f32 %v3668_v6, %v3463_v28  ;;  %v3473_v15 = vadd.f32 %v3469_v7, %v3280_v56 }
0x1749   : > { %v3472_v9 = vadd.f32 %v3464_v8, %v3279_v54  ;;  %v3477_v16 = vsel %vm602_vm1, %v3473_v15, 0.0 }
0x174b   : > { %v3474_v10 = vsel %vm598_vm0, %v3472_v9, 0.0 }
0x174c   : > { %3475 = vadd.xlane.f32.xlu1 %v3474_v10 }
0x1750   : > { %3478 = vadd.xlane.f32.xlu1 %v3477_v16 }
0x17d5   : > { %v3476_v17 = vpop.xlane.xlu1 %3475 }
0x17d6   : > { %v3480_v18 = vmul.f32 0.03125, %v3476_v17 }
0x17d8   : > { %v3482_v1 = vsub.f32 %v3472_v9, %v3480_v18 }
0x17d9   : > { %v3479_v19 = vpop.xlane.xlu1 %3478 }
0x17da   : > { %v3481_v20 = vmul.f32 0.03125, %v3479_v19  ;;  %v3484_v12 = vmul.f32 %v3482_v1, %v3482_v1 }
0x17dc   : > { %v3483_v21 = vsub.f32 %v3473_v15, %v3481_v20  ;;  %v3486_v0 = vsel %vm598_vm0, %v3484_v12, 0.0 }
0x17dd   : > { %3487 = vadd.xlane.f32.xlu0 %v3486_v0 }
0x17de   : > { %v3485_v22 = vmul.f32 %v3483_v21, %v3483_v21 }
0x17e0   : > { %v3489_v23 = vsel %vm602_vm1, %v3485_v22, 0.0 }
0x17e1   : > { %3490 = vadd.xlane.f32.xlu1 %v3489_v23 }
0x1866   : > { %v3488_v24 = vpop.xlane.xlu0 %3487 }
0x1867   : > { %v3492_v26 = vmul.f32 0.03125, %v3488_v24 }
0x1869   : > { %v3494_v29 = vadd.f32 1e-05, %v3492_v26 }
0x186a   : > { %v3491_v4 = vpop.xlane.xlu1 %3490 }
0x186b   : > { %4086 = vrsqrt.f32 %v3494_v29  ;;  %v3493_v14 = vmul.f32 0.03125, %v3491_v4 }
0x186d   : > { %v3495_v13 = vadd.f32 1e-05, %v3493_v14 }
0x186f   : > { %4088 = vrsqrt.f32 %v3495_v13 }
0x1878   : > { %v4087_v31 = vpop.eup %4086 }
0x1879   : > { %v3498_v33 = vmul.f32 %v4087_v31, %v3482_v1 }
0x187b   : > { %v3504_v34 = vmul.f32 %v3503_v30, %v3498_v33 }
0x187c   : > { %v4089_v35 = vpop.eup %4088 }
0x187d   : > { %v3510_v36 = vadd.f32 %v3509_v32, %v3504_v34  ;;  %v3499_v37 = vmul.f32 %v4089_v35, %v3483_v21 }
0x187f   : > { %3512 = vst.msk [vmem:[%s592_s24] sm:$0xff] %vm598_vm0, %v3510_v36  ;;  %v3505_v38 = vmul.f32 %v3503_v30, %v3499_v37 }
0x1881   : > { %v3511_v52 = vadd.f32 %v3509_v32, %v3505_v38 }
0x1883   : > { %3513 = vst.msk [vmem:[%s592_s24 + $0x8] sm:$0xf] %vm602_vm1, %v3511_v52 }
0x1884 PF: > { %s28_s27 = sadd.s32 1, %s4098_s27  }
0x1885   : > { %p25_p4 = scmp.ge.s32.totalorder %s28_s27, 4  }
0x1887   :  { %27 = sbr.rel (!%p25_p4) target bundleno = 4 (0x4), region = 125 }

</bundles_post_ra>
